<compile_context>
chip_gen: v7x
topology: tpu7x:2x2x1
jax: 0.10.0
libtpu: 0.0.40
codegen_flags: <defaults>
</compile_context>

<pallas_src>
import functools
import math

import jax
import jax.numpy as jnp
from jax.experimental import pallas as pl
from jax.experimental.pallas import tpu as pltpu

# ---------------- configuration (mirrors SparseRPN.__init__ args) ----------
BATCH_SIZE = 2
OUTPUT_SHAPE = [BATCH_SIZE, 10, 16, 16, 16]                # [B, D, H, W, C]
SPARSE_SHAPE = (OUTPUT_SHAPE[1] + 1, OUTPUT_SHAPE[2], OUTPUT_SHAPE[3])  # [11,16,16]
NUM_INPUT_FEATURES = 16
NUM_FILTERS = [16, 16, 32]
NUM_UPSAMPLE_FILTERS = [16, 16, 16]
LAYER_NUMS = [1, 1, 1]            # reduced from default [3, 5, 5] for a small test
LAYER_STRIDES = [2, 2, 2]
UPSAMPLE_STRIDES = [1, 2, 4]
NUM_ANCHOR_PER_LOC = 2
NUM_CLASS = 2
BOX_CODE_SIZE = 7
BN_EPS = 1e-3

LANE = 128   # output-channel padding target -> lane-dense stores


def _round_up(v, m):
    return ((v + m - 1) // m) * m


# ---------------- Pallas kernel: y = [relu](x @ w + shift) [* mask] ---------
def _matmul_kernel(*refs, relu, has_mask):
    if has_mask:
        x_ref, w_ref, b_ref, m_ref, o_ref = refs
    else:
        x_ref, w_ref, b_ref, o_ref = refs
    # bf16 x bf16 -> f32 accumulate on the MXU; epilogue in f32.
    acc = jnp.dot(x_ref[...], w_ref[...], preferred_element_type=jnp.float32)
    y = acc + b_ref[...]
    if relu:
        y = jnp.maximum(y, 0.0)
    if has_mask:
        y = y * m_ref[...]        # occupancy mask AFTER ReLU (spconv emulation)
    o_ref[...] = y.astype(o_ref.dtype)


def fused_matmul(x, w, shift, *, relu, mask=None, out_dtype=jnp.bfloat16, n_out=None):
    """y = [relu](x @ w + shift) [* mask], sliced to [:M, :n_out].

    x: [M, K] any float (cast to bf16), w: [K, N] bf16 with N % 128 == 0 and the
    BN scale already folded in, shift: [N] f32, mask: [M, 1] f32 or None.
    """
    M, K = x.shape
    Kw, N = w.shape
    assert Kw == K and N % LANE == 0
    # One grid step in general (launch overhead dominates at these sizes);
    # two parallel steps on the big layers so both v7x TensorCores get rows.
    grid_m = 2 if M >= 256 else 1
    align = 16 * grid_m                       # keep bf16 sublane tiles whole
    Mp = _round_up(M, align)
    tm = Mp // grid_m
    xp = jnp.pad(x.astype(jnp.bfloat16), ((0, Mp - M), (0, 0)))
    args = [xp, w, shift.reshape(1, N).astype(jnp.float32)]
    in_specs = [
        pl.BlockSpec((tm, K), lambda i: (i, 0)),
        pl.BlockSpec((K, N), lambda i: (0, 0)),
        pl.BlockSpec((1, N), lambda i: (0, 0)),
    ]
    has_mask = mask is not None
    if has_mask:
        mp = jnp.pad(mask.reshape(M, 1).astype(jnp.float32), ((0, Mp - M), (0, 0)))
        args.append(mp)
        in_specs.append(pl.BlockSpec((tm, 1), lambda i: (i, 0)))
    out = pl.pallas_call(
        functools.partial(_matmul_kernel, relu=relu, has_mask=has_mask),
        out_shape=jax.ShapeDtypeStruct((Mp, N), out_dtype),
        grid=(grid_m,),
        in_specs=in_specs,
        out_specs=pl.BlockSpec((tm, N), lambda i: (i, 0)),
        compiler_params=pltpu.CompilerParams(dimension_semantics=("parallel",)),
    )(*args)
    n_out = N if n_out is None else n_out
    return out[:M, :n_out]


# ---------------- conv lowerings (im2col glue; matmul is the Pallas kernel) -
def conv3d(x, p, stride, padding, relu, mask=None):
    """x: [B,D,H,W,Cin]; p['w']: [kd*kh*kw*Cin, Npad] bf16 (BN-folded)."""
    kd, kh, kw = p["ksize"]
    cout = p["cout"]
    x = x.astype(jnp.bfloat16)
    B, D, H, W, C = x.shape
    sd, sh, sw = stride
    pd, ph, pw = padding
    xp = jnp.pad(x, ((0, 0), (pd, pd), (ph, ph), (pw, pw), (0, 0)))
    Dp, Hp, Wp = D + 2 * pd, H + 2 * ph, W + 2 * pw
    Do, Ho, Wo = (Dp - kd) // sd + 1, (Hp - kh) // sh + 1, (Wp - kw) // sw + 1
    patches = []
    for i in range(kd):
        for j in range(kh):
            for k in range(kw):
                patches.append(
                    xp[:, i:i + sd * Do:sd, j:j + sh * Ho:sh, k:k + sw * Wo:sw, :])
    # TODO(synk): X is still a kd*kh*kw-duplicated bf16 im2col materialized by
    # XLA; an in-kernel tap loop over strided windows would cut that traffic.
    X = jnp.stack(patches, axis=4).reshape(B * Do * Ho * Wo, kd * kh * kw * C)
    mflat = None if mask is None else mask.reshape(B * Do * Ho * Wo, 1)
    Y = fused_matmul(X, p["w"], p["shift"], relu=relu, mask=mflat, n_out=cout)
    return Y.reshape(B, Do, Ho, Wo, cout)


def conv2d(x, p, stride, padding, relu, mask=None):
    """x: [B,H,W,Cin]; p['w']: [kh*kw*Cin, Npad] bf16 (BN-folded)."""
    kh, kw = p["ksize"]
    cout = p["cout"]
    x = x.astype(jnp.bfloat16)
    B, H, W, C = x.shape
    sh, sw = stride
    ph, pw = padding
    xp = jnp.pad(x, ((0, 0), (ph, ph), (pw, pw), (0, 0)))
    Hp, Wp = H + 2 * ph, W + 2 * pw
    Ho, Wo = (Hp - kh) // sh + 1, (Wp - kw) // sw + 1
    patches = []
    for j in range(kh):
        for k in range(kw):
            patches.append(xp[:, j:j + sh * Ho:sh, k:k + sw * Wo:sw, :])
    X = jnp.stack(patches, axis=3).reshape(B * Ho * Wo, kh * kw * C)
    mflat = None if mask is None else mask.reshape(B * Ho * Wo, 1)
    Y = fused_matmul(X, p["w"], p["shift"], relu=relu, mask=mflat, n_out=cout)
    return Y.reshape(B, Ho, Wo, cout)


def conv_transpose2d(x, p, relu):
    """ConvTranspose2d with kernel_size == stride; p['w']: [Cin, k*k*cout padded]."""
    k, cout = p["k"], p["cout"]
    B, H, W, cin = x.shape
    Y = fused_matmul(x.reshape(B * H * W, cin).astype(jnp.bfloat16),
                     p["w"], p["shift"], relu=relu, n_out=k * k * cout)
    Y = Y.reshape(B, H, W, k, k, cout).transpose(0, 1, 3, 2, 4, 5)
    return Y.reshape(B, H * k, W * k, cout)


def dilate_mask3d(m, ksize, stride, padding):
    """Active-index propagation of a regular (non-submanifold) sparse conv."""
    B, D, H, W, _ = m.shape
    kd, kh, kw = ksize
    sd, sh, sw = stride
    pd, ph, pw = padding
    mp = jnp.pad(m, ((0, 0), (pd, pd), (ph, ph), (pw, pw), (0, 0)))
    Dp, Hp, Wp = D + 2 * pd, H + 2 * ph, W + 2 * pw
    Do, Ho, Wo = (Dp - kd) // sd + 1, (Hp - kh) // sh + 1, (Wp - kw) // sw + 1
    out = jnp.zeros((B, Do, Ho, Wo, 1), m.dtype)
    for i in range(kd):
        for j in range(kh):
            for k in range(kw):
                out = jnp.maximum(
                    out, mp[:, i:i + sd * Do:sd, j:j + sh * Ho:sh, k:k + sw * Wo:sw, :])
    return out


# ---------------- deterministic parameter initialization --------------------
def _bn_affine(k, cout):
    kg, kb = jax.random.split(k)
    gamma = 1.0 + 0.1 * jax.random.normal(kg, (cout,), jnp.float32)
    beta = 0.1 * jax.random.normal(kb, (cout,), jnp.float32)
    # eval-mode BN with running_mean=0, running_var=1 -> scale & shift
    scale = gamma / jnp.sqrt(1.0 + BN_EPS)
    return scale, beta


def _pack_weight(w_mat, shift):
    """Pad output-channel (N) axis to a multiple of 128 lanes; bf16 weights."""
    n = w_mat.shape[-1]
    npad = _round_up(n, LANE)
    w_mat = jnp.pad(w_mat, ((0, 0), (0, npad - n))).astype(jnp.bfloat16)
    shift = jnp.pad(shift, (0, npad - n)).astype(jnp.float32)
    return w_mat, shift


def make_conv3(k, ksize, cin, cout):
    kw_, kbn = jax.random.split(k)
    w = 0.05 * jax.random.normal(kw_, (*ksize, cin, cout), jnp.float32)
    scale, shift = _bn_affine(kbn, cout)
    w = w * scale                                         # fold BN scale (exact)
    wm, shift = _pack_weight(w.reshape(math.prod(ksize) * cin, cout), shift)
    return dict(w=wm, shift=shift, ksize=tuple(ksize), cout=cout)


def make_conv2(k, ksize, cin, cout):
    kw_, kbn = jax.random.split(k)
    w = 0.05 * jax.random.normal(kw_, (ksize, ksize, cin, cout), jnp.float32)
    scale, shift = _bn_affine(kbn, cout)
    w = w * scale
    wm, shift = _pack_weight(w.reshape(ksize * ksize * cin, cout), shift)
    return dict(w=wm, shift=shift, ksize=(ksize, ksize), cout=cout)


def make_convT(k, ksize, cin, cout):
    kw_, kbn = jax.random.split(k)
    w = 0.05 * jax.random.normal(kw_, (cin, ksize, ksize, cout), jnp.float32)
    scale, shift = _bn_affine(kbn, cout)
    w = w * scale                                         # broadcast over cout
    wm, shiftp = _pack_weight(w.reshape(cin, ksize * ksize * cout),
                              jnp.tile(shift, ksize * ksize))
    return dict(w=wm, shift=shiftp, k=ksize, cout=cout)


def make_heads(k, cin):
    """Fuse the three 1x1 heads (box / cls / dir) into one [cin, 22->128] matmul."""
    nb = NUM_ANCHOR_PER_LOC * BOX_CODE_SIZE
    nc = NUM_ANCHOR_PER_LOC * NUM_CLASS            # encode_background_as_zeros
    nd = NUM_ANCHOR_PER_LOC * 2
    kwb, kwc, kwd, kbb, kbc, kbd = jax.random.split(k, 6)
    w = jnp.concatenate([0.05 * jax.random.normal(kwb, (cin, nb), jnp.float32),
                         0.05 * jax.random.normal(kwc, (cin, nc), jnp.float32),
                         0.05 * jax.random.normal(kwd, (cin, nd), jnp.float32)], axis=1)
    b = jnp.concatenate([0.1 * jax.random.normal(kbb, (nb,), jnp.float32),
                         0.1 * jax.random.normal(kbc, (nc,), jnp.float32),
                         0.1 * jax.random.normal(kbd, (nd,), jnp.float32)])
    wm, shift = _pack_weight(w, b)
    return dict(w=wm, shift=shift, splits=(nb, nc, nd))


def init_params(key):
    keys = iter(jax.random.split(key, 64))
    nf, nup = NUM_FILTERS, NUM_UPSAMPLE_FILTERS
    params = {}
    b1 = [make_conv3(next(keys), (3, 3, 3), NUM_INPUT_FEATURES, nf[0])]
    for _ in range(LAYER_NUMS[0]):
        b1.append(make_conv3(next(keys), (3, 3, 3), nf[0], nf[0]))
    params["block1"] = b1
    params["deconv1"] = [make_conv3(next(keys), (3, 1, 1), nf[0], nf[0]),
                         make_conv3(next(keys), (2, 1, 1), nf[0], nup[0])]
    b2 = [make_conv3(next(keys), (3, 3, 3), nf[0], nf[1])]
    for _ in range(LAYER_NUMS[1]):
        b2.append(make_conv3(next(keys), (3, 3, 3), nf[1], nf[1]))
    params["block2"] = b2
    params["deconv2_sp"] = make_conv3(next(keys), (2, 1, 1), nf[1], nf[1])
    params["deconv2_tr"] = make_convT(next(keys), UPSAMPLE_STRIDES[1], nf[1], nup[1])
    b3 = [make_conv3(next(keys), (2, 3, 3), nf[1], nf[2])]
    for _ in range(LAYER_NUMS[2]):
        b3.append(make_conv3(next(keys), (3, 3, 3), nf[2], nf[2]))
    params["block3"] = b3
    params["deconv3_tr"] = make_convT(next(keys), UPSAMPLE_STRIDES[2], nf[2], nup[2])
    params["post"] = [make_conv2(next(keys), 3, sum(nup), 128),
                      make_conv2(next(keys), 3, 128, 64)]
    params["heads"] = make_heads(next(keys), 64)
    return params


# ---------------- forward ----------------------------------------------------
def forward(params, voxel_features, coors):
    B = BATCH_SIZE
    Dsp, H, W = SPARSE_SHAPE
    Cin = NUM_INPUT_FEATURES
    s0, s1, s2 = LAYER_STRIDES

    # spconv.SparseConvTensor -> densified grid + occupancy mask
    dense = jnp.zeros((B, Dsp, H, W, Cin), jnp.float32)
    dense = dense.at[coors[:, 0], coors[:, 1], coors[:, 2], coors[:, 3]].set(voxel_features)
    occ = jnp.zeros((B, Dsp, H, W, 1), jnp.float32)
    occ = occ.at[coors[:, 0], coors[:, 1], coors[:, 2], coors[:, 3], 0].set(1.0)
    # TODO(synk): spconv builds an explicit index rule-book; sparsity is emulated
    # exactly via dense conv + active-site masks (mask multiply fused in-kernel).

    # block1: SpConv3d(k3, stride[2,s0,s0], pad[0,1,1]) + SubMConv3d * layer_nums[0]
    m1 = dilate_mask3d(occ, (3, 3, 3), (2, s0, s0), (0, 1, 1))
    x = conv3d(dense, params["block1"][0], (2, s0, s0), (0, 1, 1), True, mask=m1)
    for lp in params["block1"][1:]:
        x = conv3d(x, lp, (1, 1, 1), (1, 1, 1), True, mask=m1)
    b1 = x

    # deconv1: SpConv3d((3,1,1),s(2,1,1)) -> SpConv3d((2,1,1)) -> ToDense -> Squeeze
    md = dilate_mask3d(m1, (3, 1, 1), (2, 1, 1), (0, 0, 0))
    d = conv3d(b1, params["deconv1"][0], (2, 1, 1), (0, 0, 0), True, mask=md)
    md2 = dilate_mask3d(md, (2, 1, 1), (1, 1, 1), (0, 0, 0))
    d = conv3d(d, params["deconv1"][1], (1, 1, 1), (0, 0, 0), True, mask=md2)
    up1 = d[:, 0]                                            # squeeze depth (==1)

    # block2
    m2 = dilate_mask3d(m1, (3, 3, 3), (2, s1, s1), (0, 1, 1))
    x = conv3d(b1, params["block2"][0], (2, s1, s1), (0, 1, 1), True, mask=m2)
    for lp in params["block2"][1:]:
        x = conv3d(x, lp, (1, 1, 1), (1, 1, 1), True, mask=m2)
    b2 = x

    # deconv2: SpConv3d((2,1,1)) -> ToDense/Squeeze -> ConvTranspose2d(k=s=2)
    m2b = dilate_mask3d(m2, (2, 1, 1), (1, 1, 1), (0, 0, 0))
    d = conv3d(b2, params["deconv2_sp"], (1, 1, 1), (0, 0, 0), True, mask=m2b)
    up2 = conv_transpose2d(d[:, 0], params["deconv2_tr"], True)

    # block3
    m3 = dilate_mask3d(m2, (2, 3, 3), (1, s2, s2), (0, 1, 1))
    x = conv3d(b2, params["block3"][0], (1, s2, s2), (0, 1, 1), True, mask=m3)
    for lp in params["block3"][1:]:
        x = conv3d(x, lp, (1, 1, 1), (1, 1, 1), True, mask=m3)
    b3 = x

    # deconv3: ToDense/Squeeze -> ConvTranspose2d(k=s=4)
    up3 = conv_transpose2d(b3[:, 0], params["deconv3_tr"], True)

    # cat along channels (PyTorch dim=1 == our last axis)
    x = jnp.concatenate([up1, up2, up3], axis=-1)

    # post: 2x (Conv2d 3x3 + BN + ReLU)
    x = conv2d(x, params["post"][0], (1, 1), (1, 1), True)
    x = conv2d(x, params["post"][1], (1, 1), (1, 1), True)

    # heads: the three 1x1 convs (bias, no BN/ReLU) fused into one matmul
    Bx, Hx, Wx, Cx = x.shape
    xf = x.reshape(Bx * Hx * Wx, Cx)
    hp = params["heads"]
    nb, nc, nd = hp["splits"]
    y = fused_matmul(xf, hp["w"], hp["shift"], relu=False,
                     out_dtype=jnp.float32, n_out=nb + nc + nd)
    return {
        "box_preds": y[:, :nb].reshape(Bx, Hx, Wx, nb),
        "cls_preds": y[:, nb:nb + nc].reshape(Bx, Hx, Wx, nc),
        "dir_cls_preds": y[:, nb + nc:].reshape(Bx, Hx, Wx, nd),
    }


# ---------------- main -------------------------------------------------------
if __name__ == "__main__":
    key = jax.random.PRNGKey(0)
    kfeat, kb, kd, kh, kw_, kparam = jax.random.split(key, 6)

    n_vox = 300
    voxel_features = jax.random.normal(kfeat, (n_vox, NUM_INPUT_FEATURES), jnp.float32)
    coors = jnp.concatenate([
        jax.random.randint(kb, (n_vox, 1), 0, BATCH_SIZE),
        jax.random.randint(kd, (n_vox, 1), 0, SPARSE_SHAPE[0]),
        jax.random.randint(kh, (n_vox, 1), 0, SPARSE_SHAPE[1]),
        jax.random.randint(kw_, (n_vox, 1), 0, SPARSE_SHAPE[2]),
    ], axis=1).astype(jnp.int32)

    params = init_params(kparam)

    # params carry static metadata (ksize/cout), so close over them for jit.
    fwd = jax.jit(functools.partial(forward, params))
    out = fwd(voxel_features, coors)
    jax.block_until_ready(out)

    assert out["box_preds"].shape == (BATCH_SIZE, 8, 8, NUM_ANCHOR_PER_LOC * BOX_CODE_SIZE)
    assert out["cls_preds"].shape == (BATCH_SIZE, 8, 8, NUM_ANCHOR_PER_LOC * NUM_CLASS)
    assert out["dir_cls_preds"].shape == (BATCH_SIZE, 8, 8, NUM_ANCHOR_PER_LOC * 2)
    print("KERNEL_OK")
</pallas_src>

<mosaic_0001>
module attributes {stable_mosaic.version = 11 : i64} {
  func.func @_matmul_kernel(%arg0: i32, %arg1: memref<320x432xbf16, #tpu.memory_space<vmem>>, %arg2: memref<432x128xbf16, #tpu.memory_space<vmem>>, %arg3: memref<1x128xf32, #tpu.memory_space<vmem>>, %arg4: memref<320x1xf32, #tpu.memory_space<vmem>>, %arg5: memref<320x128xbf16, #tpu.memory_space<vmem>>) attributes {dimension_semantics = [#tpu.dimension_semantics<parallel>], iteration_bounds = array<i64: 2>, scalar_prefetch = 0 : i64, scratch_operands = 0 : i64, tpu.core_type = #tpu.core_type<tc>, window_params = [{transform_indices = @transform_0, window_bounds = array<i64: 320, 432>}, {pipeline_mode = #tpu.pipeline_mode<synchronous>, transform_indices = @transform_1, window_bounds = array<i64: 432, 128>}, {pipeline_mode = #tpu.pipeline_mode<synchronous>, transform_indices = @transform_2, window_bounds = array<i64: 1, 128>}, {transform_indices = @transform_3, window_bounds = array<i64: 320, 1>}, {transform_indices = @transform_4, window_bounds = array<i64: 320, 128>}]} {
    %c0 = arith.constant 0 : index
    %c0_0 = arith.constant 0 : index
    %0 = vector.load %arg1[%c0, %c0_0] : memref<320x432xbf16, #tpu.memory_space<vmem>>, vector<320x432xbf16>
    %c0_1 = arith.constant 0 : index
    %c0_2 = arith.constant 0 : index
    %1 = vector.load %arg2[%c0_1, %c0_2] : memref<432x128xbf16, #tpu.memory_space<vmem>>, vector<432x128xbf16>
    %cst = arith.constant dense<0.000000e+00> : vector<320x128xf32>
    %2 = tpu.matmul %0, %1, %cst {dimension_numbers = #tpu.dot_dimension_numbers<[1], [0], [0], [1], [0, 0, 1, 1], [], []>} : vector<320x432xbf16>, vector<432x128xbf16>, vector<320x128xf32> -> vector<320x128xf32>
    %c0_3 = arith.constant 0 : index
    %c0_4 = arith.constant 0 : index
    %3 = vector.load %arg3[%c0_3, %c0_4] : memref<1x128xf32, #tpu.memory_space<vmem>>, vector<1x128xf32>
    %4 = vector.broadcast %3 : vector<1x128xf32> to vector<320x128xf32>
    %5 = arith.addf %2, %4 : vector<320x128xf32>
    %cst_5 = arith.constant 0.000000e+00 : f32
    %6 = vector.broadcast %cst_5 : f32 to vector<320x128xf32>
    %7 = arith.maximumf %5, %6 : vector<320x128xf32>
    %c0_6 = arith.constant 0 : index
    %c0_7 = arith.constant 0 : index
    %8 = vector.load %arg4[%c0_6, %c0_7] : memref<320x1xf32, #tpu.memory_space<vmem>>, vector<320x1xf32>
    %9 = vector.broadcast %8 : vector<320x1xf32> to vector<320x128xf32>
    %10 = arith.mulf %7, %9 : vector<320x128xf32>
    %11 = arith.truncf %10 : vector<320x128xf32> to vector<320x128xbf16>
    %c0_8 = arith.constant 0 : index
    %c0_9 = arith.constant 0 : index
    %12 = vector.load %arg5[%c0_8, %c0_9] : memref<320x128xbf16, #tpu.memory_space<vmem>>, vector<320x128xbf16>
    tpu.vector_store %arg5[%c0_8, %c0_9], %11 {strides = array<i32>} : memref<320x128xbf16, #tpu.memory_space<vmem>>, vector<320x128xbf16>,
    return
  }
  func.func @transform_0(%arg0: i32) -> (i32, i32) {
    %c0_i32 = arith.constant 0 : i32
    %c0_i32_0 = arith.constant 0 : i32
    return %arg0, %c0_i32 : i32, i32
  }
  func.func @transform_1(%arg0: i32) -> (i32, i32) {
    %c0_i32 = arith.constant 0 : i32
    %c0_i32_0 = arith.constant 0 : i32
    %c0_i32_1 = arith.constant 0 : i32
    return %c0_i32, %c0_i32_0 : i32, i32
  }
  func.func @transform_2(%arg0: i32) -> (i32, i32) {
    %c0_i32 = arith.constant 0 : i32
    %c0_i32_0 = arith.constant 0 : i32
    %c0_i32_1 = arith.constant 0 : i32
    return %c0_i32, %c0_i32_0 : i32, i32
  }
  func.func @transform_3(%arg0: i32) -> (i32, i32) {
    %c0_i32 = arith.constant 0 : i32
    %c0_i32_0 = arith.constant 0 : i32
    return %arg0, %c0_i32 : i32, i32
  }
  func.func @transform_4(%arg0: i32) -> (i32, i32) {
    %c0_i32 = arith.constant 0 : i32
    %c0_i32_0 = arith.constant 0 : i32
    return %arg0, %c0_i32 : i32, i32
  }
}

module attributes {stable_mosaic.version = 11 : i64} {
  func.func @_matmul_kernel(%arg0: i32, %arg1: memref<128x48xbf16, #tpu.memory_space<vmem>>, %arg2: memref<48x128xbf16, #tpu.memory_space<vmem>>, %arg3: memref<1x128xf32, #tpu.memory_space<vmem>>, %arg4: memref<128x1xf32, #tpu.memory_space<vmem>>, %arg5: memref<128x128xbf16, #tpu.memory_space<vmem>>) attributes {dimension_semantics = [#tpu.dimension_semantics<parallel>], iteration_bounds = array<i64: 2>, scalar_prefetch = 0 : i64, scratch_operands = 0 : i64, tpu.core_type = #tpu.core_type<tc>, window_params = [{transform_indices = @transform_0, window_bounds = array<i64: 128, 48>}, {pipeline_mode = #tpu.pipeline_mode<synchronous>, transform_indices = @transform_1, window_bounds = array<i64: 48, 128>}, {pipeline_mode = #tpu.pipeline_mode<synchronous>, transform_indices = @transform_2, window_bounds = array<i64: 1, 128>}, {transform_indices = @transform_3, window_bounds = array<i64: 128, 1>}, {transform_indices = @transform_4, window_bounds = array<i64: 128, 128>}]} {
    %c0 = arith.constant 0 : index
    %c0_0 = arith.constant 0 : index
    %0 = vector.load %arg1[%c0, %c0_0] : memref<128x48xbf16, #tpu.memory_space<vmem>>, vector<128x48xbf16>
    %c0_1 = arith.constant 0 : index
    %c0_2 = arith.constant 0 : index
    %1 = vector.load %arg2[%c0_1, %c0_2] : memref<48x128xbf16, #tpu.memory_space<vmem>>, vector<48x128xbf16>
    %cst = arith.constant dense<0.000000e+00> : vector<128x128xf32>
    %2 = tpu.matmul %0, %1, %cst {dimension_numbers = #tpu.dot_dimension_numbers<[1], [0], [0], [1], [0, 0, 1, 1], [], []>} : vector<128x48xbf16>, vector<48x128xbf16>, vector<128x128xf32> -> vector<128x128xf32>
    %c0_3 = arith.constant 0 : index
    %c0_4 = arith.constant 0 : index
    %3 = vector.load %arg3[%c0_3, %c0_4] : memref<1x128xf32, #tpu.memory_space<vmem>>, vector<1x128xf32>
    %4 = vector.broadcast %3 : vector<1x128xf32> to vector<128x128xf32>
    %5 = arith.addf %2, %4 : vector<128x128xf32>
    %cst_5 = arith.constant 0.000000e+00 : f32
    %6 = vector.broadcast %cst_5 : f32 to vector<128x128xf32>
    %7 = arith.maximumf %5, %6 : vector<128x128xf32>
    %c0_6 = arith.constant 0 : index
    %c0_7 = arith.constant 0 : index
    %8 = vector.load %arg4[%c0_6, %c0_7] : memref<128x1xf32, #tpu.memory_space<vmem>>, vector<128x1xf32>
    %9 = vector.broadcast %8 : vector<128x1xf32> to vector<128x128xf32>
    %10 = arith.mulf %7, %9 : vector<128x128xf32>
    %11 = arith.truncf %10 : vector<128x128xf32> to vector<128x128xbf16>
    %c0_8 = arith.constant 0 : index
    %c0_9 = arith.constant 0 : index
    %12 = vector.load %arg5[%c0_8, %c0_9] : memref<128x128xbf16, #tpu.memory_space<vmem>>, vector<128x128xbf16>
    tpu.vector_store %arg5[%c0_8, %c0_9], %11 {strides = array<i32>} : memref<128x128xbf16, #tpu.memory_space<vmem>>, vector<128x128xbf16>,
    return
  }
  func.func @transform_0(%arg0: i32) -> (i32, i32) {
    %c0_i32 = arith.constant 0 : i32
    %c0_i32_0 = arith.constant 0 : i32
    return %arg0, %c0_i32 : i32, i32
  }
  func.func @transform_1(%arg0: i32) -> (i32, i32) {
    %c0_i32 = arith.constant 0 : i32
    %c0_i32_0 = arith.constant 0 : i32
    %c0_i32_1 = arith.constant 0 : i32
    return %c0_i32, %c0_i32_0 : i32, i32
  }
  func.func @transform_2(%arg0: i32) -> (i32, i32) {
    %c0_i32 = arith.constant 0 : i32
    %c0_i32_0 = arith.constant 0 : i32
    %c0_i32_1 = arith.constant 0 : i32
    return %c0_i32, %c0_i32_0 : i32, i32
  }
  func.func @transform_3(%arg0: i32) -> (i32, i32) {
    %c0_i32 = arith.constant 0 : i32
    %c0_i32_0 = arith.constant 0 : i32
    return %arg0, %c0_i32 : i32, i32
  }
  func.func @transform_4(%arg0: i32) -> (i32, i32) {
    %c0_i32 = arith.constant 0 : i32
    %c0_i32_0 = arith.constant 0 : i32
    return %arg0, %c0_i32 : i32, i32
  }
}

module attributes {stable_mosaic.version = 11 : i64} {
  func.func @_matmul_kernel(%arg0: i32, %arg1: memref<128x32xbf16, #tpu.memory_space<vmem>>, %arg2: memref<32x128xbf16, #tpu.memory_space<vmem>>, %arg3: memref<1x128xf32, #tpu.memory_space<vmem>>, %arg4: memref<128x1xf32, #tpu.memory_space<vmem>>, %arg5: memref<128x128xbf16, #tpu.memory_space<vmem>>) attributes {dimension_semantics = [#tpu.dimension_semantics<parallel>], iteration_bounds = array<i64: 1>, scalar_prefetch = 0 : i64, scratch_operands = 0 : i64, tpu.core_type = #tpu.core_type<tc>, window_params = [{transform_indices = @transform_0, window_bounds = array<i64: 128, 32>}, {pipeline_mode = #tpu.pipeline_mode<synchronous>, transform_indices = @transform_1, window_bounds = array<i64: 32, 128>}, {pipeline_mode = #tpu.pipeline_mode<synchronous>, transform_indices = @transform_2, window_bounds = array<i64: 1, 128>}, {transform_indices = @transform_3, window_bounds = array<i64: 128, 1>}, {transform_indices = @transform_4, window_bounds = array<i64: 128, 128>}]} {
    %c0 = arith.constant 0 : index
    %c0_0 = arith.constant 0 : index
    %0 = vector.load %arg1[%c0, %c0_0] : memref<128x32xbf16, #tpu.memory_space<vmem>>, vector<128x32xbf16>
    %c0_1 = arith.constant 0 : index
    %c0_2 = arith.constant 0 : index
    %1 = vector.load %arg2[%c0_1, %c0_2] : memref<32x128xbf16, #tpu.memory_space<vmem>>, vector<32x128xbf16>
    %cst = arith.constant dense<0.000000e+00> : vector<128x128xf32>
    %2 = tpu.matmul %0, %1, %cst {dimension_numbers = #tpu.dot_dimension_numbers<[1], [0], [0], [1], [0, 0, 1, 1], [], []>} : vector<128x32xbf16>, vector<32x128xbf16>, vector<128x128xf32> -> vector<128x128xf32>
    %c0_3 = arith.constant 0 : index
    %c0_4 = arith.constant 0 : index
    %3 = vector.load %arg3[%c0_3, %c0_4] : memref<1x128xf32, #tpu.memory_space<vmem>>, vector<1x128xf32>
    %4 = vector.broadcast %3 : vector<1x128xf32> to vector<128x128xf32>
    %5 = arith.addf %2, %4 : vector<128x128xf32>
    %cst_5 = arith.constant 0.000000e+00 : f32
    %6 = vector.broadcast %cst_5 : f32 to vector<128x128xf32>
    %7 = arith.maximumf %5, %6 : vector<128x128xf32>
    %c0_6 = arith.constant 0 : index
    %c0_7 = arith.constant 0 : index
    %8 = vector.load %arg4[%c0_6, %c0_7] : memref<128x1xf32, #tpu.memory_space<vmem>>, vector<128x1xf32>
    %9 = vector.broadcast %8 : vector<128x1xf32> to vector<128x128xf32>
    %10 = arith.mulf %7, %9 : vector<128x128xf32>
    %11 = arith.truncf %10 : vector<128x128xf32> to vector<128x128xbf16>
    %c0_8 = arith.constant 0 : index
    %c0_9 = arith.constant 0 : index
    %12 = vector.load %arg5[%c0_8, %c0_9] : memref<128x128xbf16, #tpu.memory_space<vmem>>, vector<128x128xbf16>
    tpu.vector_store %arg5[%c0_8, %c0_9], %11 {strides = array<i32>} : memref<128x128xbf16, #tpu.memory_space<vmem>>, vector<128x128xbf16>,
    return
  }
  func.func @transform_0(%arg0: i32) -> (i32, i32) {
    %c0_i32 = arith.constant 0 : i32
    %c0_i32_0 = arith.constant 0 : i32
    return %arg0, %c0_i32 : i32, i32
  }
  func.func @transform_1(%arg0: i32) -> (i32, i32) {
    %c0_i32 = arith.constant 0 : i32
    %c0_i32_0 = arith.constant 0 : i32
    %c0_i32_1 = arith.constant 0 : i32
    return %c0_i32, %c0_i32_0 : i32, i32
  }
  func.func @transform_2(%arg0: i32) -> (i32, i32) {
    %c0_i32 = arith.constant 0 : i32
    %c0_i32_0 = arith.constant 0 : i32
    %c0_i32_1 = arith.constant 0 : i32
    return %c0_i32, %c0_i32_0 : i32, i32
  }
  func.func @transform_3(%arg0: i32) -> (i32, i32) {
    %c0_i32 = arith.constant 0 : i32
    %c0_i32_0 = arith.constant 0 : i32
    return %arg0, %c0_i32 : i32, i32
  }
  func.func @transform_4(%arg0: i32) -> (i32, i32) {
    %c0_i32 = arith.constant 0 : i32
    %c0_i32_0 = arith.constant 0 : i32
    return %arg0, %c0_i32 : i32, i32
  }
}

module attributes {stable_mosaic.version = 11 : i64} {
  func.func @_matmul_kernel(%arg0: i32, %arg1: memref<64x432xbf16, #tpu.memory_space<vmem>>, %arg2: memref<432x128xbf16, #tpu.memory_space<vmem>>, %arg3: memref<1x128xf32, #tpu.memory_space<vmem>>, %arg4: memref<64x1xf32, #tpu.memory_space<vmem>>, %arg5: memref<64x128xbf16, #tpu.memory_space<vmem>>) attributes {dimension_semantics = [#tpu.dimension_semantics<parallel>], iteration_bounds = array<i64: 1>, scalar_prefetch = 0 : i64, scratch_operands = 0 : i64, tpu.core_type = #tpu.core_type<tc>, window_params = [{transform_indices = @transform_0, window_bounds = array<i64: 64, 432>}, {pipeline_mode = #tpu.pipeline_mode<synchronous>, transform_indices = @transform_1, window_bounds = array<i64: 432, 128>}, {pipeline_mode = #tpu.pipeline_mode<synchronous>, transform_indices = @transform_2, window_bounds = array<i64: 1, 128>}, {transform_indices = @transform_3, window_bounds = array<i64: 64, 1>}, {transform_indices = @transform_4, window_bounds = array<i64: 64, 128>}]} {
    %c0 = arith.constant 0 : index
    %c0_0 = arith.constant 0 : index
    %0 = vector.load %arg1[%c0, %c0_0] : memref<64x432xbf16, #tpu.memory_space<vmem>>, vector<64x432xbf16>
    %c0_1 = arith.constant 0 : index
    %c0_2 = arith.constant 0 : index
    %1 = vector.load %arg2[%c0_1, %c0_2] : memref<432x128xbf16, #tpu.memory_space<vmem>>, vector<432x128xbf16>
    %cst = arith.constant dense<0.000000e+00> : vector<64x128xf32>
    %2 = tpu.matmul %0, %1, %cst {dimension_numbers = #tpu.dot_dimension_numbers<[1], [0], [0], [1], [0, 0, 1, 1], [], []>} : vector<64x432xbf16>, vector<432x128xbf16>, vector<64x128xf32> -> vector<64x128xf32>
    %c0_3 = arith.constant 0 : index
    %c0_4 = arith.constant 0 : index
    %3 = vector.load %arg3[%c0_3, %c0_4] : memref<1x128xf32, #tpu.memory_space<vmem>>, vector<1x128xf32>
    %4 = vector.broadcast %3 : vector<1x128xf32> to vector<64x128xf32>
    %5 = arith.addf %2, %4 : vector<64x128xf32>
    %cst_5 = arith.constant 0.000000e+00 : f32
    %6 = vector.broadcast %cst_5 : f32 to vector<64x128xf32>
    %7 = arith.maximumf %5, %6 : vector<64x128xf32>
    %c0_6 = arith.constant 0 : index
    %c0_7 = arith.constant 0 : index
    %8 = vector.load %arg4[%c0_6, %c0_7] : memref<64x1xf32, #tpu.memory_space<vmem>>, vector<64x1xf32>
    %9 = vector.broadcast %8 : vector<64x1xf32> to vector<64x128xf32>
    %10 = arith.mulf %7, %9 : vector<64x128xf32>
    %11 = arith.truncf %10 : vector<64x128xf32> to vector<64x128xbf16>
    %c0_8 = arith.constant 0 : index
    %c0_9 = arith.constant 0 : index
    %12 = vector.load %arg5[%c0_8, %c0_9] : memref<64x128xbf16, #tpu.memory_space<vmem>>, vector<64x128xbf16>
    tpu.vector_store %arg5[%c0_8, %c0_9], %11 {strides = array<i32>} : memref<64x128xbf16, #tpu.memory_space<vmem>>, vector<64x128xbf16>,
    return
  }
  func.func @transform_0(%arg0: i32) -> (i32, i32) {
    %c0_i32 = arith.constant 0 : i32
    %c0_i32_0 = arith.constant 0 : i32
    return %arg0, %c0_i32 : i32, i32
  }
  func.func @transform_1(%arg0: i32) -> (i32, i32) {
    %c0_i32 = arith.constant 0 : i32
    %c0_i32_0 = arith.constant 0 : i32
    %c0_i32_1 = arith.constant 0 : i32
    return %c0_i32, %c0_i32_0 : i32, i32
  }
  func.func @transform_2(%arg0: i32) -> (i32, i32) {
    %c0_i32 = arith.constant 0 : i32
    %c0_i32_0 = arith.constant 0 : i32
    %c0_i32_1 = arith.constant 0 : i32
    return %c0_i32, %c0_i32_0 : i32, i32
  }
  func.func @transform_3(%arg0: i32) -> (i32, i32) {
    %c0_i32 = arith.constant 0 : i32
    %c0_i32_0 = arith.constant 0 : i32
    return %arg0, %c0_i32 : i32, i32
  }
  func.func @transform_4(%arg0: i32) -> (i32, i32) {
    %c0_i32 = arith.constant 0 : i32
    %c0_i32_0 = arith.constant 0 : i32
    return %arg0, %c0_i32 : i32, i32
  }
}

module attributes {stable_mosaic.version = 11 : i64} {
  func.func @_matmul_kernel(%arg0: i32, %arg1: memref<32x32xbf16, #tpu.memory_space<vmem>>, %arg2: memref<32x128xbf16, #tpu.memory_space<vmem>>, %arg3: memref<1x128xf32, #tpu.memory_space<vmem>>, %arg4: memref<32x1xf32, #tpu.memory_space<vmem>>, %arg5: memref<32x128xbf16, #tpu.memory_space<vmem>>) attributes {dimension_semantics = [#tpu.dimension_semantics<parallel>], iteration_bounds = array<i64: 1>, scalar_prefetch = 0 : i64, scratch_operands = 0 : i64, tpu.core_type = #tpu.core_type<tc>, window_params = [{transform_indices = @transform_0, window_bounds = array<i64: 32, 32>}, {pipeline_mode = #tpu.pipeline_mode<synchronous>, transform_indices = @transform_1, window_bounds = array<i64: 32, 128>}, {pipeline_mode = #tpu.pipeline_mode<synchronous>, transform_indices = @transform_2, window_bounds = array<i64: 1, 128>}, {transform_indices = @transform_3, window_bounds = array<i64: 32, 1>}, {transform_indices = @transform_4, window_bounds = array<i64: 32, 128>}]} {
    %c0 = arith.constant 0 : index
    %c0_0 = arith.constant 0 : index
    %0 = vector.load %arg1[%c0, %c0_0] : memref<32x32xbf16, #tpu.memory_space<vmem>>, vector<32x32xbf16>
    %c0_1 = arith.constant 0 : index
    %c0_2 = arith.constant 0 : index
    %1 = vector.load %arg2[%c0_1, %c0_2] : memref<32x128xbf16, #tpu.memory_space<vmem>>, vector<32x128xbf16>
    %cst = arith.constant dense<0.000000e+00> : vector<32x128xf32>
    %2 = tpu.matmul %0, %1, %cst {dimension_numbers = #tpu.dot_dimension_numbers<[1], [0], [0], [1], [0, 0, 1, 1], [], []>} : vector<32x32xbf16>, vector<32x128xbf16>, vector<32x128xf32> -> vector<32x128xf32>
    %c0_3 = arith.constant 0 : index
    %c0_4 = arith.constant 0 : index
    %3 = vector.load %arg3[%c0_3, %c0_4] : memref<1x128xf32, #tpu.memory_space<vmem>>, vector<1x128xf32>
    %4 = vector.broadcast %3 : vector<1x128xf32> to vector<32x128xf32>
    %5 = arith.addf %2, %4 : vector<32x128xf32>
    %cst_5 = arith.constant 0.000000e+00 : f32
    %6 = vector.broadcast %cst_5 : f32 to vector<32x128xf32>
    %7 = arith.maximumf %5, %6 : vector<32x128xf32>
    %c0_6 = arith.constant 0 : index
    %c0_7 = arith.constant 0 : index
    %8 = vector.load %arg4[%c0_6, %c0_7] : memref<32x1xf32, #tpu.memory_space<vmem>>, vector<32x1xf32>
    %9 = vector.broadcast %8 : vector<32x1xf32> to vector<32x128xf32>
    %10 = arith.mulf %7, %9 : vector<32x128xf32>
    %11 = arith.truncf %10 : vector<32x128xf32> to vector<32x128xbf16>
    %c0_8 = arith.constant 0 : index
    %c0_9 = arith.constant 0 : index
    %12 = vector.load %arg5[%c0_8, %c0_9] : memref<32x128xbf16, #tpu.memory_space<vmem>>, vector<32x128xbf16>
    tpu.vector_store %arg5[%c0_8, %c0_9], %11 {strides = array<i32>} : memref<32x128xbf16, #tpu.memory_space<vmem>>, vector<32x128xbf16>,
    return
  }
  func.func @transform_0(%arg0: i32) -> (i32, i32) {
    %c0_i32 = arith.constant 0 : i32
    %c0_i32_0 = arith.constant 0 : i32
    return %arg0, %c0_i32 : i32, i32
  }
  func.func @transform_1(%arg0: i32) -> (i32, i32) {
    %c0_i32 = arith.constant 0 : i32
    %c0_i32_0 = arith.constant 0 : i32
    %c0_i32_1 = arith.constant 0 : i32
    return %c0_i32, %c0_i32_0 : i32, i32
  }
  func.func @transform_2(%arg0: i32) -> (i32, i32) {
    %c0_i32 = arith.constant 0 : i32
    %c0_i32_0 = arith.constant 0 : i32
    %c0_i32_1 = arith.constant 0 : i32
    return %c0_i32, %c0_i32_0 : i32, i32
  }
  func.func @transform_3(%arg0: i32) -> (i32, i32) {
    %c0_i32 = arith.constant 0 : i32
    %c0_i32_0 = arith.constant 0 : i32
    return %arg0, %c0_i32 : i32, i32
  }
  func.func @transform_4(%arg0: i32) -> (i32, i32) {
    %c0_i32 = arith.constant 0 : i32
    %c0_i32_0 = arith.constant 0 : i32
    return %arg0, %c0_i32 : i32, i32
  }
}

module attributes {stable_mosaic.version = 11 : i64} {
  func.func @_matmul_kernel(%arg0: i32, %arg1: memref<32x16xbf16, #tpu.memory_space<vmem>>, %arg2: memref<16x128xbf16, #tpu.memory_space<vmem>>, %arg3: memref<1x128xf32, #tpu.memory_space<vmem>>, %arg4: memref<32x128xbf16, #tpu.memory_space<vmem>>) attributes {dimension_semantics = [#tpu.dimension_semantics<parallel>], iteration_bounds = array<i64: 1>, scalar_prefetch = 0 : i64, scratch_operands = 0 : i64, tpu.core_type = #tpu.core_type<tc>, window_params = [{transform_indices = @transform_0, window_bounds = array<i64: 32, 16>}, {pipeline_mode = #tpu.pipeline_mode<synchronous>, transform_indices = @transform_1, window_bounds = array<i64: 16, 128>}, {pipeline_mode = #tpu.pipeline_mode<synchronous>, transform_indices = @transform_2, window_bounds = array<i64: 1, 128>}, {transform_indices = @transform_3, window_bounds = array<i64: 32, 128>}]} {
    %c0 = arith.constant 0 : index
    %c0_0 = arith.constant 0 : index
    %0 = vector.load %arg1[%c0, %c0_0] : memref<32x16xbf16, #tpu.memory_space<vmem>>, vector<32x16xbf16>
    %c0_1 = arith.constant 0 : index
    %c0_2 = arith.constant 0 : index
    %1 = vector.load %arg2[%c0_1, %c0_2] : memref<16x128xbf16, #tpu.memory_space<vmem>>, vector<16x128xbf16>
    %cst = arith.constant dense<0.000000e+00> : vector<32x128xf32>
    %2 = tpu.matmul %0, %1, %cst {dimension_numbers = #tpu.dot_dimension_numbers<[1], [0], [0], [1], [0, 0, 1, 1], [], []>} : vector<32x16xbf16>, vector<16x128xbf16>, vector<32x128xf32> -> vector<32x128xf32>
    %c0_3 = arith.constant 0 : index
    %c0_4 = arith.constant 0 : index
    %3 = vector.load %arg3[%c0_3, %c0_4] : memref<1x128xf32, #tpu.memory_space<vmem>>, vector<1x128xf32>
    %4 = vector.broadcast %3 : vector<1x128xf32> to vector<32x128xf32>
    %5 = arith.addf %2, %4 : vector<32x128xf32>
    %cst_5 = arith.constant 0.000000e+00 : f32
    %6 = vector.broadcast %cst_5 : f32 to vector<32x128xf32>
    %7 = arith.maximumf %5, %6 : vector<32x128xf32>
    %8 = arith.truncf %7 : vector<32x128xf32> to vector<32x128xbf16>
    %c0_6 = arith.constant 0 : index
    %c0_7 = arith.constant 0 : index
    %9 = vector.load %arg4[%c0_6, %c0_7] : memref<32x128xbf16, #tpu.memory_space<vmem>>, vector<32x128xbf16>
    tpu.vector_store %arg4[%c0_6, %c0_7], %8 {strides = array<i32>} : memref<32x128xbf16, #tpu.memory_space<vmem>>, vector<32x128xbf16>,
    return
  }
  func.func @transform_0(%arg0: i32) -> (i32, i32) {
    %c0_i32 = arith.constant 0 : i32
    %c0_i32_0 = arith.constant 0 : i32
    return %arg0, %c0_i32 : i32, i32
  }
  func.func @transform_1(%arg0: i32) -> (i32, i32) {
    %c0_i32 = arith.constant 0 : i32
    %c0_i32_0 = arith.constant 0 : i32
    %c0_i32_1 = arith.constant 0 : i32
    return %c0_i32, %c0_i32_0 : i32, i32
  }
  func.func @transform_2(%arg0: i32) -> (i32, i32) {
    %c0_i32 = arith.constant 0 : i32
    %c0_i32_0 = arith.constant 0 : i32
    %c0_i32_1 = arith.constant 0 : i32
    return %c0_i32, %c0_i32_0 : i32, i32
  }
  func.func @transform_3(%arg0: i32) -> (i32, i32) {
    %c0_i32 = arith.constant 0 : i32
    %c0_i32_0 = arith.constant 0 : i32
    return %arg0, %c0_i32 : i32, i32
  }
}

module attributes {stable_mosaic.version = 11 : i64} {
  func.func @_matmul_kernel(%arg0: i32, %arg1: memref<16x288xbf16, #tpu.memory_space<vmem>>, %arg2: memref<288x128xbf16, #tpu.memory_space<vmem>>, %arg3: memref<1x128xf32, #tpu.memory_space<vmem>>, %arg4: memref<16x1xf32, #tpu.memory_space<vmem>>, %arg5: memref<16x128xbf16, #tpu.memory_space<vmem>>) attributes {dimension_semantics = [#tpu.dimension_semantics<parallel>], iteration_bounds = array<i64: 1>, scalar_prefetch = 0 : i64, scratch_operands = 0 : i64, tpu.core_type = #tpu.core_type<tc>, window_params = [{transform_indices = @transform_0, window_bounds = array<i64: 16, 288>}, {pipeline_mode = #tpu.pipeline_mode<synchronous>, transform_indices = @transform_1, window_bounds = array<i64: 288, 128>}, {pipeline_mode = #tpu.pipeline_mode<synchronous>, transform_indices = @transform_2, window_bounds = array<i64: 1, 128>}, {transform_indices = @transform_3, window_bounds = array<i64: 16, 1>}, {transform_indices = @transform_4, window_bounds = array<i64: 16, 128>}]} {
    %c0 = arith.constant 0 : index
    %c0_0 = arith.constant 0 : index
    %0 = vector.load %arg1[%c0, %c0_0] : memref<16x288xbf16, #tpu.memory_space<vmem>>, vector<16x288xbf16>
    %c0_1 = arith.constant 0 : index
    %c0_2 = arith.constant 0 : index
    %1 = vector.load %arg2[%c0_1, %c0_2] : memref<288x128xbf16, #tpu.memory_space<vmem>>, vector<288x128xbf16>
    %cst = arith.constant dense<0.000000e+00> : vector<16x128xf32>
    %2 = tpu.matmul %0, %1, %cst {dimension_numbers = #tpu.dot_dimension_numbers<[1], [0], [0], [1], [0, 0, 1, 1], [], []>} : vector<16x288xbf16>, vector<288x128xbf16>, vector<16x128xf32> -> vector<16x128xf32>
    %c0_3 = arith.constant 0 : index
    %c0_4 = arith.constant 0 : index
    %3 = vector.load %arg3[%c0_3, %c0_4] : memref<1x128xf32, #tpu.memory_space<vmem>>, vector<1x128xf32>
    %4 = vector.broadcast %3 : vector<1x128xf32> to vector<16x128xf32>
    %5 = arith.addf %2, %4 : vector<16x128xf32>
    %cst_5 = arith.constant 0.000000e+00 : f32
    %6 = vector.broadcast %cst_5 : f32 to vector<16x128xf32>
    %7 = arith.maximumf %5, %6 : vector<16x128xf32>
    %c0_6 = arith.constant 0 : index
    %c0_7 = arith.constant 0 : index
    %8 = vector.load %arg4[%c0_6, %c0_7] : memref<16x1xf32, #tpu.memory_space<vmem>>, vector<16x1xf32>
    %9 = vector.broadcast %8 : vector<16x1xf32> to vector<16x128xf32>
    %10 = arith.mulf %7, %9 : vector<16x128xf32>
    %11 = arith.truncf %10 : vector<16x128xf32> to vector<16x128xbf16>
    %c0_8 = arith.constant 0 : index
    %c0_9 = arith.constant 0 : index
    %12 = vector.load %arg5[%c0_8, %c0_9] : memref<16x128xbf16, #tpu.memory_space<vmem>>, vector<16x128xbf16>
    tpu.vector_store %arg5[%c0_8, %c0_9], %11 {strides = array<i32>} : memref<16x128xbf16, #tpu.memory_space<vmem>>, vector<16x128xbf16>,
    return
  }
  func.func @transform_0(%arg0: i32) -> (i32, i32) {
    %c0_i32 = arith.constant 0 : i32
    %c0_i32_0 = arith.constant 0 : i32
    return %arg0, %c0_i32 : i32, i32
  }
  func.func @transform_1(%arg0: i32) -> (i32, i32) {
    %c0_i32 = arith.constant 0 : i32
    %c0_i32_0 = arith.constant 0 : i32
    %c0_i32_1 = arith.constant 0 : i32
    return %c0_i32, %c0_i32_0 : i32, i32
  }
  func.func @transform_2(%arg0: i32) -> (i32, i32) {
    %c0_i32 = arith.constant 0 : i32
    %c0_i32_0 = arith.constant 0 : i32
    %c0_i32_1 = arith.constant 0 : i32
    return %c0_i32, %c0_i32_0 : i32, i32
  }
  func.func @transform_3(%arg0: i32) -> (i32, i32) {
    %c0_i32 = arith.constant 0 : i32
    %c0_i32_0 = arith.constant 0 : i32
    return %arg0, %c0_i32 : i32, i32
  }
  func.func @transform_4(%arg0: i32) -> (i32, i32) {
    %c0_i32 = arith.constant 0 : i32
    %c0_i32_0 = arith.constant 0 : i32
    return %arg0, %c0_i32 : i32, i32
  }
}

module attributes {stable_mosaic.version = 11 : i64} {
  func.func @_matmul_kernel(%arg0: i32, %arg1: memref<16x864xbf16, #tpu.memory_space<vmem>>, %arg2: memref<864x128xbf16, #tpu.memory_space<vmem>>, %arg3: memref<1x128xf32, #tpu.memory_space<vmem>>, %arg4: memref<16x1xf32, #tpu.memory_space<vmem>>, %arg5: memref<16x128xbf16, #tpu.memory_space<vmem>>) attributes {dimension_semantics = [#tpu.dimension_semantics<parallel>], iteration_bounds = array<i64: 1>, scalar_prefetch = 0 : i64, scratch_operands = 0 : i64, tpu.core_type = #tpu.core_type<tc>, window_params = [{transform_indices = @transform_0, window_bounds = array<i64: 16, 864>}, {pipeline_mode = #tpu.pipeline_mode<synchronous>, transform_indices = @transform_1, window_bounds = array<i64: 864, 128>}, {pipeline_mode = #tpu.pipeline_mode<synchronous>, transform_indices = @transform_2, window_bounds = array<i64: 1, 128>}, {transform_indices = @transform_3, window_bounds = array<i64: 16, 1>}, {transform_indices = @transform_4, window_bounds = array<i64: 16, 128>}]} {
    %c0 = arith.constant 0 : index
    %c0_0 = arith.constant 0 : index
    %0 = vector.load %arg1[%c0, %c0_0] : memref<16x864xbf16, #tpu.memory_space<vmem>>, vector<16x864xbf16>
    %c0_1 = arith.constant 0 : index
    %c0_2 = arith.constant 0 : index
    %1 = vector.load %arg2[%c0_1, %c0_2] : memref<864x128xbf16, #tpu.memory_space<vmem>>, vector<864x128xbf16>
    %cst = arith.constant dense<0.000000e+00> : vector<16x128xf32>
    %2 = tpu.matmul %0, %1, %cst {dimension_numbers = #tpu.dot_dimension_numbers<[1], [0], [0], [1], [0, 0, 1, 1], [], []>} : vector<16x864xbf16>, vector<864x128xbf16>, vector<16x128xf32> -> vector<16x128xf32>
    %c0_3 = arith.constant 0 : index
    %c0_4 = arith.constant 0 : index
    %3 = vector.load %arg3[%c0_3, %c0_4] : memref<1x128xf32, #tpu.memory_space<vmem>>, vector<1x128xf32>
    %4 = vector.broadcast %3 : vector<1x128xf32> to vector<16x128xf32>
    %5 = arith.addf %2, %4 : vector<16x128xf32>
    %cst_5 = arith.constant 0.000000e+00 : f32
    %6 = vector.broadcast %cst_5 : f32 to vector<16x128xf32>
    %7 = arith.maximumf %5, %6 : vector<16x128xf32>
    %c0_6 = arith.constant 0 : index
    %c0_7 = arith.constant 0 : index
    %8 = vector.load %arg4[%c0_6, %c0_7] : memref<16x1xf32, #tpu.memory_space<vmem>>, vector<16x1xf32>
    %9 = vector.broadcast %8 : vector<16x1xf32> to vector<16x128xf32>
    %10 = arith.mulf %7, %9 : vector<16x128xf32>
    %11 = arith.truncf %10 : vector<16x128xf32> to vector<16x128xbf16>
    %c0_8 = arith.constant 0 : index
    %c0_9 = arith.constant 0 : index
    %12 = vector.load %arg5[%c0_8, %c0_9] : memref<16x128xbf16, #tpu.memory_space<vmem>>, vector<16x128xbf16>
    tpu.vector_store %arg5[%c0_8, %c0_9], %11 {strides = array<i32>} : memref<16x128xbf16, #tpu.memory_space<vmem>>, vector<16x128xbf16>,
    return
  }
  func.func @transform_0(%arg0: i32) -> (i32, i32) {
    %c0_i32 = arith.constant 0 : i32
    %c0_i32_0 = arith.constant 0 : i32
    return %arg0, %c0_i32 : i32, i32
  }
  func.func @transform_1(%arg0: i32) -> (i32, i32) {
    %c0_i32 = arith.constant 0 : i32
    %c0_i32_0 = arith.constant 0 : i32
    %c0_i32_1 = arith.constant 0 : i32
    return %c0_i32, %c0_i32_0 : i32, i32
  }
  func.func @transform_2(%arg0: i32) -> (i32, i32) {
    %c0_i32 = arith.constant 0 : i32
    %c0_i32_0 = arith.constant 0 : i32
    %c0_i32_1 = arith.constant 0 : i32
    return %c0_i32, %c0_i32_0 : i32, i32
  }
  func.func @transform_3(%arg0: i32) -> (i32, i32) {
    %c0_i32 = arith.constant 0 : i32
    %c0_i32_0 = arith.constant 0 : i32
    return %arg0, %c0_i32 : i32, i32
  }
  func.func @transform_4(%arg0: i32) -> (i32, i32) {
    %c0_i32 = arith.constant 0 : i32
    %c0_i32_0 = arith.constant 0 : i32
    return %arg0, %c0_i32 : i32, i32
  }
}

module attributes {stable_mosaic.version = 11 : i64} {
  func.func @_matmul_kernel(%arg0: i32, %arg1: memref<16x32xbf16, #tpu.memory_space<vmem>>, %arg2: memref<32x256xbf16, #tpu.memory_space<vmem>>, %arg3: memref<1x256xf32, #tpu.memory_space<vmem>>, %arg4: memref<16x256xbf16, #tpu.memory_space<vmem>>) attributes {dimension_semantics = [#tpu.dimension_semantics<parallel>], iteration_bounds = array<i64: 1>, scalar_prefetch = 0 : i64, scratch_operands = 0 : i64, tpu.core_type = #tpu.core_type<tc>, window_params = [{transform_indices = @transform_0, window_bounds = array<i64: 16, 32>}, {pipeline_mode = #tpu.pipeline_mode<synchronous>, transform_indices = @transform_1, window_bounds = array<i64: 32, 256>}, {pipeline_mode = #tpu.pipeline_mode<synchronous>, transform_indices = @transform_2, window_bounds = array<i64: 1, 256>}, {transform_indices = @transform_3, window_bounds = array<i64: 16, 256>}]} {
    %c0 = arith.constant 0 : index
    %c0_0 = arith.constant 0 : index
    %0 = vector.load %arg1[%c0, %c0_0] : memref<16x32xbf16, #tpu.memory_space<vmem>>, vector<16x32xbf16>
    %c0_1 = arith.constant 0 : index
    %c0_2 = arith.constant 0 : index
    %1 = vector.load %arg2[%c0_1, %c0_2] : memref<32x256xbf16, #tpu.memory_space<vmem>>, vector<32x256xbf16>
    %cst = arith.constant dense<0.000000e+00> : vector<16x256xf32>
    %2 = tpu.matmul %0, %1, %cst {dimension_numbers = #tpu.dot_dimension_numbers<[1], [0], [0], [1], [0, 0, 1, 1], [], []>} : vector<16x32xbf16>, vector<32x256xbf16>, vector<16x256xf32> -> vector<16x256xf32>
    %c0_3 = arith.constant 0 : index
    %c0_4 = arith.constant 0 : index
    %3 = vector.load %arg3[%c0_3, %c0_4] : memref<1x256xf32, #tpu.memory_space<vmem>>, vector<1x256xf32>
    %4 = vector.broadcast %3 : vector<1x256xf32> to vector<16x256xf32>
    %5 = arith.addf %2, %4 : vector<16x256xf32>
    %cst_5 = arith.constant 0.000000e+00 : f32
    %6 = vector.broadcast %cst_5 : f32 to vector<16x256xf32>
    %7 = arith.maximumf %5, %6 : vector<16x256xf32>
    %8 = arith.truncf %7 : vector<16x256xf32> to vector<16x256xbf16>
    %c0_6 = arith.constant 0 : index
    %c0_7 = arith.constant 0 : index
    %9 = vector.load %arg4[%c0_6, %c0_7] : memref<16x256xbf16, #tpu.memory_space<vmem>>, vector<16x256xbf16>
    tpu.vector_store %arg4[%c0_6, %c0_7], %8 {strides = array<i32>} : memref<16x256xbf16, #tpu.memory_space<vmem>>, vector<16x256xbf16>,
    return
  }
  func.func @transform_0(%arg0: i32) -> (i32, i32) {
    %c0_i32 = arith.constant 0 : i32
    %c0_i32_0 = arith.constant 0 : i32
    return %arg0, %c0_i32 : i32, i32
  }
  func.func @transform_1(%arg0: i32) -> (i32, i32) {
    %c0_i32 = arith.constant 0 : i32
    %c0_i32_0 = arith.constant 0 : i32
    %c0_i32_1 = arith.constant 0 : i32
    return %c0_i32, %c0_i32_0 : i32, i32
  }
  func.func @transform_2(%arg0: i32) -> (i32, i32) {
    %c0_i32 = arith.constant 0 : i32
    %c0_i32_0 = arith.constant 0 : i32
    %c0_i32_1 = arith.constant 0 : i32
    return %c0_i32, %c0_i32_0 : i32, i32
  }
  func.func @transform_3(%arg0: i32) -> (i32, i32) {
    %c0_i32 = arith.constant 0 : i32
    %c0_i32_0 = arith.constant 0 : i32
    return %arg0, %c0_i32 : i32, i32
  }
}

module attributes {stable_mosaic.version = 11 : i64} {
  func.func @_matmul_kernel(%arg0: i32, %arg1: memref<128x432xbf16, #tpu.memory_space<vmem>>, %arg2: memref<432x128xbf16, #tpu.memory_space<vmem>>, %arg3: memref<1x128xf32, #tpu.memory_space<vmem>>, %arg4: memref<128x128xbf16, #tpu.memory_space<vmem>>) attributes {dimension_semantics = [#tpu.dimension_semantics<parallel>], iteration_bounds = array<i64: 1>, scalar_prefetch = 0 : i64, scratch_operands = 0 : i64, tpu.core_type = #tpu.core_type<tc>, window_params = [{transform_indices = @transform_0, window_bounds = array<i64: 128, 432>}, {pipeline_mode = #tpu.pipeline_mode<synchronous>, transform_indices = @transform_1, window_bounds = array<i64: 432, 128>}, {pipeline_mode = #tpu.pipeline_mode<synchronous>, transform_indices = @transform_2, window_bounds = array<i64: 1, 128>}, {transform_indices = @transform_3, window_bounds = array<i64: 128, 128>}]} {
    %c0 = arith.constant 0 : index
    %c0_0 = arith.constant 0 : index
    %0 = vector.load %arg1[%c0, %c0_0] : memref<128x432xbf16, #tpu.memory_space<vmem>>, vector<128x432xbf16>
    %c0_1 = arith.constant 0 : index
    %c0_2 = arith.constant 0 : index
    %1 = vector.load %arg2[%c0_1, %c0_2] : memref<432x128xbf16, #tpu.memory_space<vmem>>, vector<432x128xbf16>
    %cst = arith.constant dense<0.000000e+00> : vector<128x128xf32>
    %2 = tpu.matmul %0, %1, %cst {dimension_numbers = #tpu.dot_dimension_numbers<[1], [0], [0], [1], [0, 0, 1, 1], [], []>} : vector<128x432xbf16>, vector<432x128xbf16>, vector<128x128xf32> -> vector<128x128xf32>
    %c0_3 = arith.constant 0 : index
    %c0_4 = arith.constant 0 : index
    %3 = vector.load %arg3[%c0_3, %c0_4] : memref<1x128xf32, #tpu.memory_space<vmem>>, vector<1x128xf32>
    %4 = vector.broadcast %3 : vector<1x128xf32> to vector<128x128xf32>
    %5 = arith.addf %2, %4 : vector<128x128xf32>
    %cst_5 = arith.constant 0.000000e+00 : f32
    %6 = vector.broadcast %cst_5 : f32 to vector<128x128xf32>
    %7 = arith.maximumf %5, %6 : vector<128x128xf32>
    %8 = arith.truncf %7 : vector<128x128xf32> to vector<128x128xbf16>
    %c0_6 = arith.constant 0 : index
    %c0_7 = arith.constant 0 : index
    %9 = vector.load %arg4[%c0_6, %c0_7] : memref<128x128xbf16, #tpu.memory_space<vmem>>, vector<128x128xbf16>
    tpu.vector_store %arg4[%c0_6, %c0_7], %8 {strides = array<i32>} : memref<128x128xbf16, #tpu.memory_space<vmem>>, vector<128x128xbf16>,
    return
  }
  func.func @transform_0(%arg0: i32) -> (i32, i32) {
    %c0_i32 = arith.constant 0 : i32
    %c0_i32_0 = arith.constant 0 : i32
    return %arg0, %c0_i32 : i32, i32
  }
  func.func @transform_1(%arg0: i32) -> (i32, i32) {
    %c0_i32 = arith.constant 0 : i32
    %c0_i32_0 = arith.constant 0 : i32
    %c0_i32_1 = arith.constant 0 : i32
    return %c0_i32, %c0_i32_0 : i32, i32
  }
  func.func @transform_2(%arg0: i32) -> (i32, i32) {
    %c0_i32 = arith.constant 0 : i32
    %c0_i32_0 = arith.constant 0 : i32
    %c0_i32_1 = arith.constant 0 : i32
    return %c0_i32, %c0_i32_0 : i32, i32
  }
  func.func @transform_3(%arg0: i32) -> (i32, i32) {
    %c0_i32 = arith.constant 0 : i32
    %c0_i32_0 = arith.constant 0 : i32
    return %arg0, %c0_i32 : i32, i32
  }
}

module attributes {stable_mosaic.version = 11 : i64} {
  func.func @_matmul_kernel(%arg0: i32, %arg1: memref<128x1152xbf16, #tpu.memory_space<vmem>>, %arg2: memref<1152x128xbf16, #tpu.memory_space<vmem>>, %arg3: memref<1x128xf32, #tpu.memory_space<vmem>>, %arg4: memref<128x128xbf16, #tpu.memory_space<vmem>>) attributes {dimension_semantics = [#tpu.dimension_semantics<parallel>], iteration_bounds = array<i64: 1>, scalar_prefetch = 0 : i64, scratch_operands = 0 : i64, tpu.core_type = #tpu.core_type<tc>, window_params = [{transform_indices = @transform_0, window_bounds = array<i64: 128, 1152>}, {pipeline_mode = #tpu.pipeline_mode<synchronous>, transform_indices = @transform_1, window_bounds = array<i64: 1152, 128>}, {pipeline_mode = #tpu.pipeline_mode<synchronous>, transform_indices = @transform_2, window_bounds = array<i64: 1, 128>}, {transform_indices = @transform_3, window_bounds = array<i64: 128, 128>}]} {
    %c0 = arith.constant 0 : index
    %c0_0 = arith.constant 0 : index
    %0 = vector.load %arg1[%c0, %c0_0] : memref<128x1152xbf16, #tpu.memory_space<vmem>>, vector<128x1152xbf16>
    %c0_1 = arith.constant 0 : index
    %c0_2 = arith.constant 0 : index
    %1 = vector.load %arg2[%c0_1, %c0_2] : memref<1152x128xbf16, #tpu.memory_space<vmem>>, vector<1152x128xbf16>
    %cst = arith.constant dense<0.000000e+00> : vector<128x128xf32>
    %2 = tpu.matmul %0, %1, %cst {dimension_numbers = #tpu.dot_dimension_numbers<[1], [0], [0], [1], [0, 0, 1, 1], [], []>} : vector<128x1152xbf16>, vector<1152x128xbf16>, vector<128x128xf32> -> vector<128x128xf32>
    %c0_3 = arith.constant 0 : index
    %c0_4 = arith.constant 0 : index
    %3 = vector.load %arg3[%c0_3, %c0_4] : memref<1x128xf32, #tpu.memory_space<vmem>>, vector<1x128xf32>
    %4 = vector.broadcast %3 : vector<1x128xf32> to vector<128x128xf32>
    %5 = arith.addf %2, %4 : vector<128x128xf32>
    %cst_5 = arith.constant 0.000000e+00 : f32
    %6 = vector.broadcast %cst_5 : f32 to vector<128x128xf32>
    %7 = arith.maximumf %5, %6 : vector<128x128xf32>
    %8 = arith.truncf %7 : vector<128x128xf32> to vector<128x128xbf16>
    %c0_6 = arith.constant 0 : index
    %c0_7 = arith.constant 0 : index
    %9 = vector.load %arg4[%c0_6, %c0_7] : memref<128x128xbf16, #tpu.memory_space<vmem>>, vector<128x128xbf16>
    tpu.vector_store %arg4[%c0_6, %c0_7], %8 {strides = array<i32>} : memref<128x128xbf16, #tpu.memory_space<vmem>>, vector<128x128xbf16>,
    return
  }
  func.func @transform_0(%arg0: i32) -> (i32, i32) {
    %c0_i32 = arith.constant 0 : i32
    %c0_i32_0 = arith.constant 0 : i32
    return %arg0, %c0_i32 : i32, i32
  }
  func.func @transform_1(%arg0: i32) -> (i32, i32) {
    %c0_i32 = arith.constant 0 : i32
    %c0_i32_0 = arith.constant 0 : i32
    %c0_i32_1 = arith.constant 0 : i32
    return %c0_i32, %c0_i32_0 : i32, i32
  }
  func.func @transform_2(%arg0: i32) -> (i32, i32) {
    %c0_i32 = arith.constant 0 : i32
    %c0_i32_0 = arith.constant 0 : i32
    %c0_i32_1 = arith.constant 0 : i32
    return %c0_i32, %c0_i32_0 : i32, i32
  }
  func.func @transform_3(%arg0: i32) -> (i32, i32) {
    %c0_i32 = arith.constant 0 : i32
    %c0_i32_0 = arith.constant 0 : i32
    return %arg0, %c0_i32 : i32, i32
  }
}

module attributes {stable_mosaic.version = 11 : i64} {
  func.func @_matmul_kernel(%arg0: i32, %arg1: memref<128x64xbf16, #tpu.memory_space<vmem>>, %arg2: memref<64x128xbf16, #tpu.memory_space<vmem>>, %arg3: memref<1x128xf32, #tpu.memory_space<vmem>>, %arg4: memref<128x128xf32, #tpu.memory_space<vmem>>) attributes {dimension_semantics = [#tpu.dimension_semantics<parallel>], iteration_bounds = array<i64: 1>, scalar_prefetch = 0 : i64, scratch_operands = 0 : i64, tpu.core_type = #tpu.core_type<tc>, window_params = [{transform_indices = @transform_0, window_bounds = array<i64: 128, 64>}, {pipeline_mode = #tpu.pipeline_mode<synchronous>, transform_indices = @transform_1, window_bounds = array<i64: 64, 128>}, {pipeline_mode = #tpu.pipeline_mode<synchronous>, transform_indices = @transform_2, window_bounds = array<i64: 1, 128>}, {transform_indices = @transform_3, window_bounds = array<i64: 128, 128>}]} {
    %c0 = arith.constant 0 : index
    %c0_0 = arith.constant 0 : index
    %0 = vector.load %arg1[%c0, %c0_0] : memref<128x64xbf16, #tpu.memory_space<vmem>>, vector<128x64xbf16>
    %c0_1 = arith.constant 0 : index
    %c0_2 = arith.constant 0 : index
    %1 = vector.load %arg2[%c0_1, %c0_2] : memref<64x128xbf16, #tpu.memory_space<vmem>>, vector<64x128xbf16>
    %cst = arith.constant dense<0.000000e+00> : vector<128x128xf32>
    %2 = tpu.matmul %0, %1, %cst {dimension_numbers = #tpu.dot_dimension_numbers<[1], [0], [0], [1], [0, 0, 1, 1], [], []>} : vector<128x64xbf16>, vector<64x128xbf16>, vector<128x128xf32> -> vector<128x128xf32>
    %c0_3 = arith.constant 0 : index
    %c0_4 = arith.constant 0 : index
    %3 = vector.load %arg3[%c0_3, %c0_4] : memref<1x128xf32, #tpu.memory_space<vmem>>, vector<1x128xf32>
    %4 = vector.broadcast %3 : vector<1x128xf32> to vector<128x128xf32>
    %5 = arith.addf %2, %4 : vector<128x128xf32>
    %c0_5 = arith.constant 0 : index
    %c0_6 = arith.constant 0 : index
    %6 = vector.load %arg4[%c0_5, %c0_6] : memref<128x128xf32, #tpu.memory_space<vmem>>, vector<128x128xf32>
    tpu.vector_store %arg4[%c0_5, %c0_6], %5 {strides = array<i32>} : memref<128x128xf32, #tpu.memory_space<vmem>>, vector<128x128xf32>,
    return
  }
  func.func @transform_0(%arg0: i32) -> (i32, i32) {
    %c0_i32 = arith.constant 0 : i32
    %c0_i32_0 = arith.constant 0 : i32
    return %arg0, %c0_i32 : i32, i32
  }
  func.func @transform_1(%arg0: i32) -> (i32, i32) {
    %c0_i32 = arith.constant 0 : i32
    %c0_i32_0 = arith.constant 0 : i32
    %c0_i32_1 = arith.constant 0 : i32
    return %c0_i32, %c0_i32_0 : i32, i32
  }
  func.func @transform_2(%arg0: i32) -> (i32, i32) {
    %c0_i32 = arith.constant 0 : i32
    %c0_i32_0 = arith.constant 0 : i32
    %c0_i32_1 = arith.constant 0 : i32
    return %c0_i32, %c0_i32_0 : i32, i32
  }
  func.func @transform_3(%arg0: i32) -> (i32, i32) {
    %c0_i32 = arith.constant 0 : i32
    %c0_i32_0 = arith.constant 0 : i32
    return %arg0, %c0_i32 : i32, i32
  }
}

</mosaic_0001>

<bundles_post_ra>
// kernel: forward.14
= control target key start
LH: loop header
LB: loop body
LE: loop exit
PB: predicated region body
PF: predicated region fallthrough
CT: control target
= control target key end

     0   :  { %s2556_s15 = smov 0   ;;  %s2902_s0 = inlined_call_operand.vmem [shape: bf16[640,432], index: 0, kind: input, shape index: {}]   ;;  %s2903_s1 = inlined_call_operand.vmem [shape: bf16[432,128], index: 1, kind: input, shape index: {}]   ;;  %s2904_s2 = inlined_call_operand.vmem [shape: f32[1,128], index: 2, kind: input, shape index: {}]   ;;  %s2905_s3 = inlined_call_operand.vmem [shape: f32[640,1], index: 3, kind: input, shape index: {}]   ;;  %s2906_s4 = inlined_call_operand.vmem [shape: bf16[640,128], index: 4, kind: output, shape index: {}]  }
   0x1 LB: > { %s1945_s16 = sadd.s32 4294967295, %s2528_s15   ;;  %p1949_p0 = scmp.ge.s32.totalorder %s2528_s15, 1  ;;  %s2528_s15 = sphi %s2556_s15, %s14_s15  }
   0x2   : > { %p175_p1 = scmp.lt.s32.totalorder %s2528_s15, 3 }
   0x4   : > { %p176_p2 = pnand %p1949_p0, %p175_p1 }
   0x5   : > { %v2375_v0 = vld [vmem:[%s2903_s1] sm:$0xff] (!%p176_p2)   ;;  %v2530_v1 = vmov (!%p176_p2), 0   ;;  %v2376_v2 = vld [vmem:[%s2903_s1 + $0x8] sm:$0xff] (!%p176_p2)   ;;  %v2377_v4 = vld [vmem:[%s2903_s1 + $0x10] sm:$0xff] (!%p176_p2)   ;;  %s207_s29 = smul.u32 (!%p176_p2), 40, %s1945_s16  ;;  %vm910_vm0 = vcmask (!%p176_p2), 392192  }
   0x6   : > { %179 = sbr.rel (%p176_p2) target bundleno = 447 (0x1bf), region = 36  ;;  %971 = vmatprep.subr.bf16.mxu1 (!%p176_p2), %v2530_v1  ;;  %1164 = vmatprep.subr.bf16.mxu0 (!%p176_p2), %v2530_v1  ;;  %v2380_v3 = vld [vmem:[%s2903_s1 + $0x80] sm:$0xff] (!%p176_p2)   ;;  %v2382_v5 = vld [vmem:[%s2903_s1 + $0x88] sm:$0xff] (!%p176_p2)   ;;  %v2378_v6 = vld [vmem:[%s2903_s1 + $0x18] sm:$0xff] (!%p176_p2)  }
   0x7   : > { %972 = vmatpush1.bf16.msra.mxu1 (!%p176_p2), %v2375_v0  ;;  %2373 = vset.pattern.permute.xlu0 (!%p176_p2), %v2530_v1  ;;  %v2384_v7 = vld [vmem:[%s2903_s1 + $0x90] sm:$0xff] (!%p176_p2)   ;;  %v2379_v8 = vld [vmem:[%s2903_s1 + $0x20] sm:$0xff] (!%p176_p2)   ;;  %p208_p3 = scmp.lt.s32.totalorder (!%p176_p2), %s207_s29, 79  ;;  %v2386_v9 = vld [vmem:[%s2903_s1 + $0x98] sm:$0xff] (!%p176_p2)  }
   0x8   : > { %973 = vmatprep.subr.bf16.mxu1 (!%p176_p2), %v2530_v1  ;;  %2374 = vset.pattern.permute.xlu1 (!%p176_p2), %v2530_v1  ;;  %v2381_v10 = vld [vmem:[%s2903_s1 + $0x28] sm:$0xff] (!%p176_p2)   ;;  %v2388_v11 = vld [vmem:[%s2903_s1 + $0xa0] sm:$0xff] (!%p176_p2)   ;;  %v2383_v12 = vld [vmem:[%s2903_s1 + $0x30] sm:$0xff] (!%p176_p2)  }
   0x9   : > { %1165 = vmatpush1.bf16.msra.mxu0 (!%p176_p2), %v2380_v3  ;;  %v2390_v13 = vld [vmem:[%s2903_s1 + $0xa8] sm:$0xff] (!%p176_p2)   ;;  %v2385_v14 = vld [vmem:[%s2903_s1 + $0x38] sm:$0xff] (!%p176_p2)   ;;  %v2392_v15 = vld [vmem:[%s2903_s1 + $0xb0] sm:$0xff] (!%p176_p2)  }
   0xa   : > { %1166 = vmatprep.subr.bf16.mxu0 (!%p176_p2), %v2530_v1  ;;  %v2387_v18 = vld [vmem:[%s2903_s1 + $0x40] sm:$0xff] (!%p176_p2)   ;;  %v2394_v19 = vld [vmem:[%s2903_s1 + $0xb8] sm:$0xff] (!%p176_p2)   ;;  %v2389_v20 = vld [vmem:[%s2903_s1 + $0x48] sm:$0xff] (!%p176_p2)  }
   0xb   : > { %974 = vmatpush1.bf16.msra.mxu1 (!%p176_p2), %v2376_v2  ;;  %v2396_v21 = vld [vmem:[%s2903_s1 + $0xc0] sm:$0xff] (!%p176_p2)   ;;  %v2391_v22 = vld [vmem:[%s2903_s1 + $0x50] sm:$0xff] (!%p176_p2)   ;;  %v2398_v23 = vld [vmem:[%s2903_s1 + $0xc8] sm:$0xff] (!%p176_p2)  }
   0xc   : > { %975 = vmatprep.subr.bf16.mxu1 (!%p176_p2), %v2530_v1  ;;  %v2393_v24 = vld [vmem:[%s2903_s1 + $0x58] sm:$0xff] (!%p176_p2)   ;;  %v2400_v25 = vld [vmem:[%s2903_s1 + $0xd0] sm:$0xff] (!%p176_p2)   ;;  %v2395_v26 = vld [vmem:[%s2903_s1 + $0x60] sm:$0xff] (!%p176_p2)  }
   0xd   : > { %1167 = vmatpush1.bf16.msra.mxu0 %v2382_v5  ;;  %s2908_s29 = smov (!%p208_p3, %s207_s29), 79  ;;  %v2397_v29 = vld [vmem:[%s2903_s1 + $0x68] sm:$0xff]   ;;  %v2399_v30 = vld [vmem:[%s2903_s1 + $0x70] sm:$0xff]   ;;  %v2401_v33 = vld [vmem:[%s2903_s1 + $0x78] sm:$0xff]  }
   0xe   : > { %1168 = vmatprep.subr.bf16.mxu0 %v2530_v1  ;;  %s2124_s17 = sshll.u32 %s2908_s29, 4  ;;  %s1952_s24 = sshll.u32 %s2908_s29, 3 }
   0xf   : > { %976 = vmatpush1.bf16.msra.mxu1 %v2377_v4  ;;  %s2624_s22 = scalar_lea.vmem %s2902_s0, %s2124_s17  ;;  %s2690_s30 = scalar_lea.vmem %s2905_s3, %s1952_s24 }
  0x10   : > { %977 = vmatprep.subr.bf16.mxu1 %v2530_v1  ;;  %v2404_v16 = vld [vmem:[%s2624_s22 + $0xc] ss:$16 sps:$4 sm:$0xff]   ;;  %v2407_v17 = vld [vmem:[%s2624_s22 + $0x4] ss:$16 sps:$4 sm:$0xff]   ;;  %v2402_v27 = vld [vmem:[%s2624_s22 + $0x8] ss:$16 sps:$4 sm:$0xff]  }
  0x11   : > { %1169 = vmatpush1.bf16.msra.mxu0 %v2384_v7  ;;  %2062 = vmatprep.mubr.msk.bf16.mxu0 %vm910_vm0, %v2404_v16  ;;  %v2408_v28 = vld [vmem:[%s2624_s22 + $0x2c] ss:$16 sps:$4 sm:$0xff]   ;;  %v2412_v31 = vld [vmem:[%s2624_s22 + $0x28] ss:$16 sps:$4 sm:$0xff]   ;;  %v1397_v34 = vld [vmem:[%s2690_s30] sm:$0xff] }
  0x12   : > { %1170 = vmatprep.subr.bf16.mxu0 %v2530_v1  ;;  %1003 = vmatprep.mubr.bf16.mxu1 %v2407_v17  ;;  %v2414_v32 = vld [vmem:[%s2624_s22 + $0x4c] ss:$16 sps:$4 sm:$0xff]   ;;  %v1399_v35 = vld [vmem:[%s2690_s30 + $0x10] sm:$0xff]  ;;  %v2418_v39 = vld [vmem:[%s2624_s22 + $0x48] ss:$16 sps:$4 sm:$0xff]  }
  0x13   : > { %978 = vmatpush1.bf16.msra.mxu1 %v2378_v6  ;;  %v2405_v36 = vld [vmem:[%s2624_s22] ss:$16 sps:$4 sm:$0xff]   ;;  %1439 = vperm.xlu0 %2373, %v1397_v34   ;;  %v1398_v37 = vld [vmem:[%s2690_s30 + $0x8] sm:$0xff]  ;;  %v2410_v38 = vld [vmem:[%s2624_s22 + $0x24] ss:$16 sps:$4 sm:$0xff]  }
  0x14   : > { %979 = vmatprep.subr.bf16.mxu1 %v2530_v1  ;;  %1449 = vperm.xlu1 %2374, %v1399_v35   ;;  %v1400_v40 = vld [vmem:[%s2690_s30 + $0x18] sm:$0xff]  ;;  %v1402_v42 = vld [vmem:[%s2690_s30 + $0x28] sm:$0xff]  ;;  %v1401_v43 = vld [vmem:[%s2690_s30 + $0x20] sm:$0xff] }
  0x15   : > { %1171 = vmatpush1.bf16.msra.mxu0 %v2386_v9  ;;  %v2420_v41 = vld [vmem:[%s2624_s22 + $0x6c] ss:$16 sps:$4 sm:$0xff]   ;;  %v2413_v44 = vld [vmem:[%s2624_s22 + $0x20] ss:$16 sps:$4 sm:$0xff]   ;;  %v2416_v47 = vld [vmem:[%s2624_s22 + $0x44] ss:$16 sps:$4 sm:$0xff]  }
  0x16   : > { %1172 = vmatprep.subr.bf16.mxu0 %v2530_v1  ;;  %v1404_v45 = vld [vmem:[%s2690_s30 + $0x38] sm:$0xff]  ;;  %v1403_v46 = vld [vmem:[%s2690_s30 + $0x30] sm:$0xff]  ;;  %v1406_v50 = vld [vmem:[%s2690_s30 + $0x48] sm:$0xff] }
  0x17   : > { %980 = vmatpush1.bf16.msra.mxu1 %v2379_v8  ;;  %1444 = vperm.xlu0 %2373, %v1398_v37   ;;  %v2424_v48 = vld [vmem:[%s2624_s22 + $0x68] ss:$16 sps:$4 sm:$0xff]   ;;  %v2426_v49 = vld [vmem:[%s2624_s22 + $0x8c] ss:$16 sps:$4 sm:$0xff]   ;;  %v1405_v51 = vld [vmem:[%s2690_s30 + $0x40] sm:$0xff] }
  0x18   : > { %981 = vmatprep.subr.bf16.mxu1 %v2530_v1  ;;  %1454 = vperm.xlu1 %2374, %v1400_v40   ;;  %v2419_v52 = vld [vmem:[%s2624_s22 + $0x40] ss:$16 sps:$4 sm:$0xff]   ;;  %v1408_v53 = vld [vmem:[%s2690_s30 + $0x58] sm:$0xff]  ;;  %v2422_v55 = vld [vmem:[%s2624_s22 + $0x64] ss:$16 sps:$4 sm:$0xff]  }
  0x19   : > { %1173 = vmatpush1.bf16.msra.mxu0 %v2388_v11  ;;  %v1407_v54 = vld [vmem:[%s2690_s30 + $0x50] sm:$0xff]  ;;  %v2430_v56 = vld [vmem:[%s2624_s22 + $0x88] ss:$16 sps:$4 sm:$0xff]   ;;  %v2432_v57 = vld [vmem:[%s2624_s22 + $0xac] ss:$16 sps:$4 sm:$0xff]  }
  0x1a   : > { %1174 = vmatprep.subr.bf16.mxu0 %v2530_v1  ;;  %v1410_v58 = vld [vmem:[%s2690_s30 + $0x68] sm:$0xff]  ;;  %v1409_v59 = vld [vmem:[%s2690_s30 + $0x60] sm:$0xff]  ;;  %v1412_v61 = vld [vmem:[%s2690_s30 + $0x78] sm:$0xff] }
  0x1b   : > { %982 = vmatpush1.bf16.msra.mxu1 %v2381_v10  ;;  %1459 = vperm.xlu0 %2373, %v1401_v43   ;;  %v2425_v60 = vld [vmem:[%s2624_s22 + $0x60] ss:$16 sps:$4 sm:$0xff]   ;;  %v2428_v63 = vld [vmem:[%s2624_s22 + $0x84] ss:$16 sps:$4 sm:$0xff]   ;;  %v2436_v0 = vld [vmem:[%s2624_s22 + $0xa8] ss:$16 sps:$4 sm:$0xff]  }
  0x1c   : > { %983 = vmatprep.subr.bf16.mxu1 %v2530_v1  ;;  %1464 = vperm.xlu1 %2374, %v1402_v42   ;;  %v1411_v62 = vld [vmem:[%s2690_s30 + $0x70] sm:$0xff]  ;;  %v1414_v2 = vld [vmem:[%s2690_s30 + $0x88] sm:$0xff]  ;;  %v1413_v3 = vld [vmem:[%s2690_s30 + $0x80] sm:$0xff] }
  0x1d   : > { %1175 = vmatpush1.bf16.msra.mxu0 %v2390_v13  ;;  %v2431_v4 = vld [vmem:[%s2624_s22 + $0x80] ss:$16 sps:$4 sm:$0xff]   ;;  %v1416_v5 = vld [vmem:[%s2690_s30 + $0x98] sm:$0xff]  ;;  %v2434_v7 = vld [vmem:[%s2624_s22 + $0xa4] ss:$16 sps:$4 sm:$0xff]  }
  0x1e   : > { %1176 = vmatprep.subr.bf16.mxu0 %v2530_v1  ;;  %v1415_v6 = vld [vmem:[%s2690_s30 + $0x90] sm:$0xff]  ;;  %v2442_v8 = vld [vmem:[%s2624_s22 + $0xc8] ss:$16 sps:$4 sm:$0xff]   ;;  %v2444_v9 = vld [vmem:[%s2624_s22 + $0xec] ss:$16 sps:$4 sm:$0xff]  }
  0x1f   : > { %984 = vmatpush1.bf16.msra.mxu1 %v2383_v12  ;;  %1469 = vperm.xlu0 %2373, %v1403_v46   ;;  %v1418_v10 = vld [vmem:[%s2690_s30 + $0xa8] sm:$0xff]  ;;  %v1417_v11 = vld [vmem:[%s2690_s30 + $0xa0] sm:$0xff]  ;;  %v1420_v13 = vld [vmem:[%s2690_s30 + $0xb8] sm:$0xff] }
  0x20   : > { %985 = vmatprep.subr.bf16.mxu1 %v2530_v1  ;;  %1474 = vperm.xlu1 %2374, %v1404_v45   ;;  %v2437_v12 = vld [vmem:[%s2624_s22 + $0xa0] ss:$16 sps:$4 sm:$0xff]   ;;  %v2448_v16 = vld [vmem:[%s2624_s22 + $0xe8] ss:$16 sps:$4 sm:$0xff]   ;;  %v2450_v17 = vld [vmem:[%s2624_s22 + $0x10c] ss:$16 sps:$4 sm:$0xff]  }
  0x21   : > { %1177 = vmatpush1.bf16.msra.mxu0 %v2392_v15  ;;  %v2440_v15 = vld [vmem:[%s2624_s22 + $0xc4] ss:$16 sps:$4 sm:$0xff]   ;;  %v1430_v34 = vld [vmem:[%s2690_s30 + $0x108] sm:$0xff]  ;;  %v1432_v37 = vld [vmem:[%s2690_s30 + $0x118] sm:$0xff] }
  0x22   : > { %1178 = vmatprep.subr.bf16.mxu0 %v2530_v1  ;;  %v1429_v35 = vld [vmem:[%s2690_s30 + $0x100] sm:$0xff]  ;;  %v2466_v40 = vld [vmem:[%s2624_s22 + $0x148] ss:$16 sps:$4 sm:$0xff]   ;;  %v1435_v46 = vld [vmem:[%s2690_s30 + $0x130] sm:$0xff] }
  0x23   : > { %986 = vmatpush1.bf16.msra.mxu1 %v2385_v14  ;;  %1479 = vperm.xlu0 %2373, %v1405_v51   ;;  %v1419_v14 = vld [vmem:[%s2690_s30 + $0xb0] sm:$0xff]  ;;  %v1434_v42 = vld [vmem:[%s2690_s30 + $0x128] sm:$0xff]  ;;  %v1433_v43 = vld [vmem:[%s2690_s30 + $0x120] sm:$0xff] }
  0x24   : > { %987 = vmatprep.subr.bf16.mxu1 %v2530_v1  ;;  %1484 = vperm.xlu1 %2374, %v1406_v50   ;;  %v1436_v45 = vld [vmem:[%s2690_s30 + $0x138] sm:$0xff]  ;;  %v2467_v50 = vld [vmem:[%s2624_s22 + $0x140] ss:$16 sps:$4 sm:$0xff]   ;;  %v2470_v51 = vld [vmem:[%s2624_s22 + $0x164] ss:$16 sps:$4 sm:$0xff]  }
  0x25   : > { %1179 = vmatpush1.bf16.msra.mxu0 %v2394_v19  ;;  %v1421_v19 = vld [vmem:[%s2690_s30 + $0xc0] sm:$0xff] }
  0x26   : > { %1180 = vmatprep.subr.bf16.mxu0 %v2530_v1 }
  0x27   : > { %988 = vmatpush1.bf16.msra.mxu1 %v2387_v18  ;;  %1489 = vperm.xlu0 %2373, %v1407_v54   ;;  %v1422_v18 = vld [vmem:[%s2690_s30 + $0xc8] sm:$0xff]  ;;  %v2473_v54 = vld [vmem:[%s2624_s22 + $0x160] ss:$16 sps:$4 sm:$0xff]  }
  0x28   : > { %989 = vmatprep.subr.bf16.mxu1 %v2530_v1  ;;  %1494 = vperm.xlu1 %2374, %v1408_v53   ;;  %v2480_v53 = vld [vmem:[%s2624_s22 + $0x1ac] ss:$16 sps:$4 sm:$0xff]  }
  0x29   : > { %1181 = vmatpush1.bf16.msra.mxu0 %v2396_v21  ;;  %v1424_v21 = vld [vmem:[%s2690_s30 + $0xd8] sm:$0xff] }
  0x2a   : > { %1182 = vmatprep.subr.bf16.mxu0 %v2530_v1 }
  0x2b   : > { %990 = vmatpush1.bf16.msra.mxu1 %v2389_v20  ;;  %1499 = vperm.xlu0 %2373, %v1409_v59   ;;  %v2443_v20 = vld [vmem:[%s2624_s22 + $0xc0] ss:$16 sps:$4 sm:$0xff]   ;;  %v2482_v59 = vld [vmem:[%s2624_s22 + $0x1a4] ss:$16 sps:$4 sm:$0xff]  }
  0x2c   : > { %991 = vmatprep.subr.bf16.mxu1 %v2530_v1  ;;  %1504 = vperm.xlu1 %2374, %v1410_v58   ;;  %v2479_v58 = vld [vmem:[%s2624_s22 + $0x180] ss:$16 sps:$4 sm:$0xff]  }
  0x2d   : > { %1183 = vmatpush1.bf16.msra.mxu0 %v2398_v23  ;;  %v2446_v23 = vld [vmem:[%s2624_s22 + $0xe4] ss:$16 sps:$4 sm:$0xff]  }
  0x2e   : > { %1184 = vmatprep.subr.bf16.mxu0 %v2530_v1 }
  0x2f   : > { %992 = vmatpush1.bf16.msra.mxu1 %v2391_v22  ;;  %1509 = vperm.xlu0 %2373, %v1411_v62   ;;  %v1423_v22 = vld [vmem:[%s2690_s30 + $0xd0] sm:$0xff] }
  0x30   : > { %993 = vmatprep.subr.bf16.mxu1 %v2530_v1  ;;  %1514 = vperm.xlu1 %2374, %v1412_v61   ;;  %v2492_v61 = vld [vmem:[%s2624_s22 + $0x1ec] ss:$16 sps:$4 sm:$0xff]   ;;  %v2485_v62 = vld [vmem:[%s2624_s22 + $0x1a0] ss:$16 sps:$4 sm:$0xff]  }
  0x31   : > { %1185 = vmatpush1.bf16.msra.mxu0 %v2400_v25  ;;  %v2456_v25 = vld [vmem:[%s2624_s22 + $0x12c] ss:$16 sps:$4 sm:$0xff]  }
  0x33   : > { %994 = vmatpush1.bf16.msra.mxu1 %v2393_v24  ;;  %1519 = vperm.xlu0 %2373, %v1413_v3   ;;  %v2454_v24 = vld [vmem:[%s2624_s22 + $0x108] ss:$16 sps:$4 sm:$0xff]   ;;  %v2494_v3 = vld [vmem:[%s2624_s22 + $0x1e4] ss:$16 sps:$4 sm:$0xff]  }
  0x34   : > { %995 = vmatprep.subr.bf16.mxu1 %v2530_v1  ;;  %1197 = vmatmul.mubr.bf16.vlgmr.msra.gmra.mrb[0].mxu0 %v2402_v27  ;;  %v1425_v27 = vld [vmem:[%s2690_s30 + $0xe0] sm:$0xff] }
  0x35   : > { %2063 = vmatprep.mubr.msk.bf16.mxu0 %vm910_vm0, %v2408_v28  ;;  %1524 = vperm.xlu1 %2374, %v1414_v2   ;;  %v2449_v28 = vld [vmem:[%s2624_s22 + $0xe0] ss:$16 sps:$4 sm:$0xff]  }
  0x36   : > { %v2491_v2 = vld [vmem:[%s2624_s22 + $0x1c0] ss:$16 sps:$4 sm:$0xff]  }
  0x37   : > { %996 = vmatpush1.bf16.msra.mxu1 %v2395_v26  ;;  %1529 = vperm.xlu0 %2373, %v1415_v6   ;;  %v1426_v26 = vld [vmem:[%s2690_s30 + $0xe8] sm:$0xff]  ;;  %v2497_v6 = vld [vmem:[%s2624_s22 + $0x1e0] ss:$16 sps:$4 sm:$0xff]  }
  0x38   : > { %997 = vmatprep.subr.bf16.mxu1 %v2530_v1 }
  0x39   : > { %1534 = vperm.xlu1 %2374, %v1416_v5   ;;  %v2504_v5 = vld [vmem:[%s2624_s22 + $0x22c] ss:$16 sps:$4 sm:$0xff]  }
  0x3b   : > { %998 = vmatpush1.bf16.msra.mxu1 %v2397_v29  ;;  %1539 = vperm.xlu0 %2373, %v1417_v11   ;;  %v1428_v29 = vld [vmem:[%s2690_s30 + $0xf8] sm:$0xff]  ;;  %v2506_v11 = vld [vmem:[%s2624_s22 + $0x224] ss:$16 sps:$4 sm:$0xff]  }
  0x3c   : > { %999 = vmatprep.subr.bf16.mxu1 %v2530_v1  ;;  %1205 = vmatmul.mubr.bf16.gmra.mrb[4].mxu0 %v2412_v31  ;;  %v2452_v31 = vld [vmem:[%s2624_s22 + $0x104] ss:$16 sps:$4 sm:$0xff]  }
  0x3d   : > { %2064 = vmatprep.mubr.msk.bf16.mxu0 %vm910_vm0, %v2414_v32  ;;  %1544 = vperm.xlu1 %2374, %v1418_v10   ;;  %v2460_v32 = vld [vmem:[%s2624_s22 + $0x128] ss:$16 sps:$4 sm:$0xff]   ;;  %v2503_v10 = vld [vmem:[%s2624_s22 + $0x200] ss:$16 sps:$4 sm:$0xff]  }
  0x3f   : > { %1000 = vmatpush1.bf16.msra.mxu1 %v2399_v30  ;;  %1549 = vperm.xlu0 %2373, %v1419_v14   ;;  %v1427_v30 = vld [vmem:[%s2690_s30 + $0xf0] sm:$0xff] }
  0x40   : > { %1001 = vmatprep.subr.bf16.mxu1 %v2530_v1  ;;  %v2438_v1 = vld [vmem:[%s2624_s22 + $0xcc] ss:$16 sps:$4 sm:$0xff]   ;;  %v2509_v14 = vld [vmem:[%s2624_s22 + $0x220] ss:$16 sps:$4 sm:$0xff]  }
  0x41   : > { %1554 = vperm.xlu1 %2374, %v1420_v13   ;;  %v2516_v13 = vld [vmem:[%s2624_s22 + $0x26c] ss:$16 sps:$4 sm:$0xff]  }
  0x43   : > { %1002 = vmatpush1.bf16.msra.mxu1 %v2401_v33  ;;  %1559 = vperm.xlu0 %2373, %v1421_v19   ;;  %v2462_v33 = vld [vmem:[%s2624_s22 + $0x14c] ss:$16 sps:$4 sm:$0xff]   ;;  %v2521_v19 = vld [vmem:[%s2624_s22 + $0x260] ss:$16 sps:$4 sm:$0xff]  }
  0x44   : > { %1213 = vmatmul.mubr.bf16.gmra.mrb[8].mxu0 %v2418_v39  ;;  %v2458_v39 = vld [vmem:[%s2624_s22 + $0x124] ss:$16 sps:$4 sm:$0xff]  }
  0x45   : > { %2065 = vmatprep.mubr.msk.bf16.mxu0 %vm910_vm0, %v2420_v41  ;;  %1564 = vperm.xlu1 %2374, %v1422_v18   ;;  %v2468_v41 = vld [vmem:[%s2624_s22 + $0x16c] ss:$16 sps:$4 sm:$0xff]   ;;  %v2518_v18 = vld [vmem:[%s2624_s22 + $0x264] ss:$16 sps:$4 sm:$0xff]  }
  0x46   : > { %1004 = vmatmul.mubr.bf16.vlgmr.msra.gmra.mrb[0].mxu1 %v2405_v36  ;;  %v2455_v36 = vld [vmem:[%s2624_s22 + $0x100] ss:$16 sps:$4 sm:$0xff]  }
  0x47   : > { %1011 = vmatprep.mubr.bf16.mxu1 %v2410_v38  ;;  %1569 = vperm.xlu0 %2373, %v1423_v22   ;;  %v1431_v38 = vld [vmem:[%s2690_s30 + $0x110] sm:$0xff] }
  0x49   : > { %1574 = vperm.xlu1 %2374, %v1424_v21  }
  0x4b   : > { %1579 = vperm.xlu0 %2373, %v1425_v27  }
  0x4c   : > { %1221 = vmatmul.mubr.bf16.gmra.mrb[12].mxu0 %v2424_v48  ;;  %v2472_v48 = vld [vmem:[%s2624_s22 + $0x168] ss:$16 sps:$4 sm:$0xff]  }
  0x4d   : > { %2066 = vmatprep.mubr.msk.bf16.mxu0 %vm910_vm0, %v2426_v49  ;;  %1584 = vperm.xlu1 %2374, %v1426_v26   ;;  %v2474_v49 = vld [vmem:[%s2624_s22 + $0x18c] ss:$16 sps:$4 sm:$0xff]  }
  0x4e   : > { %1012 = vmatmul.mubr.bf16.gmra.mrb[4].mxu1 %v2413_v44  ;;  %v2461_v44 = vld [vmem:[%s2624_s22 + $0x120] ss:$16 sps:$4 sm:$0xff]  }
  0x4f   : > { %1019 = vmatprep.mubr.bf16.mxu1 %v2416_v47  ;;  %1589 = vperm.xlu0 %2373, %v1427_v30   ;;  %v2464_v47 = vld [vmem:[%s2624_s22 + $0x144] ss:$16 sps:$4 sm:$0xff]  }
  0x51   : > { %1594 = vperm.xlu1 %2374, %v1428_v29  }
  0x53   : > { %1599 = vperm.xlu0 %2373, %v1429_v35  }
  0x54   : > { %1229 = vmatmul.mubr.bf16.gmra.mrb[16].mxu0 %v2430_v56  ;;  %v2484_v56 = vld [vmem:[%s2624_s22 + $0x1a8] ss:$16 sps:$4 sm:$0xff]  }
  0x55   : > { %2067 = vmatprep.mubr.msk.bf16.mxu0 %vm910_vm0, %v2432_v57  ;;  %1604 = vperm.xlu1 %2374, %v1430_v34   ;;  %v2486_v57 = vld [vmem:[%s2624_s22 + $0x1cc] ss:$16 sps:$4 sm:$0xff]  }
  0x56   : > { %1020 = vmatmul.mubr.bf16.gmra.mrb[8].mxu1 %v2419_v52  ;;  %v2478_v52 = vld [vmem:[%s2624_s22 + $0x188] ss:$16 sps:$4 sm:$0xff]  }
  0x57   : > { %1027 = vmatprep.mubr.bf16.mxu1 %v2422_v55  ;;  %1609 = vperm.xlu0 %2373, %v1431_v38   ;;  %v2476_v55 = vld [vmem:[%s2624_s22 + $0x184] ss:$16 sps:$4 sm:$0xff]  }
  0x59   : > { %1614 = vperm.xlu1 %2374, %v1432_v37  }
  0x5b   : > { %1619 = vperm.xlu0 %2373, %v1433_v43  }
  0x5c   : > { %1237 = vmatmul.mubr.bf16.gmra.mrb[20].mxu0 %v2436_v0  ;;  %v2496_v0 = vld [vmem:[%s2624_s22 + $0x1e8] ss:$16 sps:$4 sm:$0xff]  }
  0x5d   : > { %2068 = vmatprep.mubr.msk.bf16.mxu0 %vm910_vm0, %v2438_v1  ;;  %1624 = vperm.xlu1 %2374, %v1434_v42   ;;  %v2498_v1 = vld [vmem:[%s2624_s22 + $0x20c] ss:$16 sps:$4 sm:$0xff]  }
  0x5e   : > { %1028 = vmatmul.mubr.bf16.gmra.mrb[12].mxu1 %v2425_v60  ;;  %v2490_v60 = vld [vmem:[%s2624_s22 + $0x1c8] ss:$16 sps:$4 sm:$0xff]  }
  0x5f   : > { %1035 = vmatprep.mubr.bf16.mxu1 %v2428_v63  ;;  %1629 = vperm.xlu0 %2373, %v1435_v46   ;;  %v2488_v63 = vld [vmem:[%s2624_s22 + $0x1c4] ss:$16 sps:$4 sm:$0xff]  }
  0x61   : > { %1634 = vperm.xlu1 %2374, %v1436_v45  }
  0x64   : > { %1245 = vmatmul.mubr.bf16.gmra.mrb[24].mxu0 %v2442_v8  ;;  %v2508_v8 = vld [vmem:[%s2624_s22 + $0x228] ss:$16 sps:$4 sm:$0xff]  }
  0x65   : > { %2069 = vmatprep.mubr.msk.bf16.mxu0 %vm910_vm0, %v2444_v9  ;;  %v2510_v9 = vld [vmem:[%s2624_s22 + $0x24c] ss:$16 sps:$4 sm:$0xff]  }
  0x66   : > { %1036 = vmatmul.mubr.bf16.gmra.mrb[16].mxu1 %v2431_v4  ;;  %v2502_v4 = vld [vmem:[%s2624_s22 + $0x208] ss:$16 sps:$4 sm:$0xff]  }
  0x67   : > { %1043 = vmatprep.mubr.bf16.mxu1 %v2434_v7  ;;  %v2500_v7 = vld [vmem:[%s2624_s22 + $0x204] ss:$16 sps:$4 sm:$0xff]  }
  0x6c   : > { %1253 = vmatmul.mubr.bf16.gmra.mrb[28].mxu0 %v2448_v16  ;;  %v2520_v16 = vld [vmem:[%s2624_s22 + $0x268] ss:$16 sps:$4 sm:$0xff]  }
  0x6d   : > { %2070 = vmatprep.mubr.msk.bf16.mxu0 %vm910_vm0, %v2450_v17  ;;  %v2515_v17 = vld [vmem:[%s2624_s22 + $0x240] ss:$16 sps:$4 sm:$0xff]  }
  0x6e   : > { %1044 = vmatmul.mubr.bf16.gmra.mrb[20].mxu1 %v2437_v12  ;;  %v2514_v12 = vld [vmem:[%s2624_s22 + $0x248] ss:$16 sps:$4 sm:$0xff]  }
  0x6f   : > { %1051 = vmatprep.mubr.bf16.mxu1 %v2440_v15  ;;  %v2512_v15 = vld [vmem:[%s2624_s22 + $0x244] ss:$16 sps:$4 sm:$0xff]   ;;  %s1953_s22 = sshll.u32 %s2908_s29, 2 }
  0x70   : > { %s2840_s11 = scalar_lea.vmem %s2906_s4, %s1953_s22 }
  0x74   : > { %1261 = vmatmul.mubr.bf16.gmra.mrb[32].mxu0 %v2454_v24 }
  0x75   : > { %2071 = vmatprep.mubr.msk.bf16.mxu0 %vm910_vm0, %v2456_v25 }
  0x76   : > { %1052 = vmatmul.mubr.bf16.gmra.mrb[24].mxu1 %v2443_v20 }
  0x77   : > { %1059 = vmatprep.mubr.bf16.mxu1 %v2446_v23 }
  0x7c   : > { %1269 = vmatmul.mubr.bf16.gmra.mrb[36].mxu0 %v2460_v32 }
  0x7d   : > { %2072 = vmatprep.mubr.msk.bf16.mxu0 %vm910_vm0, %v2462_v33 }
  0x7e   : > { %1060 = vmatmul.mubr.bf16.gmra.mrb[28].mxu1 %v2449_v28  ;;  %v2831_v28 = vld [vmem:[%s2904_s2] ss:$0 sm:$0xff] }
  0x7f   : > { %1067 = vmatprep.mubr.bf16.mxu1 %v2452_v31 }
  0x84   : > { %1277 = vmatmul.mubr.bf16.gmra.mrb[40].mxu0 %v2466_v40 }
  0x85   : > { %2073 = vmatprep.mubr.msk.bf16.mxu0 %vm910_vm0, %v2468_v41 }
  0x86   : > { %1068 = vmatmul.mubr.bf16.gmra.mrb[32].mxu1 %v2455_v36 }
  0x87   : > { %1075 = vmatprep.mubr.bf16.mxu1 %v2458_v39 }
  0x8c   : > { %1285 = vmatmul.mubr.bf16.gmra.mrb[44].mxu0 %v2472_v48 }
  0x8d   : > { %2074 = vmatprep.mubr.msk.bf16.mxu0 %vm910_vm0, %v2474_v49 }
  0x8e   : > { %1076 = vmatmul.mubr.bf16.gmra.mrb[36].mxu1 %v2461_v44 }
  0x8f   : > { %1083 = vmatprep.mubr.bf16.mxu1 %v2464_v47 }
  0x92   : > { %v1440_v30 = vpop.permute.xlu0 %1439 }
  0x93   : > { %v1450_v45 = vpop.permute.xlu1 %1449 }
  0x94   : > { %1293 = vmatmul.mubr.bf16.gmra.mrb[48].mxu0 %v2478_v52 }
  0x95   : > { %2075 = vmatprep.mubr.msk.bf16.mxu0 %vm910_vm0, %v2480_v53 }
  0x96   : > { %1084 = vmatmul.mubr.bf16.gmra.mrb[40].mxu1 %v2467_v50  ;;  %v1445_v43 = vpop.permute.xlu0 %1444 }
  0x97   : > { %1091 = vmatprep.mubr.bf16.mxu1 %v2470_v51 }
  0x9c   : > { %1301 = vmatmul.mubr.bf16.gmra.mrb[52].mxu0 %v2484_v56 }
  0x9d   : > { %2076 = vmatprep.mubr.msk.bf16.mxu0 %vm910_vm0, %v2486_v57 }
  0x9e   : > { %1092 = vmatmul.mubr.bf16.gmra.mrb[44].mxu1 %v2473_v54 }
  0x9f   : > { %1099 = vmatprep.mubr.bf16.mxu1 %v2476_v55 }
  0xa4   : > { %1309 = vmatmul.mubr.bf16.gmra.mrb[56].mxu0 %v2490_v60 }
  0xa5   : > { %2077 = vmatprep.mubr.msk.bf16.mxu0 %vm910_vm0, %v2492_v61 }
  0xa6   : > { %1100 = vmatmul.mubr.bf16.gmra.mrb[48].mxu1 %v2479_v58 }
  0xa7   : > { %1107 = vmatprep.mubr.bf16.mxu1 %v2482_v59 }
  0xac   : > { %1317 = vmatmul.mubr.bf16.gmra.mrb[60].mxu0 %v2496_v0 }
  0xad   : > { %2078 = vmatprep.mubr.msk.bf16.mxu0 %vm910_vm0, %v2498_v1 }
  0xae   : > { %1108 = vmatmul.mubr.bf16.gmra.mrb[52].mxu1 %v2485_v62 }
  0xaf   : > { %1115 = vmatprep.mubr.bf16.mxu1 %v2488_v63  ;;  %v1455_v63 = vpop.permute.xlu1 %1454 }
  0xb4   : > { %1325 = vmatmul.mubr.bf16.gmra.mrb[64].mxu0 %v2502_v4 }
  0xb5   : > { %2079 = vmatprep.mubr.msk.bf16.mxu0 %vm910_vm0, %v2504_v5 }
  0xb6   : > { %1116 = vmatmul.mubr.bf16.gmra.mrb[56].mxu1 %v2491_v2 }
  0xb7   : > { %1123 = vmatprep.mubr.bf16.mxu1 %v2494_v3 }
  0xbc   : > { %1333 = vmatmul.mubr.bf16.gmra.mrb[68].mxu0 %v2508_v8 }
  0xbd   : > { %2080 = vmatprep.mubr.msk.bf16.mxu0 %vm910_vm0, %v2510_v9 }
  0xbe   : > { %1124 = vmatmul.mubr.bf16.gmra.mrb[60].mxu1 %v2497_v6 }
  0xbf   : > { %1131 = vmatprep.mubr.bf16.mxu1 %v2500_v7 }
  0xc4   : > { %1341 = vmatmul.mubr.bf16.gmra.mrb[72].mxu0 %v2514_v12 }
  0xc5   : > { %2081 = vmatprep.mubr.msk.bf16.mxu0 %vm910_vm0, %v2516_v13 }
  0xc6   : > { %1132 = vmatmul.mubr.bf16.gmra.mrb[64].mxu1 %v2503_v10 }
  0xc7   : > { %1139 = vmatprep.mubr.bf16.mxu1 %v2506_v11 }
  0xcc   : > { %1349 = vmatmul.mubr.bf16.gmra.mrb[76].mxu0 %v2520_v16  ;;  %v1465_v16 = vpop.permute.xlu1 %1464 }
  0xce   : > { %1140 = vmatmul.mubr.bf16.gmra.mrb[68].mxu1 %v2509_v14 }
  0xcf   : > { %1147 = vmatprep.mubr.bf16.mxu1 %v2512_v15 }
  0xd6   : > { %1148 = vmatmul.mubr.bf16.gmra.mrb[72].mxu1 %v2515_v17 }
  0xd7   : > { %1155 = vmatprep.mubr.bf16.mxu1 %v2518_v18  ;;  %v1460_v18 = vpop.permute.xlu0 %1459 }
  0xde   : > { %1156 = vmatmul.mubr.bf16.gmra.mrb[76].mxu1 %v2521_v19 }
 0x107   : > { %v1198_v20 = vpop.f32.mrb[0].mxu0 }
 0x108   : > { %v1200_v21 = vpop.f32.mrb[1].mxu0 }
 0x109   : > { %v1201_v22 = vpop.f32.mrb[2].mxu0 }
 0x10a   : > { %v1203_v23 = vpop.f32.mrb[3].mxu0 }
 0x10f   : > { %v1206_v24 = vpop.f32.mrb[4].mxu0 }
 0x110   : > { %v1208_v25 = vpop.f32.mrb[5].mxu0 }
 0x111   : > { %v1209_v26 = vpop.f32.mrb[6].mxu0 }
 0x112   : > { %v1211_v27 = vpop.f32.mrb[7].mxu0 }
 0x117   : > { %v1214_v33 = vpop.f32.mrb[8].mxu0 }
 0x118   : > { %v1216_v35 = vpop.f32.mrb[9].mxu0 }
 0x119   : > { %v1005_v29 = vpop.f32.mrb[0].mxu1  ;;  %v1217_v39 = vpop.f32.mrb[10].mxu0 }
 0x11a   : > { %v1006_v31 = vadd.f32 %v2831_v28, %v1005_v29  ;;  %v1007_v32 = vpop.f32.mrb[1].mxu1  ;;  %v1219_v40 = vpop.f32.mrb[11].mxu0 }
 0x11b   : > { %v1008_v34 = vpop.f32.mrb[2].mxu1 }
 0x11c   : > { %v1199_v36 = vadd.f32 %v1198_v20, %v1006_v31  ;;  %v1009_v37 = vadd.f32 %v2831_v28, %v1008_v34  ;;  %v1010_v38 = vpop.f32.mrb[3].mxu1 }
 0x11d   : > { %v1470_v38 = vpop.permute.xlu0 %1469 }
 0x11e   : > { %v1202_v41 = vadd.f32 %v1201_v22, %v1009_v37  ;;  %v1357_v42 = vmax.f32 %v1199_v36, 0.0  ;;  %v1475_v36 = vpop.permute.xlu1 %1474 }
 0x11f   : > { %v1222_v51 = vpop.f32.mrb[12].mxu0 }
 0x120   : > { %v1358_v44 = vmax.f32 %v1202_v41, 0.0  ;;  %v1637_v47 = vmul.f32 %v1440_v30, %v1357_v42  ;;  %v1224_v53 = vpop.f32.mrb[13].mxu0 }
 0x121   : > { %v1013_v46 = vpop.f32.mrb[4].mxu1  ;;  %v1225_v58 = vpop.f32.mrb[14].mxu0 }
 0x122   : > { %v1638_v48 = vmul.f32 %v1445_v43, %v1358_v44  ;;  %v1014_v49 = vadd.f32 %v2831_v28, %v1013_v46  ;;  %v1015_v50 = vpop.f32.mrb[5].mxu1  ;;  %v1227_v59 = vpop.f32.mrb[15].mxu0 }
 0x123   : > { %v1016_v52 = vpop.f32.mrb[6].mxu1 }
 0x124   : > { %v2168_v54 = vpack.c.bf16 %v1638_v48, %v1637_v47  ;;  %v1207_v55 = vadd.f32 %v1206_v24, %v1014_v49  ;;  %v1017_v56 = vadd.f32 %v2831_v28, %v1016_v52  ;;  %v1018_v57 = vpop.f32.mrb[7].mxu1 }
 0x125   : > { %v1480_v57 = vpop.permute.xlu0 %1479 }
 0x126   : > { %2169 = vst [vmem:[%s2840_s11] sm:$0xff] %v2168_v54   ;;  %v1359_v60 = vmax.f32 %v1207_v55, 0.0  ;;  %v1210_v61 = vadd.f32 %v1209_v26, %v1017_v56  ;;  %v1485_v55 = vpop.permute.xlu1 %1484 }
 0x127   : > { %v1230_v5 = vpop.f32.mrb[16].mxu0 }
 0x128   : > { %v1360_v62 = vmax.f32 %v1210_v61, 0.0  ;;  %v1639_v1 = vmul.f32 %v1450_v45, %v1359_v60  ;;  %v1232_v7 = vpop.f32.mrb[17].mxu0 }
 0x129   : > { %v1021_v0 = vpop.f32.mrb[8].mxu1  ;;  %v1233_v12 = vpop.f32.mrb[18].mxu0 }
 0x12a   : > { %v1640_v2 = vmul.f32 %v1455_v63, %v1360_v62  ;;  %v1022_v3 = vadd.f32 %v2831_v28, %v1021_v0  ;;  %v1023_v4 = vpop.f32.mrb[9].mxu1  ;;  %v1235_v13 = vpop.f32.mrb[19].mxu0 }
 0x12b   : > { %v1024_v6 = vpop.f32.mrb[10].mxu1 }
 0x12c   : > { %v2173_v8 = vpack.c.bf16 %v1640_v2, %v1639_v1  ;;  %v1215_v9 = vadd.f32 %v1214_v33, %v1022_v3  ;;  %v1025_v10 = vadd.f32 %v2831_v28, %v1024_v6  ;;  %v1026_v11 = vpop.f32.mrb[11].mxu1 }
 0x12e   : > { %2265 = vst [vmem:[%s2840_s11 + $0x8] sm:$0xff] %v2173_v8   ;;  %v1361_v14 = vmax.f32 %v1215_v9, 0.0  ;;  %v1218_v15 = vadd.f32 %v1217_v39, %v1025_v10  ;;  %v1495_v10 = vpop.permute.xlu1 %1494 }
 0x12f   : > { %v1238_v24 = vpop.f32.mrb[20].mxu0 }
 0x130   : > { %v1362_v17 = vmax.f32 %v1218_v15, 0.0  ;;  %v1641_v20 = vmul.f32 %v1460_v18, %v1361_v14  ;;  %v1240_v26 = vpop.f32.mrb[21].mxu0 }
 0x131   : > { %v1029_v19 = vpop.f32.mrb[12].mxu1  ;;  %v1241_v32 = vpop.f32.mrb[22].mxu0 }
 0x132   : > { %v1642_v21 = vmul.f32 %v1465_v16, %v1362_v17  ;;  %v1030_v22 = vadd.f32 %v2831_v28, %v1029_v19  ;;  %v1031_v23 = vpop.f32.mrb[13].mxu1  ;;  %v1243_v33 = vpop.f32.mrb[23].mxu0 }
 0x133   : > { %v1032_v25 = vpop.f32.mrb[14].mxu1 }
 0x134   : > { %v2178_v27 = vpack.c.bf16 %v1642_v21, %v1641_v20  ;;  %v1223_v29 = vadd.f32 %v1222_v51, %v1030_v22  ;;  %v1033_v30 = vadd.f32 %v2831_v28, %v1032_v25  ;;  %v1034_v31 = vpop.f32.mrb[15].mxu1 }
 0x136   : > { %2266 = vst [vmem:[%s2840_s11 + $0x10] sm:$0xff] %v2178_v27   ;;  %v1363_v34 = vmax.f32 %v1223_v29, 0.0  ;;  %v1226_v35 = vadd.f32 %v1225_v58, %v1033_v30  ;;  %v1505_v30 = vpop.permute.xlu1 %1504 }
 0x137   : > { %v1246_v44 = vpop.f32.mrb[24].mxu0 }
 0x138   : > { %v1364_v37 = vmax.f32 %v1226_v35, 0.0  ;;  %v1643_v40 = vmul.f32 %v1470_v38, %v1363_v34  ;;  %v1248_v46 = vpop.f32.mrb[25].mxu0 }
 0x139   : > { %v1037_v39 = vpop.f32.mrb[16].mxu1  ;;  %v1249_v51 = vpop.f32.mrb[26].mxu0 }
 0x13a   : > { %v1644_v41 = vmul.f32 %v1475_v36, %v1364_v37  ;;  %v1038_v42 = vadd.f32 %v2831_v28, %v1037_v39  ;;  %v1039_v43 = vpop.f32.mrb[17].mxu1  ;;  %v1251_v52 = vpop.f32.mrb[27].mxu0 }
 0x13b   : > { %v1040_v45 = vpop.f32.mrb[18].mxu1 }
 0x13c   : > { %v2183_v47 = vpack.c.bf16 %v1644_v41, %v1643_v40  ;;  %v1231_v48 = vadd.f32 %v1230_v5, %v1038_v42  ;;  %v1041_v49 = vadd.f32 %v2831_v28, %v1040_v45  ;;  %v1042_v50 = vpop.f32.mrb[19].mxu1 }
 0x13e   : > { %2267 = vst [vmem:[%s2840_s11 + $0x18] sm:$0xff] %v2183_v47   ;;  %v1365_v53 = vmax.f32 %v1231_v48, 0.0  ;;  %v1234_v54 = vadd.f32 %v1233_v12, %v1041_v49  ;;  %v1490_v12 = vpop.permute.xlu0 %1489  ;;  %v1515_v49 = vpop.permute.xlu1 %1514 }
 0x13f   : > { %v1254_v63 = vpop.f32.mrb[28].mxu0 }
 0x140   : > { %v1366_v56 = vmax.f32 %v1234_v54, 0.0  ;;  %v1645_v59 = vmul.f32 %v1480_v57, %v1365_v53  ;;  %v1256_v1 = vpop.f32.mrb[29].mxu0 }
 0x141   : > { %v1045_v58 = vpop.f32.mrb[20].mxu1  ;;  %v1257_v6 = vpop.f32.mrb[30].mxu0 }
 0x142   : > { %v1646_v60 = vmul.f32 %v1485_v55, %v1366_v56  ;;  %v1046_v61 = vadd.f32 %v2831_v28, %v1045_v58  ;;  %v1047_v62 = vpop.f32.mrb[21].mxu1  ;;  %v1259_v7 = vpop.f32.mrb[31].mxu0 }
 0x143   : > { %v1048_v0 = vpop.f32.mrb[22].mxu1 }
 0x144   : > { %v2188_v2 = vpack.c.bf16 %v1646_v60, %v1645_v59  ;;  %v1239_v3 = vadd.f32 %v1238_v24, %v1046_v61  ;;  %v1049_v4 = vadd.f32 %v2831_v28, %v1048_v0  ;;  %v1050_v5 = vpop.f32.mrb[23].mxu1 }
 0x146   : > { %2268 = vst [vmem:[%s2840_s11 + $0x20] sm:$0xff] %v2188_v2   ;;  %v1367_v8 = vmax.f32 %v1239_v3, 0.0  ;;  %v1242_v9 = vadd.f32 %v1241_v32, %v1049_v4  ;;  %v1500_v32 = vpop.permute.xlu0 %1499  ;;  %v1525_v4 = vpop.permute.xlu1 %1524 }
 0x147   : > { %v1262_v18 = vpop.f32.mrb[32].mxu0 }
 0x148   : > { %v1368_v11 = vmax.f32 %v1242_v9, 0.0  ;;  %v1647_v14 = vmul.f32 %v1490_v12, %v1367_v8  ;;  %v1264_v20 = vpop.f32.mrb[33].mxu0 }
 0x149   : > { %v1053_v13 = vpop.f32.mrb[24].mxu1  ;;  %v1265_v25 = vpop.f32.mrb[34].mxu0 }
 0x14a   : > { %v1648_v15 = vmul.f32 %v1495_v10, %v1368_v11  ;;  %v1054_v16 = vadd.f32 %v2831_v28, %v1053_v13  ;;  %v1055_v17 = vpop.f32.mrb[25].mxu1  ;;  %v1267_v26 = vpop.f32.mrb[35].mxu0 }
 0x14b   : > { %v1056_v19 = vpop.f32.mrb[26].mxu1 }
 0x14c   : > { %v2193_v21 = vpack.c.bf16 %v1648_v15, %v1647_v14  ;;  %v1247_v22 = vadd.f32 %v1246_v44, %v1054_v16  ;;  %v1057_v23 = vadd.f32 %v2831_v28, %v1056_v19  ;;  %v1058_v24 = vpop.f32.mrb[27].mxu1 }
 0x14e   : > { %2269 = vst [vmem:[%s2840_s11 + $0x28] sm:$0xff] %v2193_v21   ;;  %v1369_v27 = vmax.f32 %v1247_v22, 0.0  ;;  %v1250_v29 = vadd.f32 %v1249_v51, %v1057_v23  ;;  %v1510_v51 = vpop.permute.xlu0 %1509  ;;  %v1535_v23 = vpop.permute.xlu1 %1534 }
 0x14f   : > { %v1270_v38 = vpop.f32.mrb[36].mxu0 }
 0x150   : > { %v1370_v31 = vmax.f32 %v1250_v29, 0.0  ;;  %v1649_v34 = vmul.f32 %v1500_v32, %v1369_v27  ;;  %v1272_v40 = vpop.f32.mrb[37].mxu0 }
 0x151   : > { %v1061_v33 = vpop.f32.mrb[28].mxu1  ;;  %v1273_v45 = vpop.f32.mrb[38].mxu0 }
 0x152   : > { %v1650_v35 = vmul.f32 %v1505_v30, %v1370_v31  ;;  %v1062_v36 = vadd.f32 %v2831_v28, %v1061_v33  ;;  %v1063_v37 = vpop.f32.mrb[29].mxu1  ;;  %v1275_v46 = vpop.f32.mrb[39].mxu0 }
 0x153   : > { %v1064_v39 = vpop.f32.mrb[30].mxu1 }
 0x154   : > { %v2198_v41 = vpack.c.bf16 %v1650_v35, %v1649_v34  ;;  %v1255_v42 = vadd.f32 %v1254_v63, %v1062_v36  ;;  %v1065_v43 = vadd.f32 %v2831_v28, %v1064_v39  ;;  %v1066_v44 = vpop.f32.mrb[31].mxu1 }
 0x156   : > { %2270 = vst [vmem:[%s2840_s11 + $0x30] sm:$0xff] %v2198_v41   ;;  %v1371_v47 = vmax.f32 %v1255_v42, 0.0  ;;  %v1258_v48 = vadd.f32 %v1257_v6, %v1065_v43  ;;  %v1520_v6 = vpop.permute.xlu0 %1519  ;;  %v1545_v43 = vpop.permute.xlu1 %1544 }
 0x157   : > { %v1278_v57 = vpop.f32.mrb[40].mxu0 }
 0x158   : > { %v1372_v50 = vmax.f32 %v1258_v48, 0.0  ;;  %v1651_v53 = vmul.f32 %v1510_v51, %v1371_v47  ;;  %v1280_v59 = vpop.f32.mrb[41].mxu0 }
 0x159   : > { %v1069_v52 = vpop.f32.mrb[32].mxu1  ;;  %v1281_v0 = vpop.f32.mrb[42].mxu0 }
 0x15a   : > { %v1652_v54 = vmul.f32 %v1515_v49, %v1372_v50  ;;  %v1070_v55 = vadd.f32 %v2831_v28, %v1069_v52  ;;  %v1071_v56 = vpop.f32.mrb[33].mxu1  ;;  %v1283_v1 = vpop.f32.mrb[43].mxu0 }
 0x15b   : > { %v1072_v58 = vpop.f32.mrb[34].mxu1 }
 0x15c   : > { %v2203_v60 = vpack.c.bf16 %v1652_v54, %v1651_v53  ;;  %v1263_v61 = vadd.f32 %v1262_v18, %v1070_v55  ;;  %v1073_v62 = vadd.f32 %v2831_v28, %v1072_v58  ;;  %v1074_v63 = vpop.f32.mrb[35].mxu1 }
 0x15e   : > { %2271 = vst [vmem:[%s2840_s11 + $0x38] sm:$0xff] %v2203_v60   ;;  %v1373_v2 = vmax.f32 %v1263_v61, 0.0  ;;  %v1266_v3 = vadd.f32 %v1265_v25, %v1073_v62  ;;  %v1530_v25 = vpop.permute.xlu0 %1529  ;;  %v1555_v62 = vpop.permute.xlu1 %1554 }
 0x15f   : > { %v1286_v12 = vpop.f32.mrb[44].mxu0 }
 0x160   : > { %v1374_v5 = vmax.f32 %v1266_v3, 0.0  ;;  %v1653_v8 = vmul.f32 %v1520_v6, %v1373_v2  ;;  %v1288_v14 = vpop.f32.mrb[45].mxu0 }
 0x161   : > { %v1077_v7 = vpop.f32.mrb[36].mxu1  ;;  %v1289_v19 = vpop.f32.mrb[46].mxu0 }
 0x162   : > { %v1654_v9 = vmul.f32 %v1525_v4, %v1374_v5  ;;  %v1078_v10 = vadd.f32 %v2831_v28, %v1077_v7  ;;  %v1079_v11 = vpop.f32.mrb[37].mxu1  ;;  %v1291_v20 = vpop.f32.mrb[47].mxu0 }
 0x163   : > { %v1080_v13 = vpop.f32.mrb[38].mxu1 }
 0x164   : > { %v2208_v15 = vpack.c.bf16 %v1654_v9, %v1653_v8  ;;  %v1271_v16 = vadd.f32 %v1270_v38, %v1078_v10  ;;  %v1081_v17 = vadd.f32 %v2831_v28, %v1080_v13  ;;  %v1082_v18 = vpop.f32.mrb[39].mxu1 }
 0x166   : > { %2272 = vst [vmem:[%s2840_s11 + $0x40] sm:$0xff] %v2208_v15   ;;  %v1375_v21 = vmax.f32 %v1271_v16, 0.0  ;;  %v1274_v22 = vadd.f32 %v1273_v45, %v1081_v17  ;;  %v1540_v45 = vpop.permute.xlu0 %1539  ;;  %v1565_v17 = vpop.permute.xlu1 %1564 }
 0x167   : > { %v1294_v32 = vpop.f32.mrb[48].mxu0 }
 0x168   : > { %v1376_v24 = vmax.f32 %v1274_v22, 0.0  ;;  %v1655_v27 = vmul.f32 %v1530_v25, %v1375_v21  ;;  %v1296_v34 = vpop.f32.mrb[49].mxu0 }
 0x169   : > { %v1085_v26 = vpop.f32.mrb[40].mxu1  ;;  %v1297_v39 = vpop.f32.mrb[50].mxu0 }
 0x16a   : > { %v1656_v29 = vmul.f32 %v1535_v23, %v1376_v24  ;;  %v1086_v30 = vadd.f32 %v2831_v28, %v1085_v26  ;;  %v1087_v31 = vpop.f32.mrb[41].mxu1  ;;  %v1299_v40 = vpop.f32.mrb[51].mxu0 }
 0x16b   : > { %v1088_v33 = vpop.f32.mrb[42].mxu1 }
 0x16c   : > { %v2213_v35 = vpack.c.bf16 %v1656_v29, %v1655_v27  ;;  %v1279_v36 = vadd.f32 %v1278_v57, %v1086_v30  ;;  %v1089_v37 = vadd.f32 %v2831_v28, %v1088_v33  ;;  %v1090_v38 = vpop.f32.mrb[43].mxu1 }
 0x16e   : > { %2273 = vst [vmem:[%s2840_s11 + $0x48] sm:$0xff] %v2213_v35   ;;  %v1377_v41 = vmax.f32 %v1279_v36, 0.0  ;;  %v1282_v42 = vadd.f32 %v1281_v0, %v1089_v37  ;;  %v1550_v0 = vpop.permute.xlu0 %1549  ;;  %v1575_v37 = vpop.permute.xlu1 %1574 }
 0x16f   : > { %v1302_v51 = vpop.f32.mrb[52].mxu0 }
 0x170   : > { %v1378_v44 = vmax.f32 %v1282_v42, 0.0  ;;  %v1657_v47 = vmul.f32 %v1540_v45, %v1377_v41  ;;  %v1304_v53 = vpop.f32.mrb[53].mxu0 }
 0x171   : > { %v1093_v46 = vpop.f32.mrb[44].mxu1  ;;  %v1305_v58 = vpop.f32.mrb[54].mxu0 }
 0x172   : > { %v1658_v48 = vmul.f32 %v1545_v43, %v1378_v44  ;;  %v1094_v49 = vadd.f32 %v2831_v28, %v1093_v46  ;;  %v1095_v50 = vpop.f32.mrb[45].mxu1  ;;  %v1307_v59 = vpop.f32.mrb[55].mxu0 }
 0x173   : > { %v1096_v52 = vpop.f32.mrb[46].mxu1 }
 0x174   : > { %v2218_v54 = vpack.c.bf16 %v1658_v48, %v1657_v47  ;;  %v1287_v55 = vadd.f32 %v1286_v12, %v1094_v49  ;;  %v1097_v56 = vadd.f32 %v2831_v28, %v1096_v52  ;;  %v1098_v57 = vpop.f32.mrb[47].mxu1 }
 0x176   : > { %2274 = vst [vmem:[%s2840_s11 + $0x50] sm:$0xff] %v2218_v54   ;;  %v1379_v60 = vmax.f32 %v1287_v55, 0.0  ;;  %v1290_v61 = vadd.f32 %v1289_v19, %v1097_v56  ;;  %v1560_v19 = vpop.permute.xlu0 %1559  ;;  %v1585_v56 = vpop.permute.xlu1 %1584 }
 0x177   : > { %v1310_v6 = vpop.f32.mrb[56].mxu0 }
 0x178   : > { %v1380_v63 = vmax.f32 %v1290_v61, 0.0  ;;  %v1659_v2 = vmul.f32 %v1550_v0, %v1379_v60  ;;  %v1312_v8 = vpop.f32.mrb[57].mxu0 }
 0x179   : > { %v1101_v1 = vpop.f32.mrb[48].mxu1  ;;  %v1313_v13 = vpop.f32.mrb[58].mxu0 }
 0x17a   : > { %v1660_v3 = vmul.f32 %v1555_v62, %v1380_v63  ;;  %v1102_v4 = vadd.f32 %v2831_v28, %v1101_v1  ;;  %v1103_v5 = vpop.f32.mrb[49].mxu1  ;;  %v1315_v14 = vpop.f32.mrb[59].mxu0 }
 0x17b   : > { %v1104_v7 = vpop.f32.mrb[50].mxu1 }
 0x17c   : > { %v2223_v9 = vpack.c.bf16 %v1660_v3, %v1659_v2  ;;  %v1295_v10 = vadd.f32 %v1294_v32, %v1102_v4  ;;  %v1105_v11 = vadd.f32 %v2831_v28, %v1104_v7  ;;  %v1106_v12 = vpop.f32.mrb[51].mxu1 }
 0x17e   : > { %2275 = vst [vmem:[%s2840_s11 + $0x58] sm:$0xff] %v2223_v9   ;;  %v1381_v15 = vmax.f32 %v1295_v10, 0.0  ;;  %v1298_v16 = vadd.f32 %v1297_v39, %v1105_v11  ;;  %v1570_v39 = vpop.permute.xlu0 %1569  ;;  %v1595_v11 = vpop.permute.xlu1 %1594 }
 0x17f   : > { %v1318_v25 = vpop.f32.mrb[60].mxu0 }
 0x180   : > { %v1382_v18 = vmax.f32 %v1298_v16, 0.0  ;;  %v1661_v21 = vmul.f32 %v1560_v19, %v1381_v15  ;;  %v1320_v27 = vpop.f32.mrb[61].mxu0 }
 0x181   : > { %v1109_v20 = vpop.f32.mrb[52].mxu1  ;;  %v1321_v33 = vpop.f32.mrb[62].mxu0 }
 0x182   : > { %v1662_v22 = vmul.f32 %v1565_v17, %v1382_v18  ;;  %v1110_v23 = vadd.f32 %v2831_v28, %v1109_v20  ;;  %v1111_v24 = vpop.f32.mrb[53].mxu1  ;;  %v1323_v34 = vpop.f32.mrb[63].mxu0 }
 0x183   : > { %v1112_v26 = vpop.f32.mrb[54].mxu1 }
 0x184   : > { %v2228_v29 = vpack.c.bf16 %v1662_v22, %v1661_v21  ;;  %v1303_v30 = vadd.f32 %v1302_v51, %v1110_v23  ;;  %v1113_v31 = vadd.f32 %v2831_v28, %v1112_v26  ;;  %v1114_v32 = vpop.f32.mrb[55].mxu1 }
 0x186   : > { %2276 = vst [vmem:[%s2840_s11 + $0x60] sm:$0xff] %v2228_v29   ;;  %v1383_v35 = vmax.f32 %v1303_v30, 0.0  ;;  %v1306_v36 = vadd.f32 %v1305_v58, %v1113_v31  ;;  %v1580_v58 = vpop.permute.xlu0 %1579  ;;  %v1605_v31 = vpop.permute.xlu1 %1604 }
 0x187   : > { %v1326_v45 = vpop.f32.mrb[64].mxu0 }
 0x188   : > { %v1384_v38 = vmax.f32 %v1306_v36, 0.0  ;;  %v1663_v41 = vmul.f32 %v1570_v39, %v1383_v35  ;;  %v1328_v47 = vpop.f32.mrb[65].mxu0 }
 0x189   : > { %v1117_v40 = vpop.f32.mrb[56].mxu1  ;;  %v1329_v52 = vpop.f32.mrb[66].mxu0 }
 0x18a   : > { %v1664_v42 = vmul.f32 %v1575_v37, %v1384_v38  ;;  %v1118_v43 = vadd.f32 %v2831_v28, %v1117_v40  ;;  %v1119_v44 = vpop.f32.mrb[57].mxu1  ;;  %v1331_v53 = vpop.f32.mrb[67].mxu0 }
 0x18b   : > { %v1120_v46 = vpop.f32.mrb[58].mxu1 }
 0x18c   : > { %v2233_v48 = vpack.c.bf16 %v1664_v42, %v1663_v41  ;;  %v1311_v49 = vadd.f32 %v1310_v6, %v1118_v43  ;;  %v1121_v50 = vadd.f32 %v2831_v28, %v1120_v46  ;;  %v1122_v51 = vpop.f32.mrb[59].mxu1 }
 0x18e   : > { %2277 = vst [vmem:[%s2840_s11 + $0x68] sm:$0xff] %v2233_v48   ;;  %v1385_v54 = vmax.f32 %v1311_v49, 0.0  ;;  %v1314_v55 = vadd.f32 %v1313_v13, %v1121_v50  ;;  %v1590_v13 = vpop.permute.xlu0 %1589  ;;  %v1615_v50 = vpop.permute.xlu1 %1614 }
 0x18f   : > { %v1334_v0 = vpop.f32.mrb[68].mxu0 }
 0x190   : > { %v1386_v57 = vmax.f32 %v1314_v55, 0.0  ;;  %v1665_v60 = vmul.f32 %v1580_v58, %v1385_v54  ;;  %v1336_v2 = vpop.f32.mrb[69].mxu0 }
 0x191   : > { %v1125_v59 = vpop.f32.mrb[60].mxu1  ;;  %v1337_v7 = vpop.f32.mrb[70].mxu0 }
 0x192   : > { %v1666_v61 = vmul.f32 %v1585_v56, %v1386_v57  ;;  %v1126_v62 = vadd.f32 %v2831_v28, %v1125_v59  ;;  %v1127_v63 = vpop.f32.mrb[61].mxu1  ;;  %v1339_v8 = vpop.f32.mrb[71].mxu0 }
 0x193   : > { %v1128_v1 = vpop.f32.mrb[62].mxu1 }
 0x194   : > { %v2238_v3 = vpack.c.bf16 %v1666_v61, %v1665_v60  ;;  %v1319_v4 = vadd.f32 %v1318_v25, %v1126_v62  ;;  %v1129_v5 = vadd.f32 %v2831_v28, %v1128_v1  ;;  %v1130_v6 = vpop.f32.mrb[63].mxu1  ;;  %v1625_v1 = vpop.permute.xlu1 %1624 }
 0x196   : > { %2278 = vst [vmem:[%s2840_s11 + $0x70] sm:$0xff] %v2238_v3   ;;  %v1387_v9 = vmax.f32 %v1319_v4, 0.0  ;;  %v1322_v10 = vadd.f32 %v1321_v33, %v1129_v5  ;;  %v1600_v33 = vpop.permute.xlu0 %1599 }
 0x197   : > { %v1342_v19 = vpop.f32.mrb[72].mxu0 }
 0x198   : > { %v1388_v12 = vmax.f32 %v1322_v10, 0.0  ;;  %v1667_v15 = vmul.f32 %v1590_v13, %v1387_v9  ;;  %v1344_v21 = vpop.f32.mrb[73].mxu0 }
 0x199   : > { %v1133_v14 = vpop.f32.mrb[64].mxu1  ;;  %v1345_v26 = vpop.f32.mrb[74].mxu0 }
 0x19a   : > { %v1668_v16 = vmul.f32 %v1595_v11, %v1388_v12  ;;  %v1134_v17 = vadd.f32 %v2831_v28, %v1133_v14  ;;  %v1135_v18 = vpop.f32.mrb[65].mxu1  ;;  %v1347_v27 = vpop.f32.mrb[75].mxu0 }
 0x19b   : > { %v1136_v20 = vpop.f32.mrb[66].mxu1 }
 0x19c   : > { %v2243_v22 = vpack.c.bf16 %v1668_v16, %v1667_v15  ;;  %v1327_v23 = vadd.f32 %v1326_v45, %v1134_v17  ;;  %v1137_v24 = vadd.f32 %v2831_v28, %v1136_v20  ;;  %v1138_v25 = vpop.f32.mrb[67].mxu1  ;;  %v1635_v17 = vpop.permute.xlu1 %1634 }
 0x19e   : > { %2279 = vst [vmem:[%s2840_s11 + $0x78] sm:$0xff] %v2243_v22   ;;  %v1389_v29 = vmax.f32 %v1327_v23, 0.0  ;;  %v1330_v30 = vadd.f32 %v1329_v52, %v1137_v24  ;;  %v1610_v52 = vpop.permute.xlu0 %1609 }
 0x19f   : > { %v1350_v39 = vpop.f32.mrb[76].mxu0 }
 0x1a0   : > { %v1390_v32 = vmax.f32 %v1330_v30, 0.0  ;;  %v1669_v35 = vmul.f32 %v1600_v33, %v1389_v29  ;;  %v1352_v41 = vpop.f32.mrb[77].mxu0 }
 0x1a1   : > { %v1141_v34 = vpop.f32.mrb[68].mxu1  ;;  %v1353_v46 = vpop.f32.mrb[78].mxu0 }
 0x1a2   : > { %v1670_v36 = vmul.f32 %v1605_v31, %v1390_v32  ;;  %v1142_v37 = vadd.f32 %v2831_v28, %v1141_v34  ;;  %v1143_v38 = vpop.f32.mrb[69].mxu1  ;;  %v1355_v47 = vpop.f32.mrb[79].mxu0 }
 0x1a3   : > { %v1144_v40 = vpop.f32.mrb[70].mxu1  ;;  %v1620_v3 = vpop.permute.xlu0 %1619 }
 0x1a4   : > { %v2248_v42 = vpack.c.bf16 %v1670_v36, %v1669_v35  ;;  %v1335_v43 = vadd.f32 %v1334_v0, %v1142_v37  ;;  %v1145_v44 = vadd.f32 %v2831_v28, %v1144_v40  ;;  %v1146_v45 = vpop.f32.mrb[71].mxu1 }
 0x1a6   : > { %2280 = vst [vmem:[%s2840_s11 + $0x80] sm:$0xff] %v2248_v42   ;;  %v1391_v48 = vmax.f32 %v1335_v43, 0.0  ;;  %v1338_v49 = vadd.f32 %v1337_v7, %v1145_v44 }
 0x1a7   : > { %v1630_v18 = vpop.permute.xlu0 %1629 }
 0x1a8   : > { %v1392_v51 = vmax.f32 %v1338_v49, 0.0  ;;  %v1671_v54 = vmul.f32 %v1610_v52, %v1391_v48 }
 0x1a9   : > { %v1149_v53 = vpop.f32.mrb[72].mxu1 }
 0x1aa   : > { %v1672_v55 = vmul.f32 %v1615_v50, %v1392_v51  ;;  %v1150_v56 = vadd.f32 %v2831_v28, %v1149_v53  ;;  %v1151_v57 = vpop.f32.mrb[73].mxu1 }
 0x1ab   : > { %v1152_v58 = vpop.f32.mrb[74].mxu1 }
 0x1ac   : > { %v2253_v59 = vpack.c.bf16 %v1672_v55, %v1671_v54  ;;  %v1343_v60 = vadd.f32 %v1342_v19, %v1150_v56  ;;  %v1153_v61 = vadd.f32 %v2831_v28, %v1152_v58  ;;  %v1154_v62 = vpop.f32.mrb[75].mxu1 }
 0x1ae   : > { %2281 = vst [vmem:[%s2840_s11 + $0x88] sm:$0xff] %v2253_v59   ;;  %v1393_v63 = vmax.f32 %v1343_v60, 0.0  ;;  %v1346_v0 = vadd.f32 %v1345_v26, %v1153_v61 }
 0x1b0   : > { %v1394_v2 = vmax.f32 %v1346_v0, 0.0  ;;  %v1673_v5 = vmul.f32 %v1620_v3, %v1393_v63 }
 0x1b1   : > { %v1157_v4 = vpop.f32.mrb[76].mxu1 }
 0x1b2   : > { %v1674_v6 = vmul.f32 %v1625_v1, %v1394_v2  ;;  %v1158_v7 = vadd.f32 %v2831_v28, %v1157_v4  ;;  %v1159_v8 = vpop.f32.mrb[77].mxu1 }
 0x1b3   : > { %v1160_v9 = vpop.f32.mrb[78].mxu1 }
 0x1b4   : > { %v2258_v10 = vpack.c.bf16 %v1674_v6, %v1673_v5  ;;  %v1351_v11 = vadd.f32 %v1350_v39, %v1158_v7  ;;  %v1161_v12 = vadd.f32 %v2831_v28, %v1160_v9  ;;  %v1162_v13 = vpop.f32.mrb[79].mxu1 }
 0x1b6   : > { %2282 = vst [vmem:[%s2840_s11 + $0x90] sm:$0xff] %v2258_v10   ;;  %v1395_v14 = vmax.f32 %v1351_v11, 0.0  ;;  %v1354_v15 = vadd.f32 %v1353_v46, %v1161_v12 }
 0x1b8   : > { %v1396_v16 = vmax.f32 %v1354_v15, 0.0  ;;  %v1675_v19 = vmul.f32 %v1630_v18, %v1395_v14 }
 0x1ba   : > { %v1676_v20 = vmul.f32 %v1635_v17, %v1396_v16 }
 0x1bc   : > { %v2263_v21 = vpack.c.bf16 %v1676_v20, %v1675_v19 }
 0x1be   : > { %2283 = vst [vmem:[%s2840_s11 + $0x98] sm:$0xff] %v2263_v21  }
 0x1bf PF: > { %s14_s15 = sadd.s32 1, %s2528_s15  }
 0x1c0   : > { %p11_p4 = scmp.ge.s32.totalorder %s14_s15, 4  }
 0x1c2   :  { %13 = sbr.rel (!%p11_p4) target bundleno = 1 (0x1), region = 69 }

// kernel: forward.16
= control target key start
LH: loop header
LB: loop body
LE: loop exit
PB: predicated region body
PF: predicated region fallthrough
CT: control target
= control target key end

     0   :  { %s916_s15 = smov 0   ;;  %s1022_s0 = inlined_call_operand.vmem [shape: bf16[256,48], index: 0, kind: input, shape index: {}]   ;;  %s1023_s1 = inlined_call_operand.vmem [shape: bf16[48,128], index: 1, kind: input, shape index: {}]   ;;  %s1024_s2 = inlined_call_operand.vmem [shape: f32[1,128], index: 2, kind: input, shape index: {}]   ;;  %s1025_s3 = inlined_call_operand.vmem [shape: f32[256,1], index: 3, kind: input, shape index: {}]   ;;  %s1026_s4 = inlined_call_operand.vmem [shape: bf16[256,128], index: 4, kind: output, shape index: {}]  }
   0x1 LB: > { %s709_s16 = sadd.s32 4294967295, %s888_s15   ;;  %p713_p0 = scmp.ge.s32.totalorder %s888_s15, 1  ;;  %s888_s15 = sphi %s916_s15, %s14_s15  }
   0x2   : > { %p174_p1 = scmp.lt.s32.totalorder %s888_s15, 3 }
   0x4   : > { %p175_p2 = pnand %p713_p0, %p174_p1 }
   0x5   : > { %v871_v0 = vld [vmem:[%s1023_s1] sm:$0xff] (!%p175_p2)   ;;  %s714_s19 = sshll.u32 (!%p175_p2), %s709_s16, 4  ;;  %v872_v1 = vld [vmem:[%s1023_s1 + $0x8] sm:$0xff] (!%p175_p2)   ;;  %v873_v2 = vld [vmem:[%s1023_s1 + $0x10] sm:$0xff] (!%p175_p2)   ;;  %v890_v3 = vmov (!%p175_p2), 0   ;;  %vm311_vm0 = vcmask (!%p175_p2), 392192  }
   0x6   : > { %178 = sbr.rel (%p175_p2) target bundleno = 251 (0xfb), region = 36  ;;  %p206_p3 = scmp.lt.s32.totalorder (!%p175_p2), %s714_s19, 31  ;;  %832 = vmatprep.subr.bf16.mxu0 (!%p175_p2), %v871_v0  ;;  %854 = vmatprep.subr.bf16.mxu1 (!%p175_p2), %v871_v0  ;;  %v982_v38 = vld [vmem:[%s1024_s2] ss:$0 sm:$0xff] (!%p175_p2) }
   0x7   : > { %833 = vmatpush3.bf16.msra.mxu0 (!%p175_p2), %v871_v0  ;;  %857 = vmatpush3.bf16.msra.mxu1 (!%p175_p2), %v871_v0 }
   0x8   : > { %834 = vmatprep.subr.bf16.mxu0 (!%p175_p2), %v872_v1  ;;  %855 = vmatprep.subr.bf16.mxu1 (!%p175_p2), %v872_v1 }
   0x9   : > { %870 = vset.pattern.permute.xlu1 (!%p175_p2), %v890_v3  ;;  %869 = vset.pattern.permute.xlu0 (!%p175_p2), %v890_v3 }
   0xb   : > { %835 = vmatpush3.bf16.msra.mxu0 (!%p175_p2), %v872_v1  ;;  %858 = vmatpush3.bf16.msra.mxu1 (!%p175_p2), %v872_v1 }
   0xc   : > { %836 = vmatprep.subr.bf16.mxu0 (!%p175_p2), %v873_v2  ;;  %856 = vmatprep.subr.bf16.mxu1 (!%p175_p2), %v873_v2 }
   0xd   : > { %s1028_s19 = smov (!%p206_p3, %s714_s19), 31 }
   0xe   : > { %s715_s24 = sshll.u32 %s1028_s19, 2  ;;  %s717_s28 = sshll.u32 %s1028_s19, 3 }
   0xf   : > { %s209_s27 = scalar_lea.vmem %s1022_s0, %s715_s24  ;;  %837 = vmatpush3.bf16.msra.mxu0 %v873_v2  ;;  %859 = vmatpush3.bf16.msra.mxu1 %v873_v2  ;;  %s947_s5 = scalar_lea.vmem %s1025_s3, %s717_s28 }
  0x10   : > { %v874_v4 = vld [vmem:[%s209_s27] sm:$0xff]   ;;  %v876_v6 = vld [vmem:[%s209_s27 + $0x8] sm:$0xff]   ;;  %v878_v8 = vld [vmem:[%s209_s27 + $0x10] sm:$0xff]   ;;  %s997_s10 = scalar_lea.vmem %s1026_s4, %s715_s24 }
  0x11   : > { %v875_v5 = vld [vmem:[%s209_s27 + $0x20] sm:$0xff]   ;;  %838 = vmatprep.mubr.msk.bf16.mxu0 %vm311_vm0, %v874_v4  ;;  %v877_v7 = vld [vmem:[%s209_s27 + $0x28] sm:$0xff]   ;;  %v879_v9 = vld [vmem:[%s209_s27 + $0x30] sm:$0xff]  }
  0x12   : > { %846 = vmatprep.mubr.msk.bf16.mxu1 %vm311_vm0, %v875_v5  ;;  %839 = vmatmul.mubr.msk.bf16.vlgmr.msra.gmra.mrb[0].mxu0 %vm311_vm0, %v876_v6  ;;  %v451_v10 = vld [vmem:[%s947_s5 + $0x10] sm:$0xff]  ;;  %v449_v11 = vld [vmem:[%s947_s5] sm:$0xff]  ;;  %v452_v12 = vld [vmem:[%s947_s5 + $0x18] sm:$0xff] }
  0x13   : > { %847 = vmatmul.mubr.msk.bf16.vlgmr.msra.gmra.mrb[0].mxu1 %vm311_vm0, %v877_v7  ;;  %842 = vmatprep.mubr.msk.bf16.mxu0 %vm311_vm0, %v878_v8  ;;  %v450_v13 = vld [vmem:[%s947_s5 + $0x8] sm:$0xff]  ;;  %v880_v14 = vld [vmem:[%s209_s27 + $0x18] sm:$0xff]   ;;  %v453_v17 = vld [vmem:[%s947_s5 + $0x20] sm:$0xff] }
  0x14   : > { %850 = vmatprep.mubr.msk.bf16.mxu1 %vm311_vm0, %v879_v9  ;;  %477 = vperm.xlu1 %870, %v451_v10   ;;  %v881_v15 = vld [vmem:[%s209_s27 + $0x38] sm:$0xff]   ;;  %v454_v16 = vld [vmem:[%s947_s5 + $0x28] sm:$0xff]  ;;  %v455_v19 = vld [vmem:[%s947_s5 + $0x30] sm:$0xff] }
  0x15   : > { %467 = vperm.xlu0 %869, %v449_v11   ;;  %v456_v18 = vld [vmem:[%s947_s5 + $0x38] sm:$0xff]  ;;  %v458_v20 = vld [vmem:[%s947_s5 + $0x48] sm:$0xff]  ;;  %v457_v21 = vld [vmem:[%s947_s5 + $0x40] sm:$0xff] }
  0x16   : > { %v460_v22 = vld [vmem:[%s947_s5 + $0x58] sm:$0xff]  ;;  %v459_v23 = vld [vmem:[%s947_s5 + $0x50] sm:$0xff]  ;;  %v462_v24 = vld [vmem:[%s947_s5 + $0x68] sm:$0xff] }
  0x17   : > { %v461_v25 = vld [vmem:[%s947_s5 + $0x60] sm:$0xff]  ;;  %v464_v26 = vld [vmem:[%s947_s5 + $0x78] sm:$0xff]  ;;  %v463_v27 = vld [vmem:[%s947_s5 + $0x70] sm:$0xff] }
  0x18   : > { %482 = vperm.xlu1 %870, %v452_v12  }
  0x19   : > { %472 = vperm.xlu0 %869, %v450_v13  }
  0x1a   : > { %843 = vmatmul.mubr.msk.bf16.gmra.mrb[4].mxu0 %vm311_vm0, %v880_v14 }
  0x1b   : > { %851 = vmatmul.mubr.msk.bf16.gmra.mrb[4].mxu1 %vm311_vm0, %v881_v15 }
  0x1c   : > { %492 = vperm.xlu1 %870, %v454_v16  }
  0x1d   : > { %487 = vperm.xlu0 %869, %v453_v17  }
  0x20   : > { %502 = vperm.xlu1 %870, %v456_v18  }
  0x21   : > { %497 = vperm.xlu0 %869, %v455_v19  }
  0x24   : > { %512 = vperm.xlu1 %870, %v458_v20  }
  0x25   : > { %507 = vperm.xlu0 %869, %v457_v21  }
  0x28   : > { %522 = vperm.xlu1 %870, %v460_v22  }
  0x29   : > { %517 = vperm.xlu0 %869, %v459_v23  }
  0x2c   : > { %532 = vperm.xlu1 %870, %v462_v24  }
  0x2d   : > { %527 = vperm.xlu0 %869, %v461_v25  }
  0x30   : > { %542 = vperm.xlu1 %870, %v464_v26  }
  0x31   : > { %537 = vperm.xlu0 %869, %v463_v27  }
  0x93   : > { %v478_v28 = vpop.permute.xlu1 %477 }
  0x94   : > { %v468_v29 = vpop.permute.xlu0 %467 }
  0x97   : > { %v483_v30 = vpop.permute.xlu1 %482 }
  0x98   : > { %v473_v31 = vpop.permute.xlu0 %472 }
  0x9b   : > { %v971_v32 = vpop.permute.xlu1 %492 }
  0x9c   : > { %v973_v33 = vpop.permute.xlu0 %487 }
  0x9f   : > { %v975_v34 = vpop.permute.xlu1 %502 }
  0xa0   : > { %v977_v35 = vpop.permute.xlu0 %497 }
  0xa3   : > { %v513_v36 = vpop.permute.xlu1 %512 }
  0xa4   : > { %v508_v37 = vpop.permute.xlu0 %507 }
  0xa7   : > { %v523_v39 = vpop.permute.xlu1 %522 }
  0xa8   : > { %v518_v40 = vpop.permute.xlu0 %517 }
  0xab   : > { %v533_v1 = vpop.permute.xlu1 %532 }
  0xac   : > { %v528_v2 = vpop.permute.xlu0 %527 }
  0xe5   : > { %v840_v41 = vpop.f32.mrb[0].mxu0 }
  0xe6   : > { %v848_v42 = vpop.f32.mrb[0].mxu1  ;;  %v379_v43 = vadd.f32 %v840_v41, %v982_v38  ;;  %v370_v45 = vpop.f32.mrb[1].mxu0 }
  0xe7   : > { %v411_v44 = vadd.f32 %v848_v42, %v982_v38  ;;  %v402_v46 = vpop.f32.mrb[1].mxu1  ;;  %v371_v47 = vadd.f32 %v982_v38, %v370_v45  ;;  %v841_v49 = vpop.f32.mrb[2].mxu0 }
  0xe8   : > { %v403_v48 = vadd.f32 %v982_v38, %v402_v46  ;;  %v849_v50 = vpop.f32.mrb[2].mxu1  ;;  %v435_v51 = vmax.f32 %v379_v43, 0.0  ;;  %v382_v53 = vadd.f32 %v841_v49, %v982_v38  ;;  %v373_v55 = vpop.f32.mrb[3].mxu0 }
  0xe9   : > { %v443_v52 = vmax.f32 %v411_v44, 0.0  ;;  %v414_v54 = vadd.f32 %v849_v50, %v982_v38  ;;  %v405_v56 = vpop.f32.mrb[3].mxu1  ;;  %v433_v57 = vmax.f32 %v371_v47, 0.0  ;;  %v374_v59 = vadd.f32 %v982_v38, %v373_v55  ;;  %v543_v42 = vpop.permute.xlu1 %542 }
  0xea   : > { %v441_v58 = vmax.f32 %v403_v48, 0.0  ;;  %v406_v60 = vadd.f32 %v982_v38, %v405_v56  ;;  %v436_v61 = vmax.f32 %v382_v53, 0.0  ;;  %v547_v3 = vmul.f32 %v478_v28, %v435_v51  ;;  %v538_v43 = vpop.permute.xlu0 %537 }
  0xeb   : > { %v444_v62 = vmax.f32 %v414_v54, 0.0  ;;  %v434_v63 = vmax.f32 %v374_v59, 0.0  ;;  %v555_v4 = vmul.f32 %v518_v40, %v443_v52  ;;  %v545_v7 = vmul.f32 %v468_v29, %v433_v57 }
  0xec   : > { %v442_v0 = vmax.f32 %v406_v60, 0.0  ;;  %v548_v5 = vmul.f32 %v483_v30, %v436_v61  ;;  %v553_v8 = vmul.f32 %v508_v37, %v441_v58 }
  0xed   : > { %v556_v6 = vmul.f32 %v523_v39, %v444_v62  ;;  %v546_v9 = vmul.f32 %v473_v31, %v434_v63  ;;  %v844_v11 = vpop.f32.mrb[4].mxu0 }
  0xee   : > { %v554_v10 = vmul.f32 %v513_v36, %v442_v0  ;;  %v852_v12 = vpop.f32.mrb[4].mxu1  ;;  %v782_v13 = vpack.c.bf16 %v548_v5, %v547_v3  ;;  %v395_v15 = vadd.f32 %v844_v11, %v982_v38  ;;  %v386_v17 = vpop.f32.mrb[5].mxu0 }
  0xef   : > { %v802_v14 = vpack.c.bf16 %v556_v6, %v555_v4  ;;  %v427_v16 = vadd.f32 %v852_v12, %v982_v38  ;;  %v418_v18 = vpop.f32.mrb[5].mxu1  ;;  %v777_v19 = vpack.c.bf16 %v546_v9, %v545_v7  ;;  %v387_v21 = vadd.f32 %v982_v38, %v386_v17  ;;  %v845_v23 = vpop.f32.mrb[6].mxu0 }
  0xf0   : > { %v797_v20 = vpack.c.bf16 %v554_v10, %v553_v8  ;;  %v419_v22 = vadd.f32 %v982_v38, %v418_v18  ;;  %v853_v24 = vpop.f32.mrb[6].mxu1  ;;  %814 = vst [vmem:[%s997_s10 + $0x8] sm:$0xff] %v782_v13   ;;  %v439_v25 = vmax.f32 %v395_v15, 0.0  ;;  %v398_v27 = vadd.f32 %v845_v23, %v982_v38  ;;  %v389_v29 = vpop.f32.mrb[7].mxu0 }
  0xf1   : > { %818 = vst [vmem:[%s997_s10 + $0x28] sm:$0xff] %v802_v14   ;;  %v447_v26 = vmax.f32 %v427_v16, 0.0  ;;  %v430_v28 = vadd.f32 %v853_v24, %v982_v38  ;;  %v421_v30 = vpop.f32.mrb[7].mxu1  ;;  %778 = vst [vmem:[%s997_s10] sm:$0xff] %v777_v19   ;;  %v437_v31 = vmax.f32 %v387_v21, 0.0  ;;  %v390_v37 = vadd.f32 %v982_v38, %v389_v29 }
  0xf2   : > { %817 = vst [vmem:[%s997_s10 + $0x20] sm:$0xff] %v797_v20   ;;  %v445_v36 = vmax.f32 %v419_v22, 0.0  ;;  %v422_v39 = vadd.f32 %v982_v38, %v421_v30  ;;  %v440_v40 = vmax.f32 %v398_v27, 0.0  ;;  %v551_v46 = vmul.f32 %v977_v35, %v439_v25 }
  0xf3   : > { %v448_v41 = vmax.f32 %v430_v28, 0.0  ;;  %v438_v44 = vmax.f32 %v390_v37, 0.0  ;;  %v559_v47 = vmul.f32 %v538_v43, %v447_v26  ;;  %v549_v50 = vmul.f32 %v973_v33, %v437_v31 }
  0xf4   : > { %v446_v45 = vmax.f32 %v422_v39, 0.0  ;;  %v552_v48 = vmul.f32 %v975_v34, %v440_v40  ;;  %v557_v51 = vmul.f32 %v528_v2, %v445_v36 }
  0xf5   : > { %v560_v49 = vmul.f32 %v543_v42, %v448_v41  ;;  %v550_v38 = vmul.f32 %v971_v32, %v438_v44 }
  0xf6   : > { %v558_v52 = vmul.f32 %v533_v1, %v446_v45  ;;  %v792_v53 = vpack.c.bf16 %v552_v48, %v551_v46 }
  0xf7   : > { %v812_v54 = vpack.c.bf16 %v560_v49, %v559_v47  ;;  %v787_v55 = vpack.c.bf16 %v550_v38, %v549_v50 }
  0xf8   : > { %v807_v56 = vpack.c.bf16 %v558_v52, %v557_v51  ;;  %816 = vst [vmem:[%s997_s10 + $0x18] sm:$0xff] %v792_v53  }
  0xf9   : > { %820 = vst [vmem:[%s997_s10 + $0x38] sm:$0xff] %v812_v54   ;;  %815 = vst [vmem:[%s997_s10 + $0x10] sm:$0xff] %v787_v55  }
  0xfa   : > { %819 = vst [vmem:[%s997_s10 + $0x30] sm:$0xff] %v807_v56  }
  0xfb PF: > { %s14_s15 = sadd.s32 1, %s888_s15  }
  0xfc   : > { %p11_p4 = scmp.ge.s32.totalorder %s14_s15, 4  }
  0xfe   :  { %13 = sbr.rel (!%p11_p4) target bundleno = 1 (0x1), region = 69 }

// kernel: forward.17
= control target key start
LH: loop header
LB: loop body
LE: loop exit
PB: predicated region body
PF: predicated region fallthrough
CT: control target
= control target key end

     0   :  { %v576_v1 = vmov 0   ;;  %vm97_vm0 = vcmask 261120   ;;  %s745_s1 = inlined_call_operand.vmem [shape: bf16[32,128], index: 1, kind: input, shape index: {}]   ;;  %s746_s0 = inlined_call_operand.vmem [shape: bf16[128,32], index: 0, kind: input, shape index: {}]   ;;  %s747_s3 = inlined_call_operand.vmem [shape: f32[128,1], index: 3, kind: input, shape index: {}]   ;;  %s748_s2 = inlined_call_operand.vmem [shape: f32[1,128], index: 2, kind: input, shape index: {}]   ;;  %s749_s4 = inlined_call_operand.vmem [shape: bf16[128,128], index: 4, kind: output, shape index: {}]  }
   0x1   :  { %v566_v0 = vld [vmem:[%s745_s1] sm:$0xff]   ;;  %565 = vset.pattern.permute.xlu1 %v576_v1  ;;  %564 = vset.pattern.permute.xlu0 %v576_v1  ;;  %v567_v2 = vld [vmem:[%s745_s1 + $0x8] sm:$0xff]   ;;  %v572_v7 = vld [vmem:[%s746_s0 + $0x10] sm:$0xff]  }
   0x2   :  { %539 = vmatprep.subr.bf16.mxu0 %v566_v0  ;;  %559 = vmatprep.subr.bf16.mxu1 %v566_v0  ;;  %v568_v3 = vld [vmem:[%s746_s0] sm:$0xff]   ;;  %v570_v5 = vld [vmem:[%s746_s0 + $0x8] sm:$0xff]   ;;  %v573_v8 = vld [vmem:[%s746_s0 + $0x30] sm:$0xff]  }
   0x3   :  { %540 = vmatpush3.bf16.msra.mxu0 %v566_v0  ;;  %561 = vmatpush3.bf16.msra.mxu1 %v566_v0  ;;  %v569_v4 = vld [vmem:[%s746_s0 + $0x20] sm:$0xff]   ;;  %v571_v6 = vld [vmem:[%s746_s0 + $0x28] sm:$0xff]   ;;  %v237_v9 = vld [vmem:[%s747_s3 + $0x10] sm:$0xff] }
   0x4   :  { %541 = vmatprep.subr.bf16.mxu0 %v567_v2  ;;  %560 = vmatprep.subr.bf16.mxu1 %v567_v2  ;;  %v235_v10 = vld [vmem:[%s747_s3] sm:$0xff]  ;;  %v238_v11 = vld [vmem:[%s747_s3 + $0x18] sm:$0xff]  ;;  %v236_v12 = vld [vmem:[%s747_s3 + $0x8] sm:$0xff] }
   0x5   :  { %543 = vmatprep.mubr.msk.bf16.mxu0 %vm97_vm0, %v568_v3  ;;  %551 = vmatprep.mubr.msk.bf16.mxu1 %vm97_vm0, %v569_v4  ;;  %v574_v13 = vld [vmem:[%s746_s0 + $0x18] sm:$0xff]   ;;  %v240_v15 = vld [vmem:[%s747_s3 + $0x28] sm:$0xff]  ;;  %v239_v16 = vld [vmem:[%s747_s3 + $0x20] sm:$0xff] }
   0x6   :  { %263 = vperm.xlu1 %565, %v237_v9   ;;  %253 = vperm.xlu0 %564, %v235_v10   ;;  %v575_v14 = vld [vmem:[%s746_s0 + $0x38] sm:$0xff]   ;;  %v241_v18 = vld [vmem:[%s747_s3 + $0x30] sm:$0xff]  ;;  %v244_v19 = vld [vmem:[%s747_s3 + $0x48] sm:$0xff] }
   0x7   :  { %542 = vmatpush3.bf16.msra.mxu0 %v567_v2  ;;  %562 = vmatpush3.bf16.msra.mxu1 %v567_v2  ;;  %v242_v17 = vld [vmem:[%s747_s3 + $0x38] sm:$0xff]  ;;  %v243_v20 = vld [vmem:[%s747_s3 + $0x40] sm:$0xff]  ;;  %v245_v22 = vld [vmem:[%s747_s3 + $0x50] sm:$0xff] }
   0x8   :  { %v246_v21 = vld [vmem:[%s747_s3 + $0x58] sm:$0xff]  ;;  %v248_v23 = vld [vmem:[%s747_s3 + $0x68] sm:$0xff]  ;;  %v247_v24 = vld [vmem:[%s747_s3 + $0x60] sm:$0xff] }
   0x9   :  { %v250_v25 = vld [vmem:[%s747_s3 + $0x78] sm:$0xff]  ;;  %v249_v26 = vld [vmem:[%s747_s3 + $0x70] sm:$0xff]  ;;  %v699_v37 = vld [vmem:[%s748_s2] ss:$0 sm:$0xff] }
   0xa   :  { %544 = vmatmul.mubr.msk.bf16.vlgmr.msra.gmra.mrb[0].mxu0 %vm97_vm0, %v570_v5  ;;  %552 = vmatmul.mubr.msk.bf16.vlgmr.msra.gmra.mrb[0].mxu1 %vm97_vm0, %v571_v6 }
   0xb   :  { %547 = vmatprep.mubr.msk.bf16.mxu0 %vm97_vm0, %v572_v7  ;;  %555 = vmatprep.mubr.msk.bf16.mxu1 %vm97_vm0, %v573_v8 }
   0xc   :  { %268 = vperm.xlu1 %565, %v238_v11   ;;  %258 = vperm.xlu0 %564, %v236_v12  }
  0x10   :  { %278 = vperm.xlu1 %565, %v240_v15   ;;  %273 = vperm.xlu0 %564, %v239_v16  }
  0x12   :  { %548 = vmatmul.mubr.msk.bf16.gmra.mrb[4].mxu0 %vm97_vm0, %v574_v13  ;;  %556 = vmatmul.mubr.msk.bf16.gmra.mrb[4].mxu1 %vm97_vm0, %v575_v14 }
  0x14   :  { %288 = vperm.xlu1 %565, %v242_v17   ;;  %283 = vperm.xlu0 %564, %v241_v18  }
  0x18   :  { %298 = vperm.xlu1 %565, %v244_v19   ;;  %293 = vperm.xlu0 %564, %v243_v20  }
  0x1c   :  { %308 = vperm.xlu1 %565, %v246_v21   ;;  %303 = vperm.xlu0 %564, %v245_v22  }
  0x20   :  { %318 = vperm.xlu1 %565, %v248_v23   ;;  %313 = vperm.xlu0 %564, %v247_v24  }
  0x24   :  { %328 = vperm.xlu1 %565, %v250_v25   ;;  %323 = vperm.xlu0 %564, %v249_v26  }
  0x85   :  { %v264_v27 = vpop.permute.xlu1 %263  ;;  %v254_v28 = vpop.permute.xlu0 %253 }
  0x8b   :  { %v269_v29 = vpop.permute.xlu1 %268  ;;  %v259_v30 = vpop.permute.xlu0 %258 }
  0x8f   :  { %v688_v31 = vpop.permute.xlu1 %278  ;;  %v690_v32 = vpop.permute.xlu0 %273 }
  0x93   :  { %v692_v33 = vpop.permute.xlu1 %288  ;;  %v694_v34 = vpop.permute.xlu0 %283 }
  0x97   :  { %v299_v35 = vpop.permute.xlu1 %298  ;;  %v294_v36 = vpop.permute.xlu0 %293 }
  0x9b   :  { %v309_v38 = vpop.permute.xlu1 %308  ;;  %v304_v39 = vpop.permute.xlu0 %303 }
  0x9f   :  { %v319_v0 = vpop.permute.xlu1 %318  ;;  %v314_v1 = vpop.permute.xlu0 %313 }
  0xdd   :  { %v545_v40 = vpop.f32.mrb[0].mxu0  ;;  %v553_v41 = vpop.f32.mrb[0].mxu1 }
  0xde   :  { %v165_v42 = vadd.f32 %v545_v40, %v699_v37  ;;  %v197_v43 = vadd.f32 %v553_v41, %v699_v37  ;;  %v156_v44 = vpop.f32.mrb[1].mxu0  ;;  %v188_v45 = vpop.f32.mrb[1].mxu1 }
  0xdf   :  { %v157_v46 = vadd.f32 %v699_v37, %v156_v44  ;;  %v189_v47 = vadd.f32 %v699_v37, %v188_v45  ;;  %v546_v48 = vpop.f32.mrb[2].mxu0  ;;  %v554_v49 = vpop.f32.mrb[2].mxu1 }
  0xe0   :  { %v221_v50 = vmax.f32 %v165_v42, 0.0  ;;  %v229_v51 = vmax.f32 %v197_v43, 0.0  ;;  %v168_v52 = vadd.f32 %v546_v48, %v699_v37  ;;  %v200_v53 = vadd.f32 %v554_v49, %v699_v37  ;;  %v159_v54 = vpop.f32.mrb[3].mxu0  ;;  %v191_v55 = vpop.f32.mrb[3].mxu1 }
  0xe1   :  { %v219_v56 = vmax.f32 %v157_v46, 0.0  ;;  %v227_v57 = vmax.f32 %v189_v47, 0.0  ;;  %v160_v58 = vadd.f32 %v699_v37, %v159_v54  ;;  %v192_v59 = vadd.f32 %v699_v37, %v191_v55  ;;  %v329_v41 = vpop.permute.xlu1 %328  ;;  %v324_v42 = vpop.permute.xlu0 %323 }
  0xe2   :  { %v222_v60 = vmax.f32 %v168_v52, 0.0  ;;  %v230_v61 = vmax.f32 %v200_v53, 0.0  ;;  %v333_v2 = vmul.f32 %v264_v27, %v221_v50  ;;  %v341_v3 = vmul.f32 %v304_v39, %v229_v51 }
  0xe3   :  { %v220_v62 = vmax.f32 %v160_v58, 0.0  ;;  %v228_v63 = vmax.f32 %v192_v59, 0.0  ;;  %v331_v6 = vmul.f32 %v254_v28, %v219_v56  ;;  %v339_v7 = vmul.f32 %v294_v36, %v227_v57 }
  0xe4   :  { %v334_v4 = vmul.f32 %v269_v29, %v222_v60  ;;  %v342_v5 = vmul.f32 %v309_v38, %v230_v61 }
  0xe5   :  { %v332_v8 = vmul.f32 %v259_v30, %v220_v62  ;;  %v340_v9 = vmul.f32 %v299_v35, %v228_v63  ;;  %v549_v10 = vpop.f32.mrb[4].mxu0  ;;  %v557_v11 = vpop.f32.mrb[4].mxu1 }
  0xe6   :  { %v490_v12 = vpack.c.bf16 %v334_v4, %v333_v2  ;;  %v510_v13 = vpack.c.bf16 %v342_v5, %v341_v3  ;;  %v181_v14 = vadd.f32 %v549_v10, %v699_v37  ;;  %v213_v15 = vadd.f32 %v557_v11, %v699_v37  ;;  %v172_v16 = vpop.f32.mrb[5].mxu0  ;;  %v204_v17 = vpop.f32.mrb[5].mxu1 }
  0xe7   :  { %v485_v18 = vpack.c.bf16 %v332_v8, %v331_v6  ;;  %v505_v19 = vpack.c.bf16 %v340_v9, %v339_v7  ;;  %v173_v20 = vadd.f32 %v699_v37, %v172_v16  ;;  %v205_v21 = vadd.f32 %v699_v37, %v204_v17  ;;  %v550_v22 = vpop.f32.mrb[6].mxu0  ;;  %v558_v23 = vpop.f32.mrb[6].mxu1 }
  0xe8   :  { %522 = vst [vmem:[%s749_s4 + $0x8] sm:$0xff] %v490_v12   ;;  %526 = vst [vmem:[%s749_s4 + $0x28] sm:$0xff] %v510_v13   ;;  %v225_v24 = vmax.f32 %v181_v14, 0.0  ;;  %v233_v25 = vmax.f32 %v213_v15, 0.0  ;;  %v184_v26 = vadd.f32 %v550_v22, %v699_v37  ;;  %v216_v27 = vadd.f32 %v558_v23, %v699_v37  ;;  %v175_v28 = vpop.f32.mrb[7].mxu0  ;;  %v207_v29 = vpop.f32.mrb[7].mxu1 }
  0xe9   :  { %486 = vst [vmem:[%s749_s4] sm:$0xff] %v485_v18   ;;  %525 = vst [vmem:[%s749_s4 + $0x20] sm:$0xff] %v505_v19   ;;  %v223_v30 = vmax.f32 %v173_v20, 0.0  ;;  %v231_v35 = vmax.f32 %v205_v21, 0.0  ;;  %v176_v36 = vadd.f32 %v699_v37, %v175_v28  ;;  %v208_v38 = vadd.f32 %v699_v37, %v207_v29 }
  0xea   :  { %v226_v39 = vmax.f32 %v184_v26, 0.0  ;;  %v234_v40 = vmax.f32 %v216_v27, 0.0  ;;  %v337_v45 = vmul.f32 %v694_v34, %v225_v24  ;;  %v345_v46 = vmul.f32 %v324_v42, %v233_v25 }
  0xeb   :  { %v224_v43 = vmax.f32 %v176_v36, 0.0  ;;  %v232_v44 = vmax.f32 %v208_v38, 0.0  ;;  %v335_v49 = vmul.f32 %v690_v32, %v223_v30  ;;  %v343_v50 = vmul.f32 %v314_v1, %v231_v35 }
  0xec   :  { %v338_v47 = vmul.f32 %v692_v33, %v226_v39  ;;  %v346_v48 = vmul.f32 %v329_v41, %v234_v40 }
  0xed   :  { %v336_v51 = vmul.f32 %v688_v31, %v224_v43  ;;  %v344_v52 = vmul.f32 %v319_v0, %v232_v44 }
  0xee   :  { %v500_v53 = vpack.c.bf16 %v338_v47, %v337_v45  ;;  %v520_v37 = vpack.c.bf16 %v346_v48, %v345_v46 }
  0xef   :  { %v495_v54 = vpack.c.bf16 %v336_v51, %v335_v49  ;;  %v515_v55 = vpack.c.bf16 %v344_v52, %v343_v50 }
  0xf0   :  { %524 = vst [vmem:[%s749_s4 + $0x18] sm:$0xff] %v500_v53   ;;  %528 = vst [vmem:[%s749_s4 + $0x38] sm:$0xff] %v520_v37  }
  0xf1   :  { %523 = vst [vmem:[%s749_s4 + $0x10] sm:$0xff] %v495_v54   ;;  %527 = vst [vmem:[%s749_s4 + $0x30] sm:$0xff] %v515_v55  }

// kernel: forward.18
= control target key start
LH: loop header
LB: loop body
LE: loop exit
PB: predicated region body
PF: predicated region fallthrough
CT: control target
= control target key end

     0   :  { %v765_v0 = vmov 0   ;;  %vm333_vm0 = vcmask 392192   ;;  %s986_s1 = inlined_call_operand.vmem [shape: bf16[432,128], index: 1, kind: input, shape index: {}]   ;;  %s987_s0 = inlined_call_operand.vmem [shape: bf16[64,432], index: 0, kind: input, shape index: {}]   ;;  %s988_s3 = inlined_call_operand.vmem [shape: f32[64,1], index: 3, kind: input, shape index: {}]   ;;  %s989_s2 = inlined_call_operand.vmem [shape: f32[1,128], index: 2, kind: input, shape index: {}]   ;;  %s990_s4 = inlined_call_operand.vmem [shape: bf16[64,128], index: 4, kind: output, shape index: {}]  }
   0x1   :  { %411 = vmatprep.subr.bf16.mxu1 %v765_v0  ;;  %v714_v1 = vld [vmem:[%s986_s1 + $0x80] sm:$0xff]   ;;  %712 = vset.pattern.permute.xlu0 %v765_v0  ;;  %v717_v4 = vld [vmem:[%s986_s1 + $0x88] sm:$0xff]   ;;  %v720_v7 = vld [vmem:[%s986_s1 + $0x90] sm:$0xff]  }
   0x2   :  { %v715_v2 = vld [vmem:[%s986_s1 + $0x40] sm:$0xff]   ;;  %713 = vset.pattern.permute.xlu1 %v765_v0  ;;  %412 = vmatpush1.bf16.msra.mxu1 %v714_v1  ;;  %v718_v5 = vld [vmem:[%s986_s1 + $0x48] sm:$0xff]   ;;  %v721_v8 = vld [vmem:[%s986_s1 + $0x50] sm:$0xff]  }
   0x3   :  { %v716_v3 = vld [vmem:[%s986_s1] sm:$0xff]   ;;  %671 = vmatprep.subr.bf16.mxu0 %v715_v2  ;;  %413 = vmatprep.subr.bf16.mxu1 %v765_v0  ;;  %v719_v6 = vld [vmem:[%s986_s1 + $0x8] sm:$0xff]   ;;  %v722_v9 = vld [vmem:[%s986_s1 + $0x10] sm:$0xff]  }
   0x4   :  { %672 = vmatpush3.bf16.msra.mxu0 %v716_v3  ;;  %v723_v10 = vld [vmem:[%s986_s1 + $0x98] sm:$0xff]   ;;  %v727_v13 = vld [vmem:[%s986_s1 + $0x60] sm:$0xff]   ;;  %v730_v16 = vld [vmem:[%s986_s1 + $0x68] sm:$0xff]  }
   0x5   :  { %673 = vmatprep.subr.bf16.mxu0 %v718_v5  ;;  %v724_v11 = vld [vmem:[%s986_s1 + $0x58] sm:$0xff]   ;;  %v726_v14 = vld [vmem:[%s986_s1 + $0xa0] sm:$0xff]   ;;  %v729_v17 = vld [vmem:[%s986_s1 + $0xa8] sm:$0xff]  }
   0x6   :  { %414 = vmatpush1.bf16.msra.mxu1 %v717_v4  ;;  %v725_v12 = vld [vmem:[%s986_s1 + $0x18] sm:$0xff]   ;;  %v728_v15 = vld [vmem:[%s986_s1 + $0x20] sm:$0xff]   ;;  %v731_v18 = vld [vmem:[%s986_s1 + $0x28] sm:$0xff]  }
   0x7   :  { %415 = vmatprep.subr.bf16.mxu1 %v765_v0  ;;  %v733_v19 = vld [vmem:[%s986_s1 + $0x70] sm:$0xff]   ;;  %v735_v22 = vld [vmem:[%s986_s1 + $0xb8] sm:$0xff]   ;;  %v738_v26 = vld [vmem:[%s986_s1 + $0xc0] sm:$0xff]  }
   0x8   :  { %674 = vmatpush3.bf16.msra.mxu0 %v719_v6  ;;  %v732_v20 = vld [vmem:[%s986_s1 + $0xb0] sm:$0xff]   ;;  %v736_v23 = vld [vmem:[%s986_s1 + $0x78] sm:$0xff]   ;;  %v742_v30 = vld [vmem:[%s986_s1 + $0xc8] sm:$0xff]  }
   0x9   :  { %675 = vmatprep.subr.bf16.mxu0 %v721_v8  ;;  %v734_v21 = vld [vmem:[%s986_s1 + $0x30] sm:$0xff]   ;;  %v737_v25 = vld [vmem:[%s986_s1 + $0x38] sm:$0xff]   ;;  %v484_v31 = vld [vmem:[%s988_s3] sm:$0xff] }
   0xa   :  { %416 = vmatpush1.bf16.msra.mxu1 %v720_v7  ;;  %v741_v24 = vld [vmem:[%s987_s0 + $0x4] ss:$16 sps:$4 sm:$0xff]   ;;  %v748_v27 = vld [vmem:[%s987_s0 + $0xc] ss:$16 sps:$4 sm:$0xff]   ;;  %v739_v28 = vld [vmem:[%s987_s0] ss:$16 sps:$4 sm:$0xff]   ;;  %494 = vperm.xlu0 %712, %v484_v31  }
   0xb   :  { %417 = vmatprep.subr.bf16.mxu1 %v765_v0  ;;  %378 = vmatprep.mubr.bf16.mxu0 %v741_v24  ;;  %v744_v29 = vld [vmem:[%s987_s0 + $0x24] ss:$16 sps:$4 sm:$0xff]   ;;  %v749_v34 = vld [vmem:[%s987_s0 + $0x20] ss:$16 sps:$4 sm:$0xff]   ;;  %v485_v35 = vld [vmem:[%s988_s3 + $0x8] sm:$0xff] }
   0xc   :  { %676 = vmatpush3.bf16.msra.mxu0 %v722_v9  ;;  %628 = vmatprep.mubr.msk.bf16.mxu1 %vm333_vm0, %v748_v27  ;;  %v743_v32 = vld [vmem:[%s986_s1 + $0xd0] sm:$0xff]   ;;  %v487_v37 = vld [vmem:[%s988_s3 + $0x18] sm:$0xff]  ;;  %v488_v40 = vld [vmem:[%s988_s3 + $0x20] sm:$0xff] }
   0xd   :  { %677 = vmatprep.subr.bf16.mxu0 %v724_v11  ;;  %v486_v33 = vld [vmem:[%s988_s3 + $0x10] sm:$0xff]  ;;  %v746_v38 = vld [vmem:[%s987_s0 + $0x8] ss:$16 sps:$4 sm:$0xff]   ;;  %v752_v39 = vld [vmem:[%s987_s0 + $0x2c] ss:$16 sps:$4 sm:$0xff]  }
   0xe   :  { %418 = vmatpush1.bf16.msra.mxu1 %v723_v10  ;;  %504 = vperm.xlu1 %713, %v486_v33   ;;  %v750_v36 = vld [vmem:[%s987_s0 + $0x44] ss:$16 sps:$4 sm:$0xff]   ;;  %v489_v41 = vld [vmem:[%s988_s3 + $0x28] sm:$0xff]  ;;  %v754_v42 = vld [vmem:[%s987_s0 + $0x40] ss:$16 sps:$4 sm:$0xff]  }
   0xf   :  { %419 = vmatprep.subr.bf16.mxu1 %v765_v0  ;;  %499 = vperm.xlu0 %712, %v485_v35   ;;  %v490_v43 = vld [vmem:[%s988_s3 + $0x30] sm:$0xff]  ;;  %v491_v45 = vld [vmem:[%s988_s3 + $0x38] sm:$0xff]  ;;  %v964_v58 = vld [vmem:[%s989_s2] ss:$0 sm:$0xff] }
  0x10   :  { %678 = vmatpush3.bf16.msra.mxu0 %v725_v12  ;;  %v756_v44 = vld [vmem:[%s987_s0 + $0x64] ss:$16 sps:$4 sm:$0xff]   ;;  %v755_v46 = vld [vmem:[%s987_s0 + $0x28] ss:$16 sps:$4 sm:$0xff]   ;;  %v758_v47 = vld [vmem:[%s987_s0 + $0x4c] ss:$16 sps:$4 sm:$0xff]  }
  0x11   :  { %679 = vmatprep.subr.bf16.mxu0 %v727_v13  ;;  %v760_v48 = vld [vmem:[%s987_s0 + $0x60] ss:$16 sps:$4 sm:$0xff]   ;;  %v761_v49 = vld [vmem:[%s987_s0 + $0x48] ss:$16 sps:$4 sm:$0xff]   ;;  %v762_v50 = vld [vmem:[%s987_s0 + $0x6c] ss:$16 sps:$4 sm:$0xff]  }
  0x12   :  { %420 = vmatpush1.bf16.msra.mxu1 %v726_v14  ;;  %509 = vperm.xlu1 %713, %v487_v37   ;;  %v764_v51 = vld [vmem:[%s987_s0 + $0x68] ss:$16 sps:$4 sm:$0xff]  }
  0x13   :  { %421 = vmatprep.subr.bf16.mxu1 %v765_v0  ;;  %514 = vperm.xlu0 %712, %v488_v40  }
  0x14   :  { %680 = vmatpush3.bf16.msra.mxu0 %v728_v15 }
  0x15   :  { %681 = vmatprep.subr.bf16.mxu0 %v730_v16 }
  0x16   :  { %422 = vmatpush1.bf16.msra.mxu1 %v729_v17  ;;  %519 = vperm.xlu1 %713, %v489_v41  }
  0x17   :  { %423 = vmatprep.subr.bf16.mxu1 %v765_v0  ;;  %524 = vperm.xlu0 %712, %v490_v43  }
  0x18   :  { %682 = vmatpush3.bf16.msra.mxu0 %v731_v18 }
  0x19   :  { %683 = vmatprep.subr.bf16.mxu0 %v733_v19 }
  0x1a   :  { %424 = vmatpush1.bf16.msra.mxu1 %v732_v20  ;;  %529 = vperm.xlu1 %713, %v491_v45  }
  0x1b   :  { %425 = vmatprep.subr.bf16.mxu1 %v765_v0 }
  0x1c   :  { %684 = vmatpush3.bf16.msra.mxu0 %v734_v21 }
  0x1d   :  { %685 = vmatprep.subr.bf16.mxu0 %v736_v23 }
  0x1e   :  { %426 = vmatpush1.bf16.msra.mxu1 %v735_v22 }
  0x1f   :  { %427 = vmatprep.subr.bf16.mxu1 %v765_v0 }
  0x20   :  { %686 = vmatpush3.bf16.msra.mxu0 %v737_v25 }
  0x22   :  { %428 = vmatpush1.bf16.msra.mxu1 %v738_v26 }
  0x23   :  { %379 = vmatmul.mubr.bf16.vlgmr.msra.gmra.mrb[0].mxu0 %v739_v28  ;;  %429 = vmatprep.subr.bf16.mxu1 %v765_v0 }
  0x24   :  { %386 = vmatprep.mubr.bf16.mxu0 %v744_v29 }
  0x26   :  { %430 = vmatpush1.bf16.msra.mxu1 %v742_v30 }
  0x27   :  { %431 = vmatprep.subr.bf16.mxu1 %v765_v0 }
  0x2a   :  { %432 = vmatpush1.bf16.msra.mxu1 %v743_v32 }
  0x2b   :  { %387 = vmatmul.mubr.bf16.gmra.mrb[4].mxu0 %v749_v34 }
  0x2c   :  { %394 = vmatprep.mubr.bf16.mxu0 %v750_v36 }
  0x2d   :  { %444 = vmatmul.mubr.bf16.vlgmr.msra.gmra.mrb[0].mxu1 %v746_v38 }
  0x2e   :  { %629 = vmatprep.mubr.msk.bf16.mxu1 %vm333_vm0, %v752_v39 }
  0x33   :  { %395 = vmatmul.mubr.bf16.gmra.mrb[8].mxu0 %v754_v42 }
  0x34   :  { %402 = vmatprep.mubr.bf16.mxu0 %v756_v44 }
  0x35   :  { %452 = vmatmul.mubr.bf16.gmra.mrb[4].mxu1 %v755_v46 }
  0x36   :  { %630 = vmatprep.mubr.msk.bf16.mxu1 %vm333_vm0, %v758_v47 }
  0x3b   :  { %403 = vmatmul.mubr.bf16.gmra.mrb[12].mxu0 %v760_v48 }
  0x3d   :  { %460 = vmatmul.mubr.bf16.gmra.mrb[8].mxu1 %v761_v49 }
  0x3e   :  { %631 = vmatprep.mubr.msk.bf16.mxu1 %vm333_vm0, %v762_v50 }
  0x45   :  { %468 = vmatmul.mubr.bf16.gmra.mrb[12].mxu1 %v764_v51 }
  0x89   :  { %v495_v61 = vpop.permute.xlu0 %494 }
  0x8d   :  { %v505_v16 = vpop.permute.xlu1 %504 }
  0x8e   :  { %v500_v11 = vpop.permute.xlu0 %499 }
  0x91   :  { %v510_v34 = vpop.permute.xlu1 %509 }
  0xf6   :  { %v687_v52 = vpop.f32.mrb[0].mxu0 }
  0xf7   :  { %v688_v53 = vpop.f32.mrb[1].mxu0 }
  0xf8   :  { %v689_v54 = vadd.f32 %v688_v53, %v687_v52  ;;  %v690_v55 = vpop.f32.mrb[2].mxu0 }
  0xf9   :  { %v691_v56 = vpop.f32.mrb[3].mxu0 }
  0xfa   :  { %v692_v57 = vadd.f32 %v691_v56, %v690_v55  ;;  %v381_v59 = vadd.f32 %v689_v54, %v964_v58  ;;  %v520_v54 = vpop.permute.xlu1 %519  ;;  %v515_v55 = vpop.permute.xlu0 %514 }
  0xfc   :  { %v384_v4 = vadd.f32 %v692_v57, %v964_v58 }
  0xfe   :  { %v693_v60 = vpop.f32.mrb[4].mxu0 }
  0xff   :  { %v694_v62 = vpop.f32.mrb[5].mxu0 }
 0x100   :  { %v445_v63 = vpop.f32.mrb[0].mxu1  ;;  %v695_v0 = vadd.f32 %v694_v62, %v693_v60  ;;  %v696_v1 = vpop.f32.mrb[6].mxu0 }
 0x101   :  { %v446_v2 = vadd.f32 %v445_v63, %v381_v59  ;;  %v447_v3 = vpop.f32.mrb[1].mxu1  ;;  %v697_v5 = vpop.f32.mrb[7].mxu0 }
 0x102   :  { %v448_v6 = vpop.f32.mrb[2].mxu1  ;;  %v698_v7 = vadd.f32 %v697_v5, %v696_v1  ;;  %v389_v13 = vadd.f32 %v695_v0, %v964_v58  ;;  %v530_v5 = vpop.permute.xlu1 %529 }
 0x103   :  { %v476_v8 = vmax.f32 %v446_v2, 0.0  ;;  %v449_v9 = vadd.f32 %v448_v6, %v384_v4  ;;  %v450_v10 = vpop.f32.mrb[3].mxu1  ;;  %v525_v6 = vpop.permute.xlu0 %524 }
 0x104   :  { %v392_v25 = vadd.f32 %v698_v7, %v964_v58 }
 0x105   :  { %v477_v12 = vmax.f32 %v449_v9, 0.0  ;;  %v532_v15 = vmul.f32 %v495_v61, %v476_v8 }
 0x106   :  { %v699_v14 = vpop.f32.mrb[8].mxu0 }
 0x107   :  { %v533_v17 = vmul.f32 %v500_v11, %v477_v12  ;;  %v700_v18 = vpop.f32.mrb[9].mxu0 }
 0x108   :  { %v453_v19 = vpop.f32.mrb[4].mxu1  ;;  %v701_v20 = vadd.f32 %v700_v18, %v699_v14  ;;  %v702_v21 = vpop.f32.mrb[10].mxu0 }
 0x109   :  { %v651_v22 = vpack.c.bf16 %v533_v17, %v532_v15  ;;  %v454_v23 = vadd.f32 %v453_v19, %v389_v13  ;;  %v455_v24 = vpop.f32.mrb[5].mxu1  ;;  %v703_v26 = vpop.f32.mrb[11].mxu0 }
 0x10a   :  { %v456_v27 = vpop.f32.mrb[6].mxu1  ;;  %v704_v28 = vadd.f32 %v703_v26, %v702_v21  ;;  %v397_v33 = vadd.f32 %v701_v20, %v964_v58 }
 0x10b   :  { %652 = vst [vmem:[%s990_s4] sm:$0xff] %v651_v22   ;;  %v478_v29 = vmax.f32 %v454_v23, 0.0  ;;  %v457_v30 = vadd.f32 %v456_v27, %v392_v25  ;;  %v458_v31 = vpop.f32.mrb[7].mxu1 }
 0x10c   :  { %v400_v45 = vadd.f32 %v704_v28, %v964_v58 }
 0x10d   :  { %v479_v32 = vmax.f32 %v457_v30, 0.0  ;;  %v534_v36 = vmul.f32 %v505_v16, %v478_v29 }
 0x10e   :  { %v705_v35 = vpop.f32.mrb[12].mxu0 }
 0x10f   :  { %v535_v37 = vmul.f32 %v510_v34, %v479_v32  ;;  %v706_v38 = vpop.f32.mrb[13].mxu0 }
 0x110   :  { %v461_v39 = vpop.f32.mrb[8].mxu1  ;;  %v707_v40 = vadd.f32 %v706_v38, %v705_v35  ;;  %v708_v41 = vpop.f32.mrb[14].mxu0 }
 0x111   :  { %v656_v42 = vpack.c.bf16 %v535_v37, %v534_v36  ;;  %v462_v43 = vadd.f32 %v461_v39, %v397_v33  ;;  %v463_v44 = vpop.f32.mrb[9].mxu1  ;;  %v709_v46 = vpop.f32.mrb[15].mxu0 }
 0x112   :  { %v464_v47 = vpop.f32.mrb[10].mxu1  ;;  %v710_v48 = vadd.f32 %v709_v46, %v708_v41  ;;  %v405_v53 = vadd.f32 %v707_v40, %v964_v58 }
 0x113   :  { %668 = vst [vmem:[%s990_s4 + $0x8] sm:$0xff] %v656_v42   ;;  %v480_v49 = vmax.f32 %v462_v43, 0.0  ;;  %v465_v50 = vadd.f32 %v464_v47, %v400_v45  ;;  %v466_v51 = vpop.f32.mrb[11].mxu1 }
 0x114   :  { %v408_v63 = vadd.f32 %v710_v48, %v964_v58 }
 0x115   :  { %v481_v52 = vmax.f32 %v465_v50, 0.0  ;;  %v536_v56 = vmul.f32 %v515_v55, %v480_v49 }
 0x117   :  { %v537_v57 = vmul.f32 %v520_v54, %v481_v52 }
 0x118   :  { %v469_v59 = vpop.f32.mrb[12].mxu1 }
 0x119   :  { %v661_v60 = vpack.c.bf16 %v537_v57, %v536_v56  ;;  %v470_v61 = vadd.f32 %v469_v59, %v405_v53  ;;  %v471_v62 = vpop.f32.mrb[13].mxu1 }
 0x11a   :  { %v472_v0 = vpop.f32.mrb[14].mxu1 }
 0x11b   :  { %669 = vst [vmem:[%s990_s4 + $0x10] sm:$0xff] %v661_v60   ;;  %v482_v1 = vmax.f32 %v470_v61, 0.0  ;;  %v473_v2 = vadd.f32 %v472_v0, %v408_v63  ;;  %v474_v3 = vpop.f32.mrb[15].mxu1 }
 0x11d   :  { %v483_v4 = vmax.f32 %v473_v2, 0.0  ;;  %v538_v7 = vmul.f32 %v525_v6, %v482_v1 }
 0x11f   :  { %v539_v8 = vmul.f32 %v530_v5, %v483_v4 }
 0x121   :  { %v666_v9 = vpack.c.bf16 %v539_v8, %v538_v7 }
 0x123   :  { %670 = vst [vmem:[%s990_s4 + $0x18] sm:$0xff] %v666_v9  }

// kernel: forward.20
= control target key start
LH: loop header
LB: loop body
LE: loop exit
PB: predicated region body
PF: predicated region fallthrough
CT: control target
= control target key end

     0   :  { %v212_v1 = vmov 0   ;;  %vm55_vm0 = vcmask 261120   ;;  %s273_s1 = inlined_call_operand.vmem [shape: bf16[32,128], index: 1, kind: input, shape index: {}]   ;;  %s274_s0 = inlined_call_operand.vmem [shape: bf16[32,32], index: 0, kind: input, shape index: {}]   ;;  %s275_s3 = inlined_call_operand.vmem [shape: f32[32,1], index: 3, kind: input, shape index: {}]   ;;  %s276_s2 = inlined_call_operand.vmem [shape: f32[1,128], index: 2, kind: input, shape index: {}]   ;;  %s277_s4 = inlined_call_operand.vmem [shape: bf16[32,128], index: 4, kind: output, shape index: {}]  }
   0x1   :  { %v208_v0 = vld [vmem:[%s273_s1] sm:$0xff]   ;;  %207 = vset.pattern.permute.xlu1 %v212_v1  ;;  %206 = vset.pattern.permute.xlu0 %v212_v1  ;;  %v209_v2 = vld [vmem:[%s273_s1 + $0x8] sm:$0xff]   ;;  %v117_v4 = vld [vmem:[%s275_s3 + $0x10] sm:$0xff] }
   0x2   :  { %197 = vmatprep.subr.bf16.mxu0 %v208_v0  ;;  %v210_v3 = vld [vmem:[%s274_s0] sm:$0xff]   ;;  %131 = vperm.xlu1 %207, %v117_v4   ;;  %v211_v6 = vld [vmem:[%s274_s0 + $0x8] sm:$0xff]   ;;  %v118_v7 = vld [vmem:[%s275_s3 + $0x18] sm:$0xff] }
   0x3   :  { %198 = vmatpush3.bf16.msra.mxu0 %v208_v0  ;;  %201 = vmatprep.mubr.msk.bf16.mxu0 %vm55_vm0, %v210_v3  ;;  %v115_v5 = vld [vmem:[%s275_s3] sm:$0xff]  ;;  %v116_v8 = vld [vmem:[%s275_s3 + $0x8] sm:$0xff] }
   0x4   :  { %199 = vmatprep.subr.bf16.mxu0 %v209_v2  ;;  %121 = vperm.xlu0 %206, %v115_v5   ;;  %v167_v9 = vld [vmem:[%s276_s2] ss:$0 sm:$0xff] }
   0x6   :  { %136 = vperm.xlu1 %207, %v118_v7  }
   0x7   :  { %200 = vmatpush3.bf16.msra.mxu0 %v209_v2 }
   0x8   :  { %126 = vperm.xlu0 %206, %v116_v8  }
   0xa   :  { %202 = vmatmul.mubr.msk.bf16.vlgmr.msra.gmra.mrb[0].mxu0 %vm55_vm0, %v211_v6 }
  0x81   :  { %v132_v10 = vpop.permute.xlu1 %131 }
  0x83   :  { %v122_v12 = vpop.permute.xlu0 %121 }
  0x85   :  { %v137_v23 = vpop.permute.xlu1 %136 }
  0x87   :  { %v127_v27 = vpop.permute.xlu0 %126 }
  0xdd   :  { %v203_v11 = vpop.f32.mrb[0].mxu0 }
  0xde   :  { %v105_v13 = vadd.f32 %v203_v11, %v167_v9  ;;  %v96_v14 = vpop.f32.mrb[1].mxu0 }
  0xdf   :  { %v97_v15 = vadd.f32 %v167_v9, %v96_v14  ;;  %v204_v16 = vpop.f32.mrb[2].mxu0 }
  0xe0   :  { %v113_v17 = vmax.f32 %v105_v13, 0.0  ;;  %v108_v18 = vadd.f32 %v204_v16, %v167_v9  ;;  %v99_v19 = vpop.f32.mrb[3].mxu0 }
  0xe1   :  { %v111_v20 = vmax.f32 %v97_v15, 0.0  ;;  %v100_v21 = vadd.f32 %v167_v9, %v99_v19 }
  0xe2   :  { %v114_v22 = vmax.f32 %v108_v18, 0.0  ;;  %v141_v25 = vmul.f32 %v132_v10, %v113_v17 }
  0xe3   :  { %v112_v24 = vmax.f32 %v100_v21, 0.0  ;;  %v139_v28 = vmul.f32 %v122_v12, %v111_v20 }
  0xe4   :  { %v142_v26 = vmul.f32 %v137_v23, %v114_v22 }
  0xe5   :  { %v140_v29 = vmul.f32 %v127_v27, %v112_v24 }
  0xe6   :  { %v190_v30 = vpack.c.bf16 %v142_v26, %v141_v25 }
  0xe7   :  { %v185_v31 = vpack.c.bf16 %v140_v29, %v139_v28 }
  0xe8   :  { %192 = vst [vmem:[%s277_s4 + $0x8] sm:$0xff] %v190_v30  }
  0xe9   :  { %186 = vst [vmem:[%s277_s4] sm:$0xff] %v185_v31  }

// kernel: forward.21
= control target key start
LH: loop header
LB: loop body
LE: loop exit
PB: predicated region body
PF: predicated region fallthrough
CT: control target
= control target key end

     0   :  { %vm44_vm0 = vcmask 130048   ;;  %s203_s1 = inlined_call_operand.vmem [shape: bf16[16,128], index: 1, kind: input, shape index: {}]   ;;  %s204_s0 = inlined_call_operand.vmem [shape: bf16[32,16], index: 0, kind: input, shape index: {}]   ;;  %s205_s2 = inlined_call_operand.vmem [shape: f32[1,128], index: 2, kind: input, shape index: {}]   ;;  %s206_s3 = inlined_call_operand.vmem [shape: bf16[32,128], index: 3, kind: output, shape index: {}]  }
   0x1   :  { %v162_v0 = vld [vmem:[%s203_s1] sm:$0xff]   ;;  %v164_v2 = vld [vmem:[%s204_s0 + $0x8] sm:$0xff]  }
   0x2   :  { %v163_v1 = vld [vmem:[%s204_s0] sm:$0xff]   ;;  %156 = vmatprep.subr.bf16.mxu0 %v162_v0 }
   0x3   :  { %157 = vmatpush3.bf16.msra.mxu0 %v162_v0  ;;  %158 = vmatprep.mubr.msk.bf16.mxu0 %vm44_vm0, %v163_v1  ;;  %v128_v3 = vld [vmem:[%s205_s2] ss:$0 sm:$0xff] }
   0x6   :  { %159 = vmatmul.mubr.msk.bf16.vlgmr.msra.gmra.mrb[0].mxu0 %vm44_vm0, %v164_v2 }
  0xd9   :  { %v160_v4 = vpop.f32.mrb[0].mxu0 }
  0xda   :  { %v94_v5 = vadd.f32 %v160_v4, %v128_v3  ;;  %v85_v6 = vpop.f32.mrb[1].mxu0 }
  0xdb   :  { %v86_v7 = vadd.f32 %v128_v3, %v85_v6  ;;  %v161_v8 = vpop.f32.mrb[2].mxu0 }
  0xdc   :  { %v97_v9 = vadd.f32 %v161_v8, %v128_v3  ;;  %v88_v10 = vpop.f32.mrb[3].mxu0  ;;  %v102_v12 = vmax.f32 %v94_v5, 0.0 }
  0xdd   :  { %v89_v11 = vadd.f32 %v128_v3, %v88_v10  ;;  %v100_v14 = vmax.f32 %v86_v7, 0.0 }
  0xde   :  { %v103_v13 = vmax.f32 %v97_v9, 0.0 }
  0xdf   :  { %v101_v15 = vmax.f32 %v89_v11, 0.0 }
  0xe0   :  { %v150_v16 = vpack.c.bf16 %v103_v13, %v102_v12 }
  0xe1   :  { %v145_v17 = vpack.c.bf16 %v101_v15, %v100_v14 }
  0xe2   :  { %152 = vst [vmem:[%s206_s3 + $0x8] sm:$0xff] %v150_v16  }
  0xe3   :  { %146 = vst [vmem:[%s206_s3] sm:$0xff] %v145_v17  }

// kernel: forward.22
= control target key start
LH: loop header
LB: loop body
LE: loop exit
PB: predicated region body
PF: predicated region fallthrough
CT: control target
= control target key end

     0   :  { %v395_v1 = vmov 0.0   ;;  %vm396_vm0 = vmmov 0   ;;  %v397_v3 = vmov 0   ;;  %vm188_vm1 = vcmask 261120   ;;  %s498_s1 = inlined_call_operand.vmem [shape: bf16[288,128], index: 1, kind: input, shape index: {}]   ;;  %s499_s0 = inlined_call_operand.vmem [shape: bf16[16,288], index: 0, kind: input, shape index: {}]   ;;  %s500_s3 = inlined_call_operand.vmem [shape: f32[16,1], index: 3, kind: input, shape index: {}]   ;;  %s501_s2 = inlined_call_operand.vmem [shape: f32[1,128], index: 2, kind: input, shape index: {}]   ;;  %s502_s4 = inlined_call_operand.vmem [shape: bf16[16,128], index: 4, kind: output, shape index: {}]  }
   0x1   :  { %v373_v0 = vld [vmem:[%s498_s1 + $0x40] sm:$0xff]   ;;  %361 = vmatprep.subr.bf16.mxu1 %v395_v1  ;;  %365 = vmatprep.mubr.msk.bf16.mxu1 %vm396_vm0, %v395_v1  ;;  %v375_v4 = vld [vmem:[%s498_s1 + $0x48] sm:$0xff]   ;;  %v377_v6 = vld [vmem:[%s498_s1 + $0x50] sm:$0xff]  }
   0x2   :  { %v374_v2 = vld [vmem:[%s498_s1] sm:$0xff]   ;;  %372 = vset.pattern.permute.xlu0 %v397_v3  ;;  %336 = vmatprep.subr.bf16.mxu0 %v373_v0  ;;  %v376_v5 = vld [vmem:[%s498_s1 + $0x8] sm:$0xff]   ;;  %v378_v7 = vld [vmem:[%s498_s1 + $0x10] sm:$0xff]  }
   0x3   :  { %337 = vmatpush3.bf16.msra.mxu0 %v374_v2  ;;  %v379_v8 = vld [vmem:[%s498_s1 + $0x58] sm:$0xff]   ;;  %v381_v10 = vld [vmem:[%s498_s1 + $0x60] sm:$0xff]   ;;  %v383_v13 = vld [vmem:[%s498_s1 + $0x68] sm:$0xff]  }
   0x4   :  { %338 = vmatprep.subr.bf16.mxu0 %v375_v4  ;;  %v380_v9 = vld [vmem:[%s498_s1 + $0x18] sm:$0xff]   ;;  %v387_v11 = vld [vmem:[%s498_s1 + $0x80] sm:$0xff]   ;;  %v384_v14 = vld [vmem:[%s498_s1 + $0x28] sm:$0xff]  }
   0x5   :  { %v382_v12 = vld [vmem:[%s498_s1 + $0x20] sm:$0xff]   ;;  %362 = vmatpush3.bf16.msra.mxu1 %v387_v11  ;;  %v393_v16 = vld [vmem:[%s498_s1 + $0x88] sm:$0xff]   ;;  %v385_v17 = vld [vmem:[%s498_s1 + $0x70] sm:$0xff]  }
   0x6   :  { %363 = vmatprep.subr.bf16.mxu1 %v395_v1  ;;  %v392_v15 = vld [vmem:[%s499_s0 + $0x4] ss:$12 sps:$4 sm:$0xff]   ;;  %v394_v18 = vld [vmem:[%s499_s0 + $0x8] ss:$12 sps:$4 sm:$0xff]   ;;  %v388_v22 = vld [vmem:[%s498_s1 + $0x78] sm:$0xff]  }
   0x7   :  { %339 = vmatpush3.bf16.msra.mxu0 %v376_v5  ;;  %224 = vmatprep.mubr.bf16.mxu0 %v392_v15  ;;  %v276_v19 = vld [vmem:[%s500_s3] sm:$0xff]  ;;  %v277_v20 = vld [vmem:[%s500_s3 + $0x8] sm:$0xff]  ;;  %v386_v21 = vld [vmem:[%s498_s1 + $0x30] sm:$0xff]  }
   0x8   :  { %340 = vmatprep.subr.bf16.mxu0 %v377_v6  ;;  %280 = vperm.xlu0 %372, %v276_v19   ;;  %v389_v23 = vld [vmem:[%s498_s1 + $0x38] sm:$0xff]   ;;  %v390_v24 = vld [vmem:[%s499_s0] ss:$12 sps:$4 sm:$0xff]  }
   0x9   :  { %364 = vmatpush3.bf16.msra.mxu1 %v393_v16  ;;  %v304_v31 = vld [vmem:[%s501_s2] ss:$0 sm:$0xff] }
   0xb   :  { %341 = vmatpush3.bf16.msra.mxu0 %v378_v7 }
   0xc   :  { %342 = vmatprep.subr.bf16.mxu0 %v379_v8  ;;  %366 = vmatmul.mubr.msk.bf16.vlgmr.msra.gmra.mrb[0].mxu1 %vm188_vm1, %v394_v18 }
   0xd   :  { %285 = vperm.xlu0 %372, %v277_v20  }
   0xf   :  { %343 = vmatpush3.bf16.msra.mxu0 %v380_v9 }
  0x10   :  { %344 = vmatprep.subr.bf16.mxu0 %v381_v10 }
  0x13   :  { %345 = vmatpush3.bf16.msra.mxu0 %v382_v12 }
  0x14   :  { %346 = vmatprep.subr.bf16.mxu0 %v383_v13 }
  0x17   :  { %347 = vmatpush3.bf16.msra.mxu0 %v384_v14 }
  0x18   :  { %348 = vmatprep.subr.bf16.mxu0 %v385_v17 }
  0x1b   :  { %349 = vmatpush3.bf16.msra.mxu0 %v386_v21 }
  0x1c   :  { %350 = vmatprep.subr.bf16.mxu0 %v388_v22 }
  0x1f   :  { %351 = vmatpush3.bf16.msra.mxu0 %v389_v23 }
  0x22   :  { %225 = vmatmul.mubr.bf16.vlgmr.msra.gmra.mrb[0].mxu0 %v390_v24 }
  0x87   :  { %v281_v37 = vpop.permute.xlu0 %280 }
  0x8c   :  { %v286_v43 = vpop.permute.xlu0 %285 }
  0xdf   :  { %v267_v25 = vpop.f32.mrb[0].mxu1 }
  0xe0   :  { %v367_v26 = vpop.f32.mrb[1].mxu1 }
  0xe1   :  { %v270_v27 = vpop.f32.mrb[2].mxu1 }
  0xe2   :  { %v368_v28 = vpop.f32.mrb[3].mxu1 }
  0xf5   :  { %v352_v29 = vpop.f32.mrb[0].mxu0 }
  0xf6   :  { %v353_v30 = vpop.f32.mrb[1].mxu0 }
  0xf7   :  { %v354_v32 = vadd.f32 %v353_v30, %v352_v29  ;;  %v355_v33 = vpop.f32.mrb[2].mxu0 }
  0xf8   :  { %v356_v34 = vpop.f32.mrb[3].mxu0 }
  0xf9   :  { %v227_v35 = vadd.f32 %v354_v32, %v304_v31  ;;  %v357_v36 = vadd.f32 %v356_v34, %v355_v33 }
  0xfb   :  { %v268_v38 = vadd.f32 %v267_v25, %v227_v35  ;;  %v230_v39 = vadd.f32 %v357_v36, %v304_v31 }
  0xfd   :  { %v274_v40 = vmax.f32 %v268_v38, 0.0  ;;  %v271_v41 = vadd.f32 %v270_v27, %v230_v39 }
  0xff   :  { %v275_v42 = vmax.f32 %v271_v41, 0.0  ;;  %v288_v44 = vmul.f32 %v281_v37, %v274_v40 }
 0x101   :  { %v289_v45 = vmul.f32 %v286_v43, %v275_v42 }
 0x103   :  { %v334_v46 = vpack.c.bf16 %v289_v45, %v288_v44 }
 0x105   :  { %335 = vst [vmem:[%s502_s4] sm:$0xff] %v334_v46  }

// kernel: forward.24
= control target key start
LH: loop header
LB: loop body
LE: loop exit
PB: predicated region body
PF: predicated region fallthrough
CT: control target
= control target key end

     0   :  { %v145_v1 = vmov 0   ;;  %vm58_vm0 = vcmask 261120   ;;  %v23_v6 = vlaneseq  ;;  %s190_s1 = inlined_call_operand.vmem [shape: bf16[32,256], index: 1, kind: input, shape index: {}]   ;;  %s191_s0 = inlined_call_operand.vmem [shape: bf16[16,32], index: 0, kind: input, shape index: {}]   ;;  %s192_s2 = inlined_call_operand.vmem [shape: f32[1,256], index: 2, kind: input, shape index: {}]   ;;  %s193_s3 = inlined_call_operand.vmem [shape: bf16[16,256], index: 3, kind: output, shape index: {}]  }
   0x1   :  { %v138_v0 = vld [vmem:[%s190_s1 + $0x4] ss:$8 sps:$4 sm:$0xff]   ;;  %94 = vmatprep.mubr.bf16.mxu0 %v145_v1  ;;  %v140_v2 = vld [vmem:[%s190_s1] ss:$8 sps:$4 sm:$0xff]   ;;  %v141_v3 = vld [vmem:[%s190_s1 + $0x14] ss:$8 sps:$4 sm:$0xff]  }
   0x2   :  { %62 = vmatprep.subr.bf16.mxu0 %v138_v0  ;;  %v143_v4 = vld [vmem:[%s190_s1 + $0x10] ss:$8 sps:$4 sm:$0xff]   ;;  %v144_v5 = vld [vmem:[%s191_s0] sm:$0xff]   ;;  %v24_v7 = vshrl.u32 %v23_v6, 7 }
   0x3   :  { %63 = vmatpush1.bf16.msra.mxu0 %v140_v2  ;;  %v21_v9 = vld [vmem:[%s192_s2] sm:$0x3] }
   0x4   :  { %64 = vmatprep.subr.bf16.mxu0 %v141_v3  ;;  %v25_v8 = vsub.s32 0, %v24_v7  ;;  %v29_v10 = vsub.s32 1, %v24_v7 }
   0x6   :  { %v26_v11 = vrot.slane %v21_v9, %v25_v8  ;;  %v30_v12 = vrot.slane %v21_v9, %v29_v10 }
   0x7   :  { %65 = vmatpush1.bf16.msra.mxu0 %v143_v4 }
   0xa   :  { %132 = vmatmul.mubr.msk.bf16.vlgmr.msra.gmra.mrb[0].mxu0 %vm58_vm0, %v144_v5 }
  0xdd   :  { %v96_v13 = vpop.f32.mrb[0].mxu0 }
  0xde   :  { %v97_v14 = vadd.f32 %v96_v13, %v26_v11  ;;  %v98_v15 = vpop.f32.mrb[1].mxu0 }
  0xdf   :  { %v99_v16 = vadd.f32 %v98_v15, %v30_v12  ;;  %v100_v17 = vpop.f32.mrb[2].mxu0 }
  0xe0   :  { %v105_v18 = vmax.f32 %v97_v14, 0.0  ;;  %v101_v19 = vadd.f32 %v100_v17, %v26_v11  ;;  %v102_v20 = vpop.f32.mrb[3].mxu0 }
  0xe1   :  { %v106_v21 = vmax.f32 %v99_v16, 0.0  ;;  %v103_v22 = vadd.f32 %v102_v20, %v30_v12 }
  0xe2   :  { %v107_v23 = vmax.f32 %v101_v19, 0.0 }
  0xe3   :  { %v135_v24 = vpack.c.bf16 %v106_v21, %v105_v18  ;;  %v108_v25 = vmax.f32 %v103_v22, 0.0 }
  0xe5   :  { %121 = vst [vmem:[%s193_s3] sm:$0xff] %v135_v24  ;;  %v136_v26 = vpack.c.bf16 %v108_v25, %v107_v23 }
  0xe7   :  { %122 = vst [vmem:[%s193_s3 + $0x8] sm:$0xff] %v136_v26 }

// kernel: forward.23
= control target key start
LH: loop header
LB: loop body
LE: loop exit
PB: predicated region body
PF: predicated region fallthrough
CT: control target
= control target key end

     0   :  { %v927_v1 = vmov 0   ;;  %v928_v39 = vmov 0.0   ;;  %vm929_vm0 = vmmov 0   ;;  %vm500_vm1 = vcmask 785408   ;;  %s1150_s1 = inlined_call_operand.vmem [shape: bf16[864,128], index: 1, kind: input, shape index: {}]   ;;  %s1151_s0 = inlined_call_operand.vmem [shape: bf16[16,864], index: 0, kind: input, shape index: {}]   ;;  %s1152_s3 = inlined_call_operand.vmem [shape: f32[16,1], index: 3, kind: input, shape index: {}]   ;;  %s1153_s2 = inlined_call_operand.vmem [shape: f32[1,128], index: 2, kind: input, shape index: {}]   ;;  %s1154_s4 = inlined_call_operand.vmem [shape: bf16[16,128], index: 4, kind: output, shape index: {}]  }
   0x1   :  { %v863_v0 = vld [vmem:[%s1150_s1 + $0x40] sm:$0xff]   ;;  %862 = vset.pattern.permute.xlu0 %v927_v1  ;;  %v867_v5 = vld [vmem:[%s1150_s1 + $0x48] sm:$0xff]   ;;  %v871_v9 = vld [vmem:[%s1150_s1 + $0x50] sm:$0xff]  }
   0x2   :  { %v864_v2 = vld [vmem:[%s1150_s1] sm:$0xff]   ;;  %770 = vmatprep.subr.bf16.mxu0 %v863_v0  ;;  %v868_v6 = vld [vmem:[%s1150_s1 + $0x8] sm:$0xff]   ;;  %v872_v10 = vld [vmem:[%s1150_s1 + $0x10] sm:$0xff]  }
   0x3   :  { %v865_v3 = vld [vmem:[%s1150_s1 + $0xc0] sm:$0xff]   ;;  %771 = vmatpush3.bf16.msra.mxu0 %v864_v2  ;;  %v869_v7 = vld [vmem:[%s1150_s1 + $0xc8] sm:$0xff]   ;;  %v873_v11 = vld [vmem:[%s1150_s1 + $0xd0] sm:$0xff]  }
   0x4   :  { %v866_v4 = vld [vmem:[%s1150_s1 + $0x80] sm:$0xff]   ;;  %792 = vmatprep.subr.bf16.mxu1 %v865_v3  ;;  %772 = vmatprep.subr.bf16.mxu0 %v867_v5  ;;  %v870_v8 = vld [vmem:[%s1150_s1 + $0x88] sm:$0xff]   ;;  %v874_v12 = vld [vmem:[%s1150_s1 + $0x90] sm:$0xff]  }
   0x5   :  { %793 = vmatpush3.bf16.msra.mxu1 %v866_v4  ;;  %v875_v13 = vld [vmem:[%s1150_s1 + $0x58] sm:$0xff]   ;;  %v879_v17 = vld [vmem:[%s1150_s1 + $0x60] sm:$0xff]   ;;  %v883_v21 = vld [vmem:[%s1150_s1 + $0x68] sm:$0xff]  }
   0x6   :  { %794 = vmatprep.subr.bf16.mxu1 %v869_v7  ;;  %v876_v14 = vld [vmem:[%s1150_s1 + $0x18] sm:$0xff]   ;;  %v880_v18 = vld [vmem:[%s1150_s1 + $0x20] sm:$0xff]   ;;  %v884_v22 = vld [vmem:[%s1150_s1 + $0x28] sm:$0xff]  }
   0x7   :  { %773 = vmatpush3.bf16.msra.mxu0 %v868_v6  ;;  %v877_v15 = vld [vmem:[%s1150_s1 + $0xd8] sm:$0xff]   ;;  %v881_v19 = vld [vmem:[%s1150_s1 + $0xe0] sm:$0xff]   ;;  %v885_v23 = vld [vmem:[%s1150_s1 + $0xe8] sm:$0xff]  }
   0x8   :  { %774 = vmatprep.subr.bf16.mxu0 %v871_v9  ;;  %v878_v16 = vld [vmem:[%s1150_s1 + $0x98] sm:$0xff]   ;;  %v882_v20 = vld [vmem:[%s1150_s1 + $0xa0] sm:$0xff]   ;;  %v886_v24 = vld [vmem:[%s1150_s1 + $0xa8] sm:$0xff]  }
   0x9   :  { %795 = vmatpush3.bf16.msra.mxu1 %v870_v8  ;;  %v887_v25 = vld [vmem:[%s1150_s1 + $0x70] sm:$0xff]   ;;  %v891_v29 = vld [vmem:[%s1150_s1 + $0x78] sm:$0xff]   ;;  %v896_v33 = vld [vmem:[%s1151_s0 + $0x4] ss:$28 sps:$4 sm:$0xff]  }
   0xa   :  { %796 = vmatprep.subr.bf16.mxu1 %v873_v11  ;;  %v888_v26 = vld [vmem:[%s1150_s1 + $0x30] sm:$0xff]   ;;  %v892_v30 = vld [vmem:[%s1150_s1 + $0x38] sm:$0xff]   ;;  %536 = vmatprep.mubr.bf16.mxu0 %v896_v33  ;;  %v898_v35 = vld [vmem:[%s1150_s1 + $0x140] sm:$0xff]  }
   0xb   :  { %775 = vmatpush3.bf16.msra.mxu0 %v872_v10  ;;  %v889_v27 = vld [vmem:[%s1150_s1 + $0xf0] sm:$0xff]   ;;  %v893_v31 = vld [vmem:[%s1150_s1 + $0xf8] sm:$0xff]   ;;  %v899_v36 = vld [vmem:[%s1151_s0 + $0x8] ss:$28 sps:$4 sm:$0xff]  }
   0xc   :  { %776 = vmatprep.subr.bf16.mxu0 %v875_v13  ;;  %v890_v28 = vld [vmem:[%s1150_s1 + $0xb0] sm:$0xff]   ;;  %v894_v32 = vld [vmem:[%s1151_s0] ss:$28 sps:$4 sm:$0xff]   ;;  %v901_v37 = vld [vmem:[%s1151_s0 + $0xc] ss:$28 sps:$4 sm:$0xff]  }
   0xd   :  { %797 = vmatpush3.bf16.msra.mxu1 %v874_v12  ;;  %v897_v34 = vld [vmem:[%s1150_s1 + $0xb8] sm:$0xff]   ;;  %v902_v38 = vld [vmem:[%s1150_s1 + $0x100] sm:$0xff]   ;;  %577 = vmatprep.mubr.bf16.mxu1 %v901_v37  ;;  %v903_v40 = vld [vmem:[%s1150_s1 + $0x148] sm:$0xff]  }
   0xe   :  { %798 = vmatprep.subr.bf16.mxu1 %v877_v15  ;;  %v904_v41 = vld [vmem:[%s1150_s1 + $0x108] sm:$0xff]   ;;  %v905_v42 = vld [vmem:[%s1150_s1 + $0x150] sm:$0xff]   ;;  %v907_v43 = vld [vmem:[%s1150_s1 + $0x180] sm:$0xff]  }
   0xf   :  { %777 = vmatpush3.bf16.msra.mxu0 %v876_v14  ;;  %v906_v44 = vld [vmem:[%s1150_s1 + $0x110] sm:$0xff]   ;;  %v908_v45 = vld [vmem:[%s1150_s1 + $0x158] sm:$0xff]   ;;  %v910_v46 = vld [vmem:[%s1150_s1 + $0x188] sm:$0xff]  }
  0x10   :  { %778 = vmatprep.subr.bf16.mxu0 %v879_v17  ;;  %v909_v47 = vld [vmem:[%s1150_s1 + $0x118] sm:$0xff]   ;;  %v911_v48 = vld [vmem:[%s1150_s1 + $0x160] sm:$0xff]   ;;  %v913_v49 = vld [vmem:[%s1150_s1 + $0x190] sm:$0xff]  }
  0x11   :  { %799 = vmatpush3.bf16.msra.mxu1 %v878_v16  ;;  %v912_v50 = vld [vmem:[%s1150_s1 + $0x120] sm:$0xff]   ;;  %v914_v51 = vld [vmem:[%s1150_s1 + $0x168] sm:$0xff]   ;;  %v916_v52 = vld [vmem:[%s1150_s1 + $0x198] sm:$0xff]  }
  0x12   :  { %800 = vmatprep.subr.bf16.mxu1 %v881_v19  ;;  %v915_v53 = vld [vmem:[%s1150_s1 + $0x128] sm:$0xff]   ;;  %v917_v54 = vld [vmem:[%s1150_s1 + $0x170] sm:$0xff]   ;;  %v919_v55 = vld [vmem:[%s1150_s1 + $0x1a0] sm:$0xff]  }
  0x13   :  { %779 = vmatpush3.bf16.msra.mxu0 %v880_v18  ;;  %v924_v56 = vld [vmem:[%s1151_s0 + $0x14] ss:$28 sps:$4 sm:$0xff]   ;;  %v920_v58 = vld [vmem:[%s1150_s1 + $0x178] sm:$0xff]   ;;  %v925_v59 = vld [vmem:[%s1150_s1 + $0x1a8] sm:$0xff]  }
  0x14   :  { %780 = vmatprep.subr.bf16.mxu0 %v883_v21  ;;  %v918_v57 = vld [vmem:[%s1150_s1 + $0x130] sm:$0xff]   ;;  %v670_v60 = vld [vmem:[%s1152_s3] sm:$0xff]  ;;  %v671_v61 = vld [vmem:[%s1152_s3 + $0x8] sm:$0xff] }
  0x15   :  { %801 = vmatpush3.bf16.msra.mxu1 %v882_v20  ;;  %674 = vperm.xlu0 %862, %v670_v60   ;;  %v921_v62 = vld [vmem:[%s1150_s1 + $0x138] sm:$0xff]   ;;  %v922_v0 = vld [vmem:[%s1151_s0 + $0x10] ss:$28 sps:$4 sm:$0xff]   ;;  %v698_v2 = vld [vmem:[%s1153_s2] ss:$0 sm:$0xff] }
  0x16   :  { %802 = vmatprep.subr.bf16.mxu1 %v885_v23  ;;  %v926_v63 = vld [vmem:[%s1151_s0 + $0x18] ss:$28 sps:$4 sm:$0xff]  }
  0x17   :  { %781 = vmatpush3.bf16.msra.mxu0 %v884_v22 }
  0x18   :  { %782 = vmatprep.subr.bf16.mxu0 %v887_v25 }
  0x19   :  { %803 = vmatpush3.bf16.msra.mxu1 %v886_v24  ;;  %679 = vperm.xlu0 %862, %v671_v61  }
  0x1a   :  { %804 = vmatprep.subr.bf16.mxu1 %v889_v27 }
  0x1b   :  { %783 = vmatpush3.bf16.msra.mxu0 %v888_v26 }
  0x1c   :  { %784 = vmatprep.subr.bf16.mxu0 %v891_v29 }
  0x1d   :  { %805 = vmatpush3.bf16.msra.mxu1 %v890_v28 }
  0x1e   :  { %806 = vmatprep.subr.bf16.mxu1 %v893_v31 }
  0x1f   :  { %785 = vmatpush3.bf16.msra.mxu0 %v892_v30 }
  0x20   :  { %814 = vmatprep.subr.bf16.mxu0 %v898_v35 }
  0x21   :  { %807 = vmatpush3.bf16.msra.mxu1 %v897_v34 }
  0x22   :  { %537 = vmatmul.mubr.bf16.vlgmr.msra.gmra.mrb[0].mxu0 %v894_v32  ;;  %843 = vmatprep.subr.bf16.mxu1 %v928_v39 }
  0x23   :  { %815 = vmatpush3.bf16.msra.mxu0 %v902_v38  ;;  %618 = vmatprep.mubr.bf16.mxu0 %v924_v56 }
  0x24   :  { %578 = vmatmul.mubr.bf16.vlgmr.msra.gmra.mrb[0].mxu1 %v899_v36  ;;  %816 = vmatprep.subr.bf16.mxu0 %v903_v40 }
  0x25   :  { %855 = vmatprep.mubr.msk.bf16.mxu1 %vm929_vm0, %v928_v39  ;;  %844 = vmatpush3.bf16.msra.mxu1 %v907_v43 }
  0x26   :  { %845 = vmatprep.subr.bf16.mxu1 %v928_v39 }
  0x27   :  { %817 = vmatpush3.bf16.msra.mxu0 %v904_v41 }
  0x28   :  { %818 = vmatprep.subr.bf16.mxu0 %v905_v42 }
  0x29   :  { %846 = vmatpush3.bf16.msra.mxu1 %v910_v46 }
  0x2a   :  { %847 = vmatprep.subr.bf16.mxu1 %v928_v39 }
  0x2b   :  { %819 = vmatpush3.bf16.msra.mxu0 %v906_v44 }
  0x2c   :  { %820 = vmatprep.subr.bf16.mxu0 %v908_v45 }
  0x2d   :  { %848 = vmatpush3.bf16.msra.mxu1 %v913_v49 }
  0x2e   :  { %849 = vmatprep.subr.bf16.mxu1 %v928_v39 }
  0x2f   :  { %821 = vmatpush3.bf16.msra.mxu0 %v909_v47 }
  0x30   :  { %822 = vmatprep.subr.bf16.mxu0 %v911_v48 }
  0x31   :  { %850 = vmatpush3.bf16.msra.mxu1 %v916_v52 }
  0x32   :  { %851 = vmatprep.subr.bf16.mxu1 %v928_v39 }
  0x33   :  { %823 = vmatpush3.bf16.msra.mxu0 %v912_v50 }
  0x34   :  { %824 = vmatprep.subr.bf16.mxu0 %v914_v51 }
  0x35   :  { %852 = vmatpush3.bf16.msra.mxu1 %v919_v55 }
  0x36   :  { %853 = vmatprep.subr.bf16.mxu1 %v928_v39 }
  0x37   :  { %825 = vmatpush3.bf16.msra.mxu0 %v915_v53 }
  0x38   :  { %826 = vmatprep.subr.bf16.mxu0 %v917_v54 }
  0x39   :  { %854 = vmatpush3.bf16.msra.mxu1 %v925_v59 }
  0x3b   :  { %827 = vmatpush3.bf16.msra.mxu0 %v918_v57 }
  0x3c   :  { %828 = vmatprep.subr.bf16.mxu0 %v920_v58  ;;  %856 = vmatmul.mubr.msk.bf16.vlgmr.msra.gmra.mrb[4].mxu1 %vm500_vm1, %v926_v63 }
  0x3f   :  { %829 = vmatpush3.bf16.msra.mxu0 %v921_v62 }
  0x42   :  { %619 = vmatmul.mubr.bf16.vlgmr.msra.gmra.mrb[4].mxu0 %v922_v0 }
  0x94   :  { %v675_v29 = vpop.permute.xlu0 %674 }
  0x98   :  { %v680_v35 = vpop.permute.xlu0 %679 }
  0xf5   :  { %v786_v1 = vpop.f32.mrb[0].mxu0 }
  0xf6   :  { %v787_v3 = vpop.f32.mrb[1].mxu0 }
  0xf7   :  { %v788_v4 = vadd.f32 %v787_v3, %v786_v1  ;;  %v789_v5 = vpop.f32.mrb[2].mxu0  ;;  %v808_v6 = vpop.f32.mrb[0].mxu1 }
  0xf8   :  { %v790_v7 = vpop.f32.mrb[3].mxu0  ;;  %v809_v10 = vpop.f32.mrb[1].mxu1 }
  0xf9   :  { %v539_v8 = vadd.f32 %v788_v4, %v698_v2  ;;  %v791_v9 = vadd.f32 %v790_v7, %v789_v5  ;;  %v810_v11 = vadd.f32 %v809_v10, %v808_v6  ;;  %v811_v12 = vpop.f32.mrb[2].mxu1 }
  0xfa   :  { %v812_v14 = vpop.f32.mrb[3].mxu1 }
  0xfb   :  { %v542_v13 = vadd.f32 %v791_v9, %v698_v2  ;;  %v580_v15 = vadd.f32 %v810_v11, %v539_v8  ;;  %v813_v16 = vadd.f32 %v812_v14, %v811_v12 }
  0xfd   :  { %v583_v17 = vadd.f32 %v813_v16, %v542_v13 }
 0x10f   :  { %v661_v18 = vpop.f32.mrb[4].mxu1 }
 0x110   :  { %v857_v19 = vpop.f32.mrb[5].mxu1 }
 0x111   :  { %v664_v20 = vpop.f32.mrb[6].mxu1 }
 0x112   :  { %v858_v22 = vpop.f32.mrb[7].mxu1 }
 0x115   :  { %v830_v21 = vpop.f32.mrb[4].mxu0 }
 0x116   :  { %v831_v23 = vpop.f32.mrb[5].mxu0 }
 0x117   :  { %v832_v24 = vadd.f32 %v831_v23, %v830_v21  ;;  %v833_v25 = vpop.f32.mrb[6].mxu0 }
 0x118   :  { %v834_v26 = vpop.f32.mrb[7].mxu0 }
 0x119   :  { %v621_v27 = vadd.f32 %v832_v24, %v580_v15  ;;  %v835_v28 = vadd.f32 %v834_v26, %v833_v25 }
 0x11b   :  { %v662_v30 = vadd.f32 %v661_v18, %v621_v27  ;;  %v624_v31 = vadd.f32 %v835_v28, %v583_v17 }
 0x11d   :  { %v668_v32 = vmax.f32 %v662_v30, 0.0  ;;  %v665_v33 = vadd.f32 %v664_v20, %v624_v31 }
 0x11f   :  { %v669_v34 = vmax.f32 %v665_v33, 0.0  ;;  %v682_v36 = vmul.f32 %v675_v29, %v668_v32 }
 0x121   :  { %v683_v37 = vmul.f32 %v680_v35, %v669_v34 }
 0x123   :  { %v768_v38 = vpack.c.bf16 %v683_v37, %v682_v36 }
 0x125   :  { %769 = vst [vmem:[%s1154_s4] sm:$0xff] %v768_v38  }

// kernel: forward.25
= control target key start
LH: loop header
LB: loop body
LE: loop exit
PB: predicated region body
PF: predicated region fallthrough
CT: control target
= control target key end

     0   :  { %v1028_v0 = vmov 0   ;;  %vm422_vm0 = vcmask 392192   ;;  %s1290_s1 = inlined_call_operand.vmem [shape: bf16[432,128], index: 1, kind: input, shape index: {}]   ;;  %s1291_s0 = inlined_call_operand.vmem [shape: bf16[128,432], index: 0, kind: input, shape index: {}]   ;;  %s1292_s2 = inlined_call_operand.vmem [shape: f32[1,128], index: 2, kind: input, shape index: {}]   ;;  %s1293_s3 = inlined_call_operand.vmem [shape: bf16[128,128], index: 3, kind: output, shape index: {}]  }
   0x1   :  { %544 = vmatprep.subr.bf16.mxu1 %v1028_v0  ;;  %v953_v1 = vld [vmem:[%s1290_s1 + $0x80] sm:$0xff]   ;;  %v956_v4 = vld [vmem:[%s1290_s1 + $0x88] sm:$0xff]   ;;  %v959_v7 = vld [vmem:[%s1290_s1 + $0x90] sm:$0xff]  }
   0x2   :  { %v954_v2 = vld [vmem:[%s1290_s1 + $0x40] sm:$0xff]   ;;  %545 = vmatpush1.bf16.msra.mxu1 %v953_v1  ;;  %v957_v5 = vld [vmem:[%s1290_s1 + $0x48] sm:$0xff]   ;;  %v960_v8 = vld [vmem:[%s1290_s1 + $0x50] sm:$0xff]  }
   0x3   :  { %v955_v3 = vld [vmem:[%s1290_s1] sm:$0xff]   ;;  %888 = vmatprep.subr.bf16.mxu0 %v954_v2  ;;  %546 = vmatprep.subr.bf16.mxu1 %v1028_v0  ;;  %v958_v6 = vld [vmem:[%s1290_s1 + $0x8] sm:$0xff]   ;;  %v961_v9 = vld [vmem:[%s1290_s1 + $0x10] sm:$0xff]  }
   0x4   :  { %889 = vmatpush3.bf16.msra.mxu0 %v955_v3  ;;  %v962_v10 = vld [vmem:[%s1290_s1 + $0x98] sm:$0xff]   ;;  %v966_v13 = vld [vmem:[%s1290_s1 + $0x60] sm:$0xff]   ;;  %v969_v16 = vld [vmem:[%s1290_s1 + $0x68] sm:$0xff]  }
   0x5   :  { %890 = vmatprep.subr.bf16.mxu0 %v957_v5  ;;  %v963_v11 = vld [vmem:[%s1290_s1 + $0x58] sm:$0xff]   ;;  %v965_v14 = vld [vmem:[%s1290_s1 + $0xa0] sm:$0xff]   ;;  %v968_v17 = vld [vmem:[%s1290_s1 + $0xa8] sm:$0xff]  }
   0x6   :  { %547 = vmatpush1.bf16.msra.mxu1 %v956_v4  ;;  %v964_v12 = vld [vmem:[%s1290_s1 + $0x18] sm:$0xff]   ;;  %v967_v15 = vld [vmem:[%s1290_s1 + $0x20] sm:$0xff]   ;;  %v970_v18 = vld [vmem:[%s1290_s1 + $0x28] sm:$0xff]  }
   0x7   :  { %548 = vmatprep.subr.bf16.mxu1 %v1028_v0  ;;  %v972_v19 = vld [vmem:[%s1290_s1 + $0x70] sm:$0xff]   ;;  %v974_v22 = vld [vmem:[%s1290_s1 + $0xb8] sm:$0xff]   ;;  %v977_v26 = vld [vmem:[%s1290_s1 + $0xc0] sm:$0xff]  }
   0x8   :  { %891 = vmatpush3.bf16.msra.mxu0 %v958_v6  ;;  %v971_v20 = vld [vmem:[%s1290_s1 + $0xb0] sm:$0xff]   ;;  %v975_v23 = vld [vmem:[%s1290_s1 + $0x78] sm:$0xff]   ;;  %v981_v30 = vld [vmem:[%s1290_s1 + $0xc8] sm:$0xff]  }
   0x9   :  { %892 = vmatprep.subr.bf16.mxu0 %v960_v8  ;;  %v973_v21 = vld [vmem:[%s1290_s1 + $0x30] sm:$0xff]   ;;  %v976_v25 = vld [vmem:[%s1290_s1 + $0x38] sm:$0xff]   ;;  %v1248_v2 = vld [vmem:[%s1292_s2] ss:$0 sm:$0xff] }
   0xa   :  { %549 = vmatpush1.bf16.msra.mxu1 %v959_v7  ;;  %v980_v24 = vld [vmem:[%s1291_s0 + $0x4] ss:$16 sps:$4 sm:$0xff]   ;;  %v987_v27 = vld [vmem:[%s1291_s0 + $0xc] ss:$16 sps:$4 sm:$0xff]   ;;  %v978_v28 = vld [vmem:[%s1291_s0] ss:$16 sps:$4 sm:$0xff]  }
   0xb   :  { %550 = vmatprep.subr.bf16.mxu1 %v1028_v0  ;;  %479 = vmatprep.mubr.bf16.mxu0 %v980_v24  ;;  %v983_v29 = vld [vmem:[%s1291_s0 + $0x24] ss:$16 sps:$4 sm:$0xff]   ;;  %v988_v32 = vld [vmem:[%s1291_s0 + $0x20] ss:$16 sps:$4 sm:$0xff]   ;;  %v985_v34 = vld [vmem:[%s1291_s0 + $0x8] ss:$16 sps:$4 sm:$0xff]  }
   0xc   :  { %893 = vmatpush3.bf16.msra.mxu0 %v961_v9  ;;  %801 = vmatprep.mubr.msk.bf16.mxu1 %vm422_vm0, %v987_v27  ;;  %v982_v31 = vld [vmem:[%s1290_s1 + $0xd0] sm:$0xff]   ;;  %v991_v35 = vld [vmem:[%s1291_s0 + $0x2c] ss:$16 sps:$4 sm:$0xff]   ;;  %v994_v38 = vld [vmem:[%s1291_s0 + $0x28] ss:$16 sps:$4 sm:$0xff]  }
   0xd   :  { %894 = vmatprep.subr.bf16.mxu0 %v963_v11  ;;  %v989_v33 = vld [vmem:[%s1291_s0 + $0x44] ss:$16 sps:$4 sm:$0xff]   ;;  %v993_v36 = vld [vmem:[%s1291_s0 + $0x40] ss:$16 sps:$4 sm:$0xff]   ;;  %v997_v39 = vld [vmem:[%s1291_s0 + $0x4c] ss:$16 sps:$4 sm:$0xff]  }
   0xe   :  { %551 = vmatpush1.bf16.msra.mxu1 %v962_v10  ;;  %v995_v37 = vld [vmem:[%s1291_s0 + $0x64] ss:$16 sps:$4 sm:$0xff]   ;;  %v999_v40 = vld [vmem:[%s1291_s0 + $0x60] ss:$16 sps:$4 sm:$0xff]   ;;  %v1000_v42 = vld [vmem:[%s1291_s0 + $0x48] ss:$16 sps:$4 sm:$0xff]  }
   0xf   :  { %552 = vmatprep.subr.bf16.mxu1 %v1028_v0  ;;  %v1001_v41 = vld [vmem:[%s1291_s0 + $0x84] ss:$16 sps:$4 sm:$0xff]   ;;  %v1003_v43 = vld [vmem:[%s1291_s0 + $0x6c] ss:$16 sps:$4 sm:$0xff]   ;;  %v1005_v44 = vld [vmem:[%s1291_s0 + $0x80] ss:$16 sps:$4 sm:$0xff]  }
  0x10   :  { %895 = vmatpush3.bf16.msra.mxu0 %v964_v12  ;;  %v1007_v45 = vld [vmem:[%s1291_s0 + $0xa4] ss:$16 sps:$4 sm:$0xff]   ;;  %v1006_v46 = vld [vmem:[%s1291_s0 + $0x68] ss:$16 sps:$4 sm:$0xff]   ;;  %v1009_v47 = vld [vmem:[%s1291_s0 + $0x8c] ss:$16 sps:$4 sm:$0xff]  }
  0x11   :  { %896 = vmatprep.subr.bf16.mxu0 %v966_v13  ;;  %v1011_v48 = vld [vmem:[%s1291_s0 + $0xa0] ss:$16 sps:$4 sm:$0xff]   ;;  %v1013_v49 = vld [vmem:[%s1291_s0 + $0xc4] ss:$16 sps:$4 sm:$0xff]   ;;  %v1012_v50 = vld [vmem:[%s1291_s0 + $0x88] ss:$16 sps:$4 sm:$0xff]  }
  0x12   :  { %553 = vmatpush1.bf16.msra.mxu1 %v965_v14  ;;  %v1015_v51 = vld [vmem:[%s1291_s0 + $0xac] ss:$16 sps:$4 sm:$0xff]   ;;  %v1017_v52 = vld [vmem:[%s1291_s0 + $0xc0] ss:$16 sps:$4 sm:$0xff]   ;;  %v1019_v53 = vld [vmem:[%s1291_s0 + $0xe4] ss:$16 sps:$4 sm:$0xff]  }
  0x13   :  { %554 = vmatprep.subr.bf16.mxu1 %v1028_v0  ;;  %v1018_v54 = vld [vmem:[%s1291_s0 + $0xa8] ss:$16 sps:$4 sm:$0xff]   ;;  %v1021_v55 = vld [vmem:[%s1291_s0 + $0xcc] ss:$16 sps:$4 sm:$0xff]   ;;  %v1023_v56 = vld [vmem:[%s1291_s0 + $0xe0] ss:$16 sps:$4 sm:$0xff]  }
  0x14   :  { %897 = vmatpush3.bf16.msra.mxu0 %v967_v15  ;;  %v1024_v57 = vld [vmem:[%s1291_s0 + $0xc8] ss:$16 sps:$4 sm:$0xff]   ;;  %v1025_v58 = vld [vmem:[%s1291_s0 + $0xec] ss:$16 sps:$4 sm:$0xff]  }
  0x15   :  { %898 = vmatprep.subr.bf16.mxu0 %v969_v16  ;;  %v1027_v59 = vld [vmem:[%s1291_s0 + $0xe8] ss:$16 sps:$4 sm:$0xff]  }
  0x16   :  { %555 = vmatpush1.bf16.msra.mxu1 %v968_v17 }
  0x17   :  { %556 = vmatprep.subr.bf16.mxu1 %v1028_v0 }
  0x18   :  { %899 = vmatpush3.bf16.msra.mxu0 %v970_v18 }
  0x19   :  { %900 = vmatprep.subr.bf16.mxu0 %v972_v19 }
  0x1a   :  { %557 = vmatpush1.bf16.msra.mxu1 %v971_v20 }
  0x1b   :  { %558 = vmatprep.subr.bf16.mxu1 %v1028_v0 }
  0x1c   :  { %901 = vmatpush3.bf16.msra.mxu0 %v973_v21 }
  0x1d   :  { %902 = vmatprep.subr.bf16.mxu0 %v975_v23 }
  0x1e   :  { %559 = vmatpush1.bf16.msra.mxu1 %v974_v22 }
  0x1f   :  { %560 = vmatprep.subr.bf16.mxu1 %v1028_v0 }
  0x20   :  { %903 = vmatpush3.bf16.msra.mxu0 %v976_v25 }
  0x22   :  { %561 = vmatpush1.bf16.msra.mxu1 %v977_v26 }
  0x23   :  { %480 = vmatmul.mubr.bf16.vlgmr.msra.gmra.mrb[0].mxu0 %v978_v28  ;;  %562 = vmatprep.subr.bf16.mxu1 %v1028_v0 }
  0x24   :  { %487 = vmatprep.mubr.bf16.mxu0 %v983_v29 }
  0x26   :  { %563 = vmatpush1.bf16.msra.mxu1 %v981_v30 }
  0x27   :  { %564 = vmatprep.subr.bf16.mxu1 %v1028_v0 }
  0x2a   :  { %565 = vmatpush1.bf16.msra.mxu1 %v982_v31 }
  0x2b   :  { %488 = vmatmul.mubr.bf16.gmra.mrb[4].mxu0 %v988_v32 }
  0x2c   :  { %495 = vmatprep.mubr.bf16.mxu0 %v989_v33 }
  0x2d   :  { %577 = vmatmul.mubr.bf16.vlgmr.msra.gmra.mrb[0].mxu1 %v985_v34 }
  0x2e   :  { %802 = vmatprep.mubr.msk.bf16.mxu1 %vm422_vm0, %v991_v35 }
  0x33   :  { %496 = vmatmul.mubr.bf16.gmra.mrb[8].mxu0 %v993_v36 }
  0x34   :  { %503 = vmatprep.mubr.bf16.mxu0 %v995_v37 }
  0x35   :  { %585 = vmatmul.mubr.bf16.gmra.mrb[4].mxu1 %v994_v38 }
  0x36   :  { %803 = vmatprep.mubr.msk.bf16.mxu1 %vm422_vm0, %v997_v39 }
  0x3b   :  { %504 = vmatmul.mubr.bf16.gmra.mrb[12].mxu0 %v999_v40 }
  0x3c   :  { %511 = vmatprep.mubr.bf16.mxu0 %v1001_v41 }
  0x3d   :  { %593 = vmatmul.mubr.bf16.gmra.mrb[8].mxu1 %v1000_v42 }
  0x3e   :  { %804 = vmatprep.mubr.msk.bf16.mxu1 %vm422_vm0, %v1003_v43 }
  0x43   :  { %512 = vmatmul.mubr.bf16.gmra.mrb[16].mxu0 %v1005_v44 }
  0x44   :  { %519 = vmatprep.mubr.bf16.mxu0 %v1007_v45 }
  0x45   :  { %601 = vmatmul.mubr.bf16.gmra.mrb[12].mxu1 %v1006_v46 }
  0x46   :  { %805 = vmatprep.mubr.msk.bf16.mxu1 %vm422_vm0, %v1009_v47 }
  0x4b   :  { %520 = vmatmul.mubr.bf16.gmra.mrb[20].mxu0 %v1011_v48 }
  0x4c   :  { %527 = vmatprep.mubr.bf16.mxu0 %v1013_v49 }
  0x4d   :  { %609 = vmatmul.mubr.bf16.gmra.mrb[16].mxu1 %v1012_v50 }
  0x4e   :  { %806 = vmatprep.mubr.msk.bf16.mxu1 %vm422_vm0, %v1015_v51 }
  0x53   :  { %528 = vmatmul.mubr.bf16.gmra.mrb[24].mxu0 %v1017_v52 }
  0x54   :  { %535 = vmatprep.mubr.bf16.mxu0 %v1019_v53 }
  0x55   :  { %617 = vmatmul.mubr.bf16.gmra.mrb[20].mxu1 %v1018_v54 }
  0x56   :  { %807 = vmatprep.mubr.msk.bf16.mxu1 %vm422_vm0, %v1021_v55 }
  0x5b   :  { %536 = vmatmul.mubr.bf16.gmra.mrb[28].mxu0 %v1023_v56 }
  0x5d   :  { %625 = vmatmul.mubr.bf16.gmra.mrb[24].mxu1 %v1024_v57 }
  0x5e   :  { %808 = vmatprep.mubr.msk.bf16.mxu1 %vm422_vm0, %v1025_v58 }
  0x65   :  { %633 = vmatmul.mubr.bf16.gmra.mrb[28].mxu1 %v1027_v59 }
  0xf6   :  { %v904_v60 = vpop.f32.mrb[0].mxu0 }
  0xf7   :  { %v905_v61 = vpop.f32.mrb[1].mxu0 }
  0xf8   :  { %v906_v62 = vadd.f32 %v905_v61, %v904_v60  ;;  %v907_v63 = vpop.f32.mrb[2].mxu0 }
  0xf9   :  { %v908_v0 = vpop.f32.mrb[3].mxu0 }
  0xfa   :  { %v909_v1 = vadd.f32 %v908_v0, %v907_v63  ;;  %v482_v3 = vadd.f32 %v906_v62, %v1248_v2 }
  0xfc   :  { %v485_v11 = vadd.f32 %v909_v1, %v1248_v2 }
  0xfe   :  { %v910_v4 = vpop.f32.mrb[4].mxu0 }
  0xff   :  { %v911_v5 = vpop.f32.mrb[5].mxu0 }
 0x100   :  { %v578_v6 = vpop.f32.mrb[0].mxu1  ;;  %v912_v7 = vadd.f32 %v911_v5, %v910_v4  ;;  %v913_v8 = vpop.f32.mrb[6].mxu0 }
 0x101   :  { %v579_v9 = vadd.f32 %v578_v6, %v482_v3  ;;  %v580_v10 = vpop.f32.mrb[1].mxu1  ;;  %v914_v12 = vpop.f32.mrb[7].mxu0 }
 0x102   :  { %v581_v13 = vpop.f32.mrb[2].mxu1  ;;  %v915_v14 = vadd.f32 %v914_v12, %v913_v8  ;;  %v490_v19 = vadd.f32 %v912_v7, %v1248_v2 }
 0x103   :  { %v582_v15 = vadd.f32 %v581_v13, %v485_v11  ;;  %v583_v16 = vpop.f32.mrb[3].mxu1  ;;  %v641_v17 = vmax.f32 %v579_v9, 0.0 }
 0x104   :  { %v493_v28 = vadd.f32 %v915_v14, %v1248_v2 }
 0x105   :  { %v642_v18 = vmax.f32 %v582_v15, 0.0 }
 0x106   :  { %v916_v20 = vpop.f32.mrb[8].mxu0 }
 0x107   :  { %v844_v21 = vpack.c.bf16 %v642_v18, %v641_v17  ;;  %v917_v22 = vpop.f32.mrb[9].mxu0 }
 0x108   :  { %v586_v23 = vpop.f32.mrb[4].mxu1  ;;  %v918_v24 = vadd.f32 %v917_v22, %v916_v20  ;;  %v919_v25 = vpop.f32.mrb[10].mxu0 }
 0x109   :  { %845 = vst [vmem:[%s1293_s3] sm:$0xff] %v844_v21   ;;  %v587_v26 = vadd.f32 %v586_v23, %v490_v19  ;;  %v588_v27 = vpop.f32.mrb[5].mxu1  ;;  %v920_v29 = vpop.f32.mrb[11].mxu0 }
 0x10a   :  { %v589_v30 = vpop.f32.mrb[6].mxu1  ;;  %v921_v31 = vadd.f32 %v920_v29, %v919_v25  ;;  %v498_v36 = vadd.f32 %v918_v24, %v1248_v2 }
 0x10b   :  { %v590_v32 = vadd.f32 %v589_v30, %v493_v28  ;;  %v591_v33 = vpop.f32.mrb[7].mxu1  ;;  %v643_v34 = vmax.f32 %v587_v26, 0.0 }
 0x10c   :  { %v501_v45 = vadd.f32 %v921_v31, %v1248_v2 }
 0x10d   :  { %v644_v35 = vmax.f32 %v590_v32, 0.0 }
 0x10e   :  { %v922_v37 = vpop.f32.mrb[12].mxu0 }
 0x10f   :  { %v849_v38 = vpack.c.bf16 %v644_v35, %v643_v34  ;;  %v923_v39 = vpop.f32.mrb[13].mxu0 }
 0x110   :  { %v594_v40 = vpop.f32.mrb[8].mxu1  ;;  %v924_v41 = vadd.f32 %v923_v39, %v922_v37  ;;  %v925_v42 = vpop.f32.mrb[14].mxu0 }
 0x111   :  { %881 = vst [vmem:[%s1293_s3 + $0x8] sm:$0xff] %v849_v38   ;;  %v595_v43 = vadd.f32 %v594_v40, %v498_v36  ;;  %v596_v44 = vpop.f32.mrb[9].mxu1  ;;  %v926_v46 = vpop.f32.mrb[15].mxu0 }
 0x112   :  { %v597_v47 = vpop.f32.mrb[10].mxu1  ;;  %v927_v48 = vadd.f32 %v926_v46, %v925_v42  ;;  %v506_v53 = vadd.f32 %v924_v41, %v1248_v2 }
 0x113   :  { %v598_v49 = vadd.f32 %v597_v47, %v501_v45  ;;  %v599_v50 = vpop.f32.mrb[11].mxu1  ;;  %v645_v51 = vmax.f32 %v595_v43, 0.0 }
 0x114   :  { %v509_v62 = vadd.f32 %v927_v48, %v1248_v2 }
 0x115   :  { %v646_v52 = vmax.f32 %v598_v49, 0.0 }
 0x116   :  { %v928_v54 = vpop.f32.mrb[16].mxu0 }
 0x117   :  { %v854_v55 = vpack.c.bf16 %v646_v52, %v645_v51  ;;  %v929_v56 = vpop.f32.mrb[17].mxu0 }
 0x118   :  { %v602_v57 = vpop.f32.mrb[12].mxu1  ;;  %v930_v58 = vadd.f32 %v929_v56, %v928_v54  ;;  %v931_v59 = vpop.f32.mrb[18].mxu0 }
 0x119   :  { %882 = vst [vmem:[%s1293_s3 + $0x10] sm:$0xff] %v854_v55   ;;  %v603_v60 = vadd.f32 %v602_v57, %v506_v53  ;;  %v604_v61 = vpop.f32.mrb[13].mxu1  ;;  %v932_v63 = vpop.f32.mrb[19].mxu0 }
 0x11a   :  { %v605_v0 = vpop.f32.mrb[14].mxu1  ;;  %v933_v1 = vadd.f32 %v932_v63, %v931_v59  ;;  %v514_v7 = vadd.f32 %v930_v58, %v1248_v2 }
 0x11b   :  { %v606_v3 = vadd.f32 %v605_v0, %v509_v62  ;;  %v607_v4 = vpop.f32.mrb[15].mxu1  ;;  %v647_v5 = vmax.f32 %v603_v60, 0.0 }
 0x11c   :  { %v517_v16 = vadd.f32 %v933_v1, %v1248_v2 }
 0x11d   :  { %v648_v6 = vmax.f32 %v606_v3, 0.0 }
 0x11e   :  { %v934_v8 = vpop.f32.mrb[20].mxu0 }
 0x11f   :  { %v859_v9 = vpack.c.bf16 %v648_v6, %v647_v5  ;;  %v935_v10 = vpop.f32.mrb[21].mxu0 }
 0x120   :  { %v610_v11 = vpop.f32.mrb[16].mxu1  ;;  %v936_v12 = vadd.f32 %v935_v10, %v934_v8  ;;  %v937_v13 = vpop.f32.mrb[22].mxu0 }
 0x121   :  { %883 = vst [vmem:[%s1293_s3 + $0x18] sm:$0xff] %v859_v9   ;;  %v611_v14 = vadd.f32 %v610_v11, %v514_v7  ;;  %v612_v15 = vpop.f32.mrb[17].mxu1  ;;  %v938_v17 = vpop.f32.mrb[23].mxu0 }
 0x122   :  { %v613_v18 = vpop.f32.mrb[18].mxu1  ;;  %v939_v19 = vadd.f32 %v938_v17, %v937_v13  ;;  %v522_v24 = vadd.f32 %v936_v12, %v1248_v2 }
 0x123   :  { %v614_v20 = vadd.f32 %v613_v18, %v517_v16  ;;  %v615_v21 = vpop.f32.mrb[19].mxu1  ;;  %v649_v22 = vmax.f32 %v611_v14, 0.0 }
 0x124   :  { %v525_v33 = vadd.f32 %v939_v19, %v1248_v2 }
 0x125   :  { %v650_v23 = vmax.f32 %v614_v20, 0.0 }
 0x126   :  { %v940_v25 = vpop.f32.mrb[24].mxu0 }
 0x127   :  { %v864_v26 = vpack.c.bf16 %v650_v23, %v649_v22  ;;  %v941_v27 = vpop.f32.mrb[25].mxu0 }
 0x128   :  { %v618_v28 = vpop.f32.mrb[20].mxu1  ;;  %v942_v29 = vadd.f32 %v941_v27, %v940_v25  ;;  %v943_v30 = vpop.f32.mrb[26].mxu0 }
 0x129   :  { %884 = vst [vmem:[%s1293_s3 + $0x20] sm:$0xff] %v864_v26   ;;  %v619_v31 = vadd.f32 %v618_v28, %v522_v24  ;;  %v620_v32 = vpop.f32.mrb[21].mxu1  ;;  %v944_v34 = vpop.f32.mrb[27].mxu0 }
 0x12a   :  { %v621_v35 = vpop.f32.mrb[22].mxu1  ;;  %v945_v36 = vadd.f32 %v944_v34, %v943_v30  ;;  %v530_v41 = vadd.f32 %v942_v29, %v1248_v2 }
 0x12b   :  { %v622_v37 = vadd.f32 %v621_v35, %v525_v33  ;;  %v623_v38 = vpop.f32.mrb[23].mxu1  ;;  %v651_v39 = vmax.f32 %v619_v31, 0.0 }
 0x12c   :  { %v533_v50 = vadd.f32 %v945_v36, %v1248_v2 }
 0x12d   :  { %v652_v40 = vmax.f32 %v622_v37, 0.0 }
 0x12e   :  { %v946_v42 = vpop.f32.mrb[28].mxu0 }
 0x12f   :  { %v869_v43 = vpack.c.bf16 %v652_v40, %v651_v39  ;;  %v947_v44 = vpop.f32.mrb[29].mxu0 }
 0x130   :  { %v626_v45 = vpop.f32.mrb[24].mxu1  ;;  %v948_v46 = vadd.f32 %v947_v44, %v946_v42  ;;  %v949_v47 = vpop.f32.mrb[30].mxu0 }
 0x131   :  { %885 = vst [vmem:[%s1293_s3 + $0x28] sm:$0xff] %v869_v43   ;;  %v627_v48 = vadd.f32 %v626_v45, %v530_v41  ;;  %v628_v49 = vpop.f32.mrb[25].mxu1  ;;  %v950_v51 = vpop.f32.mrb[31].mxu0 }
 0x132   :  { %v629_v52 = vpop.f32.mrb[26].mxu1  ;;  %v951_v53 = vadd.f32 %v950_v51, %v949_v47  ;;  %v538_v58 = vadd.f32 %v948_v46, %v1248_v2 }
 0x133   :  { %v630_v54 = vadd.f32 %v629_v52, %v533_v50  ;;  %v631_v55 = vpop.f32.mrb[27].mxu1  ;;  %v653_v56 = vmax.f32 %v627_v48, 0.0 }
 0x134   :  { %v541_v63 = vadd.f32 %v951_v53, %v1248_v2 }
 0x135   :  { %v654_v57 = vmax.f32 %v630_v54, 0.0 }
 0x137   :  { %v874_v59 = vpack.c.bf16 %v654_v57, %v653_v56 }
 0x138   :  { %v634_v60 = vpop.f32.mrb[28].mxu1 }
 0x139   :  { %886 = vst [vmem:[%s1293_s3 + $0x30] sm:$0xff] %v874_v59   ;;  %v635_v61 = vadd.f32 %v634_v60, %v538_v58  ;;  %v636_v62 = vpop.f32.mrb[29].mxu1 }
 0x13a   :  { %v637_v0 = vpop.f32.mrb[30].mxu1 }
 0x13b   :  { %v638_v1 = vadd.f32 %v637_v0, %v541_v63  ;;  %v639_v3 = vpop.f32.mrb[31].mxu1  ;;  %v655_v4 = vmax.f32 %v635_v61, 0.0 }
 0x13d   :  { %v656_v5 = vmax.f32 %v638_v1, 0.0 }
 0x13f   :  { %v879_v6 = vpack.c.bf16 %v656_v5, %v655_v4 }
 0x141   :  { %887 = vst [vmem:[%s1293_s3 + $0x38] sm:$0xff] %v879_v6  }

// kernel: forward.27
= control target key start
LH: loop header
LB: loop body
LE: loop exit
PB: predicated region body
PF: predicated region fallthrough
CT: control target
= control target key end

     0   :  { %vm110_vm0 = vcmask 523264   ;;  %s444_s1 = inlined_call_operand.vmem [shape: bf16[64,128], index: 1, kind: input, shape index: {}]   ;;  %s445_s0 = inlined_call_operand.vmem [shape: bf16[128,64], index: 0, kind: input, shape index: {}]   ;;  %s446_s2 = inlined_call_operand.vmem [shape: f32[1,128], index: 2, kind: input, shape index: {}]   ;;  %s447_s3 = inlined_call_operand.vmem [shape: f32[128,128], index: 3, kind: output, shape index: {}]  }
   0x1   :  { %v317_v0 = vld [vmem:[%s444_s1] sm:$0xff]   ;;  %v318_v1 = vld [vmem:[%s444_s1 + $0x8] sm:$0xff]   ;;  %v319_v2 = vld [vmem:[%s444_s1 + $0x10] sm:$0xff]  }
   0x2   :  { %285 = vmatprep.subr.bf16.mxu0 %v317_v0  ;;  %309 = vmatprep.subr.bf16.mxu1 %v317_v0  ;;  %v321_v3 = vld [vmem:[%s445_s0] sm:$0xff]   ;;  %v320_v5 = vld [vmem:[%s444_s1 + $0x18] sm:$0xff]   ;;  %v323_v6 = vld [vmem:[%s445_s0 + $0x8] sm:$0xff]  }
   0x3   :  { %286 = vmatpush3.bf16.msra.mxu0 %v317_v0  ;;  %313 = vmatpush3.bf16.msra.mxu1 %v317_v0  ;;  %v322_v4 = vld [vmem:[%s445_s0 + $0x20] sm:$0xff]   ;;  %v324_v7 = vld [vmem:[%s445_s0 + $0x28] sm:$0xff]   ;;  %v325_v8 = vld [vmem:[%s445_s0 + $0x10] sm:$0xff]  }
   0x4   :  { %287 = vmatprep.subr.bf16.mxu0 %v318_v1  ;;  %310 = vmatprep.subr.bf16.mxu1 %v318_v1  ;;  %v326_v9 = vld [vmem:[%s445_s0 + $0x30] sm:$0xff]   ;;  %v327_v10 = vld [vmem:[%s445_s0 + $0x18] sm:$0xff]   ;;  %v252_v12 = vld [vmem:[%s446_s2] ss:$0 sm:$0xff] }
   0x5   :  { %293 = vmatprep.mubr.msk.bf16.mxu0 %vm110_vm0, %v321_v3  ;;  %301 = vmatprep.mubr.msk.bf16.mxu1 %vm110_vm0, %v322_v4  ;;  %v328_v11 = vld [vmem:[%s445_s0 + $0x38] sm:$0xff]  }
   0x7   :  { %288 = vmatpush3.bf16.msra.mxu0 %v318_v1  ;;  %314 = vmatpush3.bf16.msra.mxu1 %v318_v1 }
   0x8   :  { %289 = vmatprep.subr.bf16.mxu0 %v319_v2  ;;  %311 = vmatprep.subr.bf16.mxu1 %v319_v2 }
   0xb   :  { %290 = vmatpush3.bf16.msra.mxu0 %v319_v2  ;;  %315 = vmatpush3.bf16.msra.mxu1 %v319_v2 }
   0xc   :  { %291 = vmatprep.subr.bf16.mxu0 %v320_v5  ;;  %312 = vmatprep.subr.bf16.mxu1 %v320_v5 }
   0xf   :  { %292 = vmatpush3.bf16.msra.mxu0 %v320_v5  ;;  %316 = vmatpush3.bf16.msra.mxu1 %v320_v5 }
  0x12   :  { %294 = vmatmul.mubr.msk.bf16.vlgmr.msra.gmra.mrb[0].mxu0 %vm110_vm0, %v323_v6  ;;  %302 = vmatmul.mubr.msk.bf16.vlgmr.msra.gmra.mrb[0].mxu1 %vm110_vm0, %v324_v7 }
  0x13   :  { %297 = vmatprep.mubr.msk.bf16.mxu0 %vm110_vm0, %v325_v8  ;;  %305 = vmatprep.mubr.msk.bf16.mxu1 %vm110_vm0, %v326_v9 }
  0x1a   :  { %298 = vmatmul.mubr.msk.bf16.gmra.mrb[4].mxu0 %vm110_vm0, %v327_v10  ;;  %306 = vmatmul.mubr.msk.bf16.gmra.mrb[4].mxu1 %vm110_vm0, %v328_v11 }
  0xe5   :  { %v295_v13 = vpop.f32.mrb[0].mxu0  ;;  %v303_v14 = vpop.f32.mrb[0].mxu1 }
  0xe6   :  { %v178_v15 = vadd.f32 %v295_v13, %v252_v12  ;;  %v210_v16 = vadd.f32 %v303_v14, %v252_v12  ;;  %v169_v17 = vpop.f32.mrb[1].mxu0  ;;  %v201_v18 = vpop.f32.mrb[1].mxu1 }
  0xe7   :  { %v170_v19 = vadd.f32 %v252_v12, %v169_v17  ;;  %v202_v20 = vadd.f32 %v252_v12, %v201_v18  ;;  %v296_v21 = vpop.f32.mrb[2].mxu0  ;;  %v304_v22 = vpop.f32.mrb[2].mxu1 }
  0xe8   :  { %234 = vst [vmem:[%s447_s3 + $0x10] sm:$0xff] %v178_v15  ;;  %242 = vst [vmem:[%s447_s3 + $0x50] sm:$0xff] %v210_v16  ;;  %v181_v23 = vadd.f32 %v296_v21, %v252_v12  ;;  %v213_v24 = vadd.f32 %v304_v22, %v252_v12  ;;  %v172_v25 = vpop.f32.mrb[3].mxu0  ;;  %v204_v26 = vpop.f32.mrb[3].mxu1 }
  0xe9   :  { %232 = vst [vmem:[%s447_s3] sm:$0xff] %v170_v19  ;;  %240 = vst [vmem:[%s447_s3 + $0x40] sm:$0xff] %v202_v20  ;;  %v173_v27 = vadd.f32 %v252_v12, %v172_v25  ;;  %v205_v28 = vadd.f32 %v252_v12, %v204_v26 }
  0xea   :  { %235 = vst [vmem:[%s447_s3 + $0x18] sm:$0xff] %v181_v23  ;;  %243 = vst [vmem:[%s447_s3 + $0x58] sm:$0xff] %v213_v24 }
  0xeb   :  { %233 = vst [vmem:[%s447_s3 + $0x8] sm:$0xff] %v173_v27  ;;  %241 = vst [vmem:[%s447_s3 + $0x48] sm:$0xff] %v205_v28 }
  0xed   :  { %v299_v29 = vpop.f32.mrb[4].mxu0  ;;  %v307_v30 = vpop.f32.mrb[4].mxu1 }
  0xee   :  { %v194_v31 = vadd.f32 %v299_v29, %v252_v12  ;;  %v226_v32 = vadd.f32 %v307_v30, %v252_v12  ;;  %v185_v33 = vpop.f32.mrb[5].mxu0  ;;  %v217_v34 = vpop.f32.mrb[5].mxu1 }
  0xef   :  { %v186_v35 = vadd.f32 %v252_v12, %v185_v33  ;;  %v218_v36 = vadd.f32 %v252_v12, %v217_v34  ;;  %v300_v37 = vpop.f32.mrb[6].mxu0  ;;  %v308_v38 = vpop.f32.mrb[6].mxu1 }
  0xf0   :  { %238 = vst [vmem:[%s447_s3 + $0x30] sm:$0xff] %v194_v31  ;;  %246 = vst [vmem:[%s447_s3 + $0x70] sm:$0xff] %v226_v32  ;;  %v197_v39 = vadd.f32 %v300_v37, %v252_v12  ;;  %v229_v40 = vadd.f32 %v308_v38, %v252_v12  ;;  %v188_v41 = vpop.f32.mrb[7].mxu0  ;;  %v220_v42 = vpop.f32.mrb[7].mxu1 }
  0xf1   :  { %236 = vst [vmem:[%s447_s3 + $0x20] sm:$0xff] %v186_v35  ;;  %244 = vst [vmem:[%s447_s3 + $0x60] sm:$0xff] %v218_v36  ;;  %v189_v43 = vadd.f32 %v252_v12, %v188_v41  ;;  %v221_v44 = vadd.f32 %v252_v12, %v220_v42 }
  0xf2   :  { %239 = vst [vmem:[%s447_s3 + $0x38] sm:$0xff] %v197_v39  ;;  %247 = vst [vmem:[%s447_s3 + $0x78] sm:$0xff] %v229_v40 }
  0xf3   :  { %237 = vst [vmem:[%s447_s3 + $0x28] sm:$0xff] %v189_v43  ;;  %245 = vst [vmem:[%s447_s3 + $0x68] sm:$0xff] %v221_v44 }

// kernel: forward.26
= control target key start
LH: loop header
LB: loop body
LE: loop exit
PB: predicated region body
PF: predicated region fallthrough
CT: control target
= control target key end

     0   :  { %s2926_s1 = inlined_call_operand.vmem [shape: bf16[1152,128], index: 1, kind: input, shape index: {}]   ;;  %s2927_s0 = inlined_call_operand.vmem [shape: bf16[128,1152], index: 0, kind: input, shape index: {}]   ;;  %s2928_s2 = inlined_call_operand.vmem [shape: f32[1,128], index: 2, kind: input, shape index: {}]   ;;  %s2929_s3 = inlined_call_operand.vmem [shape: bf16[128,128], index: 3, kind: output, shape index: {}]  }
   0x1   :  { %v2175_v0 = vld [vmem:[%s2926_s1 + $0x40] sm:$0xff]   ;;  %v2179_v4 = vld [vmem:[%s2926_s1 + $0x48] sm:$0xff]   ;;  %v2183_v8 = vld [vmem:[%s2926_s1 + $0x50] sm:$0xff]  }
   0x2   :  { %v2176_v1 = vld [vmem:[%s2926_s1 + $0xc0] sm:$0xff]   ;;  %1855 = vmatprep.subr.bf16.mxu0 %v2175_v0  ;;  %v2180_v5 = vld [vmem:[%s2926_s1 + $0xc8] sm:$0xff]   ;;  %v2184_v9 = vld [vmem:[%s2926_s1 + $0xd0] sm:$0xff]  }
   0x3   :  { %v2177_v2 = vld [vmem:[%s2926_s1] sm:$0xff]   ;;  %1919 = vmatprep.subr.bf16.mxu1 %v2176_v1  ;;  %v2181_v6 = vld [vmem:[%s2926_s1 + $0x8] sm:$0xff]   ;;  %v2185_v10 = vld [vmem:[%s2926_s1 + $0x10] sm:$0xff]  }
   0x4   :  { %v2178_v3 = vld [vmem:[%s2926_s1 + $0x80] sm:$0xff]   ;;  %1856 = vmatpush3.bf16.msra.mxu0 %v2177_v2  ;;  %v2182_v7 = vld [vmem:[%s2926_s1 + $0x88] sm:$0xff]   ;;  %v2186_v11 = vld [vmem:[%s2926_s1 + $0x90] sm:$0xff]  }
   0x5   :  { %1920 = vmatpush3.bf16.msra.mxu1 %v2178_v3  ;;  %1857 = vmatprep.subr.bf16.mxu0 %v2179_v4  ;;  %v2187_v12 = vld [vmem:[%s2926_s1 + $0x58] sm:$0xff]   ;;  %v2191_v16 = vld [vmem:[%s2926_s1 + $0x60] sm:$0xff]   ;;  %v2195_v20 = vld [vmem:[%s2926_s1 + $0x68] sm:$0xff]  }
   0x6   :  { %1921 = vmatprep.subr.bf16.mxu1 %v2180_v5  ;;  %v2188_v13 = vld [vmem:[%s2926_s1 + $0xd8] sm:$0xff]   ;;  %v2192_v17 = vld [vmem:[%s2926_s1 + $0xe0] sm:$0xff]   ;;  %v2196_v21 = vld [vmem:[%s2926_s1 + $0xe8] sm:$0xff]  }
   0x7   :  { %v2189_v14 = vld [vmem:[%s2926_s1 + $0x18] sm:$0xff]   ;;  %v2193_v18 = vld [vmem:[%s2926_s1 + $0x20] sm:$0xff]   ;;  %v2197_v22 = vld [vmem:[%s2926_s1 + $0x28] sm:$0xff]  }
   0x8   :  { %1858 = vmatpush3.bf16.msra.mxu0 %v2181_v6  ;;  %v2190_v15 = vld [vmem:[%s2926_s1 + $0x98] sm:$0xff]   ;;  %v2194_v19 = vld [vmem:[%s2926_s1 + $0xa0] sm:$0xff]   ;;  %v2198_v23 = vld [vmem:[%s2926_s1 + $0xa8] sm:$0xff]  }
   0x9   :  { %1922 = vmatpush3.bf16.msra.mxu1 %v2182_v7  ;;  %1859 = vmatprep.subr.bf16.mxu0 %v2183_v8  ;;  %v2199_v24 = vld [vmem:[%s2926_s1 + $0x70] sm:$0xff]   ;;  %v2203_v28 = vld [vmem:[%s2926_s1 + $0x78] sm:$0xff]   ;;  %v2207_v32 = vld [vmem:[%s2927_s0] ss:$36 sps:$4 sm:$0xff]  }
   0xa   :  { %1923 = vmatprep.subr.bf16.mxu1 %v2184_v9  ;;  %v2200_v25 = vld [vmem:[%s2926_s1 + $0xf0] sm:$0xff]   ;;  %v2204_v29 = vld [vmem:[%s2926_s1 + $0xf8] sm:$0xff]   ;;  %v2209_v33 = vld [vmem:[%s2927_s0 + $0x4] ss:$36 sps:$4 sm:$0xff]  }
   0xb   :  { %v2201_v26 = vld [vmem:[%s2926_s1 + $0x30] sm:$0xff]   ;;  %v2205_v30 = vld [vmem:[%s2926_s1 + $0x38] sm:$0xff]   ;;  %v2210_v34 = vld [vmem:[%s2927_s0 + $0x8] ss:$36 sps:$4 sm:$0xff]   ;;  %1078 = vmatprep.mubr.bf16.mxu0 %v2209_v33 }
   0xc   :  { %1860 = vmatpush3.bf16.msra.mxu0 %v2185_v10  ;;  %v2202_v27 = vld [vmem:[%s2926_s1 + $0xb0] sm:$0xff]   ;;  %v2206_v31 = vld [vmem:[%s2926_s1 + $0xb8] sm:$0xff]   ;;  %v2213_v36 = vld [vmem:[%s2926_s1 + $0x140] sm:$0xff]  }
   0xd   :  { %1924 = vmatpush3.bf16.msra.mxu1 %v2186_v11  ;;  %1861 = vmatprep.subr.bf16.mxu0 %v2187_v12  ;;  %v2212_v35 = vld [vmem:[%s2927_s0 + $0xc] ss:$36 sps:$4 sm:$0xff]   ;;  %v2214_v37 = vld [vmem:[%s2926_s1 + $0x1c0] sm:$0xff]   ;;  %v2219_v41 = vld [vmem:[%s2927_s0 + $0x54] ss:$36 sps:$4 sm:$0xff]  }
   0xe   :  { %1925 = vmatprep.subr.bf16.mxu1 %v2188_v13  ;;  %1175 = vmatprep.mubr.bf16.mxu1 %v2212_v35  ;;  %v2215_v38 = vld [vmem:[%s2926_s1 + $0x100] sm:$0xff]   ;;  %v2217_v40 = vld [vmem:[%s2927_s0 + $0x4c] ss:$36 sps:$4 sm:$0xff]   ;;  %v2227_v48 = vld [vmem:[%s2927_s0 + $0x94] ss:$36 sps:$4 sm:$0xff]  }
   0xf   :  { %v2216_v39 = vld [vmem:[%s2926_s1 + $0x180] sm:$0xff]   ;;  %v2221_v42 = vld [vmem:[%s2927_s0 + $0x48] ss:$36 sps:$4 sm:$0xff]   ;;  %v2222_v43 = vld [vmem:[%s2927_s0 + $0x50] ss:$36 sps:$4 sm:$0xff]  }
  0x10   :  { %1862 = vmatpush3.bf16.msra.mxu0 %v2189_v14  ;;  %v2223_v44 = vld [vmem:[%s2926_s1 + $0x148] sm:$0xff]   ;;  %v2229_v49 = vld [vmem:[%s2927_s0 + $0x9c] ss:$36 sps:$4 sm:$0xff]   ;;  %v2231_v50 = vld [vmem:[%s2927_s0 + $0x90] ss:$36 sps:$4 sm:$0xff]  }
  0x11   :  { %1926 = vmatpush3.bf16.msra.mxu1 %v2190_v15  ;;  %1863 = vmatprep.subr.bf16.mxu0 %v2191_v16  ;;  %v2224_v45 = vld [vmem:[%s2926_s1 + $0x1c8] sm:$0xff]   ;;  %v2232_v51 = vld [vmem:[%s2927_s0 + $0x98] ss:$36 sps:$4 sm:$0xff]   ;;  %v2233_v52 = vld [vmem:[%s2926_s1 + $0x150] sm:$0xff]  }
  0x12   :  { %1927 = vmatprep.subr.bf16.mxu1 %v2192_v17  ;;  %v2225_v46 = vld [vmem:[%s2926_s1 + $0x108] sm:$0xff]   ;;  %v2234_v53 = vld [vmem:[%s2926_s1 + $0x1d0] sm:$0xff]   ;;  %v2237_v56 = vld [vmem:[%s2927_s0 + $0xdc] ss:$36 sps:$4 sm:$0xff]  }
  0x13   :  { %v2226_v47 = vld [vmem:[%s2926_s1 + $0x188] sm:$0xff]   ;;  %v2235_v54 = vld [vmem:[%s2926_s1 + $0x110] sm:$0xff]   ;;  %v2241_v58 = vld [vmem:[%s2927_s0 + $0xd8] ss:$36 sps:$4 sm:$0xff]  }
  0x14   :  { %1864 = vmatpush3.bf16.msra.mxu0 %v2193_v18  ;;  %v2236_v55 = vld [vmem:[%s2926_s1 + $0x190] sm:$0xff]   ;;  %v2239_v57 = vld [vmem:[%s2927_s0 + $0xe4] ss:$36 sps:$4 sm:$0xff]   ;;  %v2243_v60 = vld [vmem:[%s2926_s1 + $0x158] sm:$0xff]  }
  0x15   :  { %1928 = vmatpush3.bf16.msra.mxu1 %v2194_v19  ;;  %1865 = vmatprep.subr.bf16.mxu0 %v2195_v20  ;;  %v2242_v59 = vld [vmem:[%s2927_s0 + $0xe0] ss:$36 sps:$4 sm:$0xff]   ;;  %v2244_v61 = vld [vmem:[%s2926_s1 + $0x1d8] sm:$0xff]   ;;  %v2249_v1 = vld [vmem:[%s2927_s0 + $0x12c] ss:$36 sps:$4 sm:$0xff]  }
  0x16   :  { %1929 = vmatprep.subr.bf16.mxu1 %v2196_v21  ;;  %v2245_v62 = vld [vmem:[%s2926_s1 + $0x118] sm:$0xff]   ;;  %v2247_v0 = vld [vmem:[%s2927_s0 + $0x124] ss:$36 sps:$4 sm:$0xff]   ;;  %v2257_v8 = vld [vmem:[%s2927_s0 + $0x16c] ss:$36 sps:$4 sm:$0xff]  }
  0x17   :  { %v2246_v63 = vld [vmem:[%s2926_s1 + $0x198] sm:$0xff]   ;;  %v2251_v2 = vld [vmem:[%s2927_s0 + $0x120] ss:$36 sps:$4 sm:$0xff]   ;;  %v2252_v4 = vld [vmem:[%s2927_s0 + $0x128] ss:$36 sps:$4 sm:$0xff]  }
  0x18   :  { %1866 = vmatpush3.bf16.msra.mxu0 %v2197_v22  ;;  %v2253_v3 = vld [vmem:[%s2926_s1 + $0x160] sm:$0xff]   ;;  %v2259_v9 = vld [vmem:[%s2927_s0 + $0x174] ss:$36 sps:$4 sm:$0xff]   ;;  %v2263_v10 = vld [vmem:[%s2926_s1 + $0x168] sm:$0xff]  }
  0x19   :  { %1930 = vmatpush3.bf16.msra.mxu1 %v2198_v23  ;;  %1867 = vmatprep.subr.bf16.mxu0 %v2199_v24  ;;  %v2254_v5 = vld [vmem:[%s2926_s1 + $0x1e0] sm:$0xff]   ;;  %v2264_v11 = vld [vmem:[%s2926_s1 + $0x1e8] sm:$0xff]   ;;  %v2262_v15 = vld [vmem:[%s2927_s0 + $0x170] ss:$36 sps:$4 sm:$0xff]  }
  0x1a   :  { %1931 = vmatprep.subr.bf16.mxu1 %v2200_v25  ;;  %v2255_v6 = vld [vmem:[%s2926_s1 + $0x120] sm:$0xff]   ;;  %v2261_v12 = vld [vmem:[%s2927_s0 + $0x168] ss:$36 sps:$4 sm:$0xff]   ;;  %v2267_v16 = vld [vmem:[%s2927_s0 + $0x1b4] ss:$36 sps:$4 sm:$0xff]  }
  0x1b   :  { %v2256_v7 = vld [vmem:[%s2926_s1 + $0x1a0] sm:$0xff]   ;;  %v2265_v13 = vld [vmem:[%s2926_s1 + $0x128] sm:$0xff]   ;;  %v2273_v18 = vld [vmem:[%s2926_s1 + $0x170] sm:$0xff]  }
  0x1c   :  { %1868 = vmatpush3.bf16.msra.mxu0 %v2201_v26  ;;  %v2266_v14 = vld [vmem:[%s2926_s1 + $0x1a8] sm:$0xff]   ;;  %v2269_v17 = vld [vmem:[%s2927_s0 + $0x1bc] ss:$36 sps:$4 sm:$0xff]   ;;  %v2274_v19 = vld [vmem:[%s2926_s1 + $0x1f0] sm:$0xff]  }
  0x1d   :  { %1932 = vmatpush3.bf16.msra.mxu1 %v2202_v27  ;;  %1869 = vmatprep.subr.bf16.mxu0 %v2203_v28  ;;  %v2275_v20 = vld [vmem:[%s2926_s1 + $0x130] sm:$0xff]   ;;  %v2272_v23 = vld [vmem:[%s2927_s0 + $0x1b8] ss:$36 sps:$4 sm:$0xff]   ;;  %v2279_v25 = vld [vmem:[%s2927_s0 + $0x204] ss:$36 sps:$4 sm:$0xff]  }
  0x1e   :  { %1933 = vmatprep.subr.bf16.mxu1 %v2204_v29  ;;  %v2276_v21 = vld [vmem:[%s2926_s1 + $0x1b0] sm:$0xff]   ;;  %v2277_v24 = vld [vmem:[%s2927_s0 + $0x1fc] ss:$36 sps:$4 sm:$0xff]  }
  0x1f   :  { %v2271_v22 = vld [vmem:[%s2927_s0 + $0x1b0] ss:$36 sps:$4 sm:$0xff]   ;;  %v2283_v26 = vld [vmem:[%s2926_s1 + $0x178] sm:$0xff]  }
  0x20   :  { %1870 = vmatpush3.bf16.msra.mxu0 %v2205_v30  ;;  %v2284_v27 = vld [vmem:[%s2926_s1 + $0x1f8] sm:$0xff]   ;;  %v2287_v35 = vld [vmem:[%s2927_s0 + $0x10] ss:$36 sps:$4 sm:$0xff]  }
  0x21   :  { %1934 = vmatpush3.bf16.msra.mxu1 %v2206_v31  ;;  %1983 = vmatprep.subr.bf16.mxu0 %v2213_v36  ;;  %v2285_v28 = vld [vmem:[%s2926_s1 + $0x138] sm:$0xff]   ;;  %v2282_v31 = vld [vmem:[%s2927_s0 + $0x200] ss:$36 sps:$4 sm:$0xff]  }
  0x22   :  { %2047 = vmatprep.subr.bf16.mxu1 %v2214_v37  ;;  %v2286_v29 = vld [vmem:[%s2926_s1 + $0x1b8] sm:$0xff]  }
  0x23   :  { %1079 = vmatmul.mubr.bf16.vlgmr.msra.gmra.mrb[0].mxu0 %v2207_v32  ;;  %v2281_v30 = vld [vmem:[%s2927_s0 + $0x1f8] ss:$36 sps:$4 sm:$0xff]   ;;  %v2293_v32 = vld [vmem:[%s2926_s1 + $0x200] sm:$0xff]  }
  0x24   :  { %1176 = vmatmul.mubr.bf16.vlgmr.msra.gmra.mrb[0].mxu1 %v2210_v34  ;;  %1984 = vmatpush3.bf16.msra.mxu0 %v2215_v38  ;;  %v2289_v33 = vld [vmem:[%s2927_s0 + $0x14] ss:$36 sps:$4 sm:$0xff]   ;;  %v2292_v34 = vld [vmem:[%s2927_s0 + $0x1c] ss:$36 sps:$4 sm:$0xff]   ;;  %v2296_v38 = vld [vmem:[%s2927_s0 + $0x64] ss:$36 sps:$4 sm:$0xff]  }
  0x25   :  { %2048 = vmatpush3.bf16.msra.mxu1 %v2216_v39  ;;  %1086 = vmatprep.mubr.bf16.mxu0 %v2217_v40  ;;  %v2290_v36 = vld [vmem:[%s2927_s0 + $0x18] ss:$36 sps:$4 sm:$0xff]   ;;  %v2300_v39 = vld [vmem:[%s2926_s1 + $0x208] sm:$0xff]   ;;  %v2307_v40 = vld [vmem:[%s2926_s1 + $0x210] sm:$0xff]  }
  0x26   :  { %1183 = vmatprep.mubr.bf16.mxu1 %v2219_v41  ;;  %1985 = vmatprep.subr.bf16.mxu0 %v2223_v44  ;;  %v2294_v37 = vld [vmem:[%s2927_s0 + $0x5c] ss:$36 sps:$4 sm:$0xff]   ;;  %v2303_v44 = vld [vmem:[%s2927_s0 + $0xac] ss:$36 sps:$4 sm:$0xff]  }
  0x27   :  { %2049 = vmatprep.subr.bf16.mxu1 %v2224_v45  ;;  %v2298_v41 = vld [vmem:[%s2927_s0 + $0x58] ss:$36 sps:$4 sm:$0xff]  }
  0x28   :  { %1986 = vmatpush3.bf16.msra.mxu0 %v2225_v46  ;;  %v2314_v45 = vld [vmem:[%s2926_s1 + $0x218] sm:$0xff]   ;;  %v2321_v46 = vld [vmem:[%s2926_s1 + $0x220] sm:$0xff]  }
  0x29   :  { %2050 = vmatpush3.bf16.msra.mxu1 %v2226_v47  ;;  %1987 = vmatprep.subr.bf16.mxu0 %v2233_v52  ;;  %v2305_v47 = vld [vmem:[%s2927_s0 + $0xa0] ss:$36 sps:$4 sm:$0xff]   ;;  %v2312_v52 = vld [vmem:[%s2927_s0 + $0xe8] ss:$36 sps:$4 sm:$0xff]  }
  0x2a   :  { %2051 = vmatprep.subr.bf16.mxu1 %v2234_v53  ;;  %v2335_v53 = vld [vmem:[%s2926_s1 + $0x230] sm:$0xff]  }
  0x2b   :  { %1087 = vmatmul.mubr.bf16.gmra.mrb[4].mxu0 %v2221_v42  ;;  %v2299_v42 = vld [vmem:[%s2927_s0 + $0x60] ss:$36 sps:$4 sm:$0xff]  }
  0x2c   :  { %1184 = vmatmul.mubr.bf16.gmra.mrb[4].mxu1 %v2222_v43  ;;  %1094 = vmatprep.mubr.bf16.mxu0 %v2227_v48  ;;  %v2301_v43 = vld [vmem:[%s2927_s0 + $0xa4] ss:$36 sps:$4 sm:$0xff]  }
  0x2d   :  { %1191 = vmatprep.mubr.bf16.mxu1 %v2229_v49  ;;  %1988 = vmatpush3.bf16.msra.mxu0 %v2235_v54  ;;  %v2306_v48 = vld [vmem:[%s2927_s0 + $0xa8] ss:$36 sps:$4 sm:$0xff]   ;;  %v2313_v54 = vld [vmem:[%s2927_s0 + $0xf0] ss:$36 sps:$4 sm:$0xff]  }
  0x2e   :  { %2052 = vmatpush3.bf16.msra.mxu1 %v2236_v55  ;;  %1989 = vmatprep.subr.bf16.mxu0 %v2243_v60  ;;  %v2308_v49 = vld [vmem:[%s2927_s0 + $0xec] ss:$36 sps:$4 sm:$0xff]   ;;  %v2315_v55 = vld [vmem:[%s2927_s0 + $0x134] ss:$36 sps:$4 sm:$0xff]   ;;  %v2322_v60 = vld [vmem:[%s2927_s0 + $0x17c] ss:$36 sps:$4 sm:$0xff]  }
  0x2f   :  { %2053 = vmatprep.subr.bf16.mxu1 %v2244_v61  ;;  %v2324_v61 = vld [vmem:[%s2927_s0 + $0x184] ss:$36 sps:$4 sm:$0xff]  }
  0x31   :  { %1990 = vmatpush3.bf16.msra.mxu0 %v2245_v62  ;;  %v2326_v62 = vld [vmem:[%s2927_s0 + $0x178] ss:$36 sps:$4 sm:$0xff]  }
  0x32   :  { %2054 = vmatpush3.bf16.msra.mxu1 %v2246_v63  ;;  %1991 = vmatprep.subr.bf16.mxu0 %v2253_v3  ;;  %v2327_v63 = vld [vmem:[%s2927_s0 + $0x180] ss:$36 sps:$4 sm:$0xff]   ;;  %v2334_v3 = vld [vmem:[%s2927_s0 + $0x1c8] ss:$36 sps:$4 sm:$0xff]  }
  0x33   :  { %1095 = vmatmul.mubr.bf16.gmra.mrb[8].mxu0 %v2231_v50  ;;  %2055 = vmatprep.subr.bf16.mxu1 %v2254_v5  ;;  %v2310_v50 = vld [vmem:[%s2927_s0 + $0xf4] ss:$36 sps:$4 sm:$0xff]  }
  0x34   :  { %1192 = vmatmul.mubr.bf16.gmra.mrb[8].mxu1 %v2232_v51  ;;  %1102 = vmatprep.mubr.bf16.mxu0 %v2237_v56  ;;  %v2328_v51 = vld [vmem:[%s2926_s1 + $0x228] sm:$0xff]   ;;  %v2317_v56 = vld [vmem:[%s2927_s0 + $0x13c] ss:$36 sps:$4 sm:$0xff]   ;;  %v2338_v5 = vld [vmem:[%s2927_s0 + $0x214] ss:$36 sps:$4 sm:$0xff]  }
  0x35   :  { %1199 = vmatprep.mubr.bf16.mxu1 %v2239_v57  ;;  %1992 = vmatpush3.bf16.msra.mxu0 %v2255_v6  ;;  %v2342_v57 = vld [vmem:[%s2926_s1 + $0x238] sm:$0xff]   ;;  %v2340_v6 = vld [vmem:[%s2927_s0 + $0x208] ss:$36 sps:$4 sm:$0xff]  }
  0x36   :  { %2056 = vmatpush3.bf16.msra.mxu1 %v2256_v7  ;;  %1993 = vmatprep.subr.bf16.mxu0 %v2263_v10  ;;  %v2341_v7 = vld [vmem:[%s2927_s0 + $0x210] ss:$36 sps:$4 sm:$0xff]   ;;  %v2345_v10 = vld [vmem:[%s2927_s0 + $0x68] ss:$36 sps:$4 sm:$0xff]  }
  0x37   :  { %2057 = vmatprep.subr.bf16.mxu1 %v2264_v11  ;;  %v2346_v11 = vld [vmem:[%s2927_s0 + $0x188] ss:$36 sps:$4 sm:$0xff]  }
  0x39   :  { %1994 = vmatpush3.bf16.msra.mxu0 %v2265_v13  ;;  %v2348_v13 = vld [vmem:[%s2927_s0 + $0x1d0] ss:$36 sps:$4 sm:$0xff]  }
  0x3a   :  { %2058 = vmatpush3.bf16.msra.mxu1 %v2266_v14  ;;  %1995 = vmatprep.subr.bf16.mxu0 %v2273_v18  ;;  %v2349_v14 = vld [vmem:[%s2927_s0 + $0xf8] ss:$36 sps:$4 sm:$0xff]   ;;  %v2806_v18 = vld [vmem:[%s2928_s2] ss:$0 sm:$0xff] }
  0x3b   :  { %1103 = vmatmul.mubr.bf16.gmra.mrb[12].mxu0 %v2241_v58  ;;  %2059 = vmatprep.subr.bf16.mxu1 %v2274_v19  ;;  %v2319_v58 = vld [vmem:[%s2927_s0 + $0x130] ss:$36 sps:$4 sm:$0xff]  }
  0x3c   :  { %1200 = vmatmul.mubr.bf16.gmra.mrb[12].mxu1 %v2242_v59  ;;  %1110 = vmatprep.mubr.bf16.mxu0 %v2247_v0  ;;  %v2320_v59 = vld [vmem:[%s2927_s0 + $0x138] ss:$36 sps:$4 sm:$0xff]   ;;  %v2329_v0 = vld [vmem:[%s2927_s0 + $0x1c4] ss:$36 sps:$4 sm:$0xff]  }
  0x3d   :  { %1207 = vmatprep.mubr.bf16.mxu1 %v2249_v1  ;;  %1996 = vmatpush3.bf16.msra.mxu0 %v2275_v20  ;;  %v2331_v1 = vld [vmem:[%s2927_s0 + $0x1cc] ss:$36 sps:$4 sm:$0xff]  }
  0x3e   :  { %2060 = vmatpush3.bf16.msra.mxu1 %v2276_v21  ;;  %1997 = vmatprep.subr.bf16.mxu0 %v2283_v26 }
  0x3f   :  { %2061 = vmatprep.subr.bf16.mxu1 %v2284_v27 }
  0x41   :  { %1998 = vmatpush3.bf16.msra.mxu0 %v2285_v28 }
  0x42   :  { %2062 = vmatpush3.bf16.msra.mxu1 %v2286_v29  ;;  %2127 = vmatprep.subr.bf16.mxu0 %v2293_v32 }
  0x43   :  { %1111 = vmatmul.mubr.bf16.gmra.mrb[16].mxu0 %v2251_v2  ;;  %2159 = vmatprep.subr.bf16.mxu1 %v2293_v32  ;;  %v2333_v2 = vld [vmem:[%s2927_s0 + $0x1c0] ss:$36 sps:$4 sm:$0xff]  }
  0x44   :  { %1208 = vmatmul.mubr.bf16.gmra.mrb[16].mxu1 %v2252_v4  ;;  %1118 = vmatprep.mubr.bf16.mxu0 %v2257_v8  ;;  %v2336_v4 = vld [vmem:[%s2927_s0 + $0x20c] ss:$36 sps:$4 sm:$0xff]   ;;  %v2343_v8 = vld [vmem:[%s2927_s0 + $0x20] ss:$36 sps:$4 sm:$0xff]  }
  0x45   :  { %1215 = vmatprep.mubr.bf16.mxu1 %v2259_v9  ;;  %v2344_v9 = vld [vmem:[%s2927_s0 + $0x140] ss:$36 sps:$4 sm:$0xff]  }
  0x4b   :  { %1119 = vmatmul.mubr.bf16.gmra.mrb[20].mxu0 %v2261_v12  ;;  %v2347_v12 = vld [vmem:[%s2927_s0 + $0xb0] ss:$36 sps:$4 sm:$0xff]  }
  0x4c   :  { %1216 = vmatmul.mubr.bf16.gmra.mrb[20].mxu1 %v2262_v15  ;;  %1126 = vmatprep.mubr.bf16.mxu0 %v2267_v16  ;;  %v2350_v15 = vld [vmem:[%s2927_s0 + $0x218] ss:$36 sps:$4 sm:$0xff]  }
  0x4d   :  { %1223 = vmatprep.mubr.bf16.mxu1 %v2269_v17 }
  0x53   :  { %1127 = vmatmul.mubr.bf16.gmra.mrb[24].mxu0 %v2271_v22 }
  0x54   :  { %1224 = vmatmul.mubr.bf16.gmra.mrb[24].mxu1 %v2272_v23  ;;  %1134 = vmatprep.mubr.bf16.mxu0 %v2277_v24 }
  0x55   :  { %1231 = vmatprep.mubr.bf16.mxu1 %v2279_v25 }
  0x5b   :  { %1135 = vmatmul.mubr.bf16.gmra.mrb[28].mxu0 %v2281_v30 }
  0x5c   :  { %1232 = vmatmul.mubr.bf16.gmra.mrb[28].mxu1 %v2282_v31  ;;  %1272 = vmatprep.mubr.bf16.mxu0 %v2289_v33 }
  0x5d   :  { %1369 = vmatprep.mubr.bf16.mxu1 %v2292_v34 }
  0x63   :  { %1273 = vmatmul.mubr.bf16.vlgmr.msra.gmra.mrb[32].mxu0 %v2287_v35 }
  0x64   :  { %1370 = vmatmul.mubr.bf16.vlgmr.msra.gmra.mrb[32].mxu1 %v2290_v36  ;;  %2128 = vmatpush3.bf16.msra.mxu0 %v2293_v32 }
  0x65   :  { %2167 = vmatpush3.bf16.msra.mxu1 %v2293_v32  ;;  %1280 = vmatprep.mubr.bf16.mxu0 %v2294_v37 }
  0x66   :  { %1377 = vmatprep.mubr.bf16.mxu1 %v2296_v38  ;;  %2129 = vmatprep.subr.bf16.mxu0 %v2300_v39 }
  0x67   :  { %2160 = vmatprep.subr.bf16.mxu1 %v2300_v39 }
  0x68   :  { %2130 = vmatpush3.bf16.msra.mxu0 %v2300_v39 }
  0x69   :  { %2168 = vmatpush3.bf16.msra.mxu1 %v2300_v39  ;;  %2131 = vmatprep.subr.bf16.mxu0 %v2307_v40 }
  0x6a   :  { %2161 = vmatprep.subr.bf16.mxu1 %v2307_v40 }
  0x6b   :  { %1281 = vmatmul.mubr.bf16.gmra.mrb[36].mxu0 %v2298_v41 }
  0x6c   :  { %1378 = vmatmul.mubr.bf16.gmra.mrb[36].mxu1 %v2299_v42  ;;  %1288 = vmatprep.mubr.bf16.mxu0 %v2301_v43 }
  0x6d   :  { %1385 = vmatprep.mubr.bf16.mxu1 %v2303_v44  ;;  %2132 = vmatpush3.bf16.msra.mxu0 %v2307_v40 }
  0x6e   :  { %2169 = vmatpush3.bf16.msra.mxu1 %v2307_v40  ;;  %2133 = vmatprep.subr.bf16.mxu0 %v2314_v45 }
  0x6f   :  { %2162 = vmatprep.subr.bf16.mxu1 %v2314_v45 }
  0x71   :  { %2134 = vmatpush3.bf16.msra.mxu0 %v2314_v45 }
  0x72   :  { %2170 = vmatpush3.bf16.msra.mxu1 %v2314_v45  ;;  %2135 = vmatprep.subr.bf16.mxu0 %v2321_v46 }
  0x73   :  { %1289 = vmatmul.mubr.bf16.gmra.mrb[40].mxu0 %v2305_v47  ;;  %2163 = vmatprep.subr.bf16.mxu1 %v2321_v46 }
  0x74   :  { %1386 = vmatmul.mubr.bf16.gmra.mrb[40].mxu1 %v2306_v48  ;;  %1296 = vmatprep.mubr.bf16.mxu0 %v2308_v49 }
  0x75   :  { %1393 = vmatprep.mubr.bf16.mxu1 %v2310_v50  ;;  %2136 = vmatpush3.bf16.msra.mxu0 %v2321_v46 }
  0x76   :  { %2171 = vmatpush3.bf16.msra.mxu1 %v2321_v46  ;;  %2137 = vmatprep.subr.bf16.mxu0 %v2328_v51 }
  0x77   :  { %2164 = vmatprep.subr.bf16.mxu1 %v2328_v51 }
  0x79   :  { %2138 = vmatpush3.bf16.msra.mxu0 %v2328_v51 }
  0x7a   :  { %2172 = vmatpush3.bf16.msra.mxu1 %v2328_v51  ;;  %2139 = vmatprep.subr.bf16.mxu0 %v2335_v53 }
  0x7b   :  { %1297 = vmatmul.mubr.bf16.gmra.mrb[44].mxu0 %v2312_v52  ;;  %2165 = vmatprep.subr.bf16.mxu1 %v2335_v53 }
  0x7c   :  { %1394 = vmatmul.mubr.bf16.gmra.mrb[44].mxu1 %v2313_v54  ;;  %1304 = vmatprep.mubr.bf16.mxu0 %v2315_v55 }
  0x7d   :  { %1401 = vmatprep.mubr.bf16.mxu1 %v2317_v56  ;;  %2140 = vmatpush3.bf16.msra.mxu0 %v2335_v53 }
  0x7e   :  { %2173 = vmatpush3.bf16.msra.mxu1 %v2335_v53  ;;  %2141 = vmatprep.subr.bf16.mxu0 %v2342_v57 }
  0x7f   :  { %2166 = vmatprep.subr.bf16.mxu1 %v2342_v57 }
  0x81   :  { %2142 = vmatpush3.bf16.msra.mxu0 %v2342_v57 }
  0x82   :  { %2174 = vmatpush3.bf16.msra.mxu1 %v2342_v57 }
  0x83   :  { %1305 = vmatmul.mubr.bf16.gmra.mrb[48].mxu0 %v2319_v58 }
  0x84   :  { %1402 = vmatmul.mubr.bf16.gmra.mrb[48].mxu1 %v2320_v59  ;;  %1312 = vmatprep.mubr.bf16.mxu0 %v2322_v60 }
  0x85   :  { %1409 = vmatprep.mubr.bf16.mxu1 %v2324_v61 }
  0x8b   :  { %1313 = vmatmul.mubr.bf16.gmra.mrb[52].mxu0 %v2326_v62 }
  0x8c   :  { %1410 = vmatmul.mubr.bf16.gmra.mrb[52].mxu1 %v2327_v63  ;;  %1320 = vmatprep.mubr.bf16.mxu0 %v2329_v0 }
  0x8d   :  { %1417 = vmatprep.mubr.bf16.mxu1 %v2331_v1 }
  0x93   :  { %1321 = vmatmul.mubr.bf16.gmra.mrb[56].mxu0 %v2333_v2 }
  0x94   :  { %1418 = vmatmul.mubr.bf16.gmra.mrb[56].mxu1 %v2334_v3  ;;  %1328 = vmatprep.mubr.bf16.mxu0 %v2336_v4 }
  0x95   :  { %1425 = vmatprep.mubr.bf16.mxu1 %v2338_v5 }
  0x9b   :  { %1329 = vmatmul.mubr.bf16.gmra.mrb[60].mxu0 %v2340_v6 }
  0x9c   :  { %1426 = vmatmul.mubr.bf16.gmra.mrb[60].mxu1 %v2341_v7  ;;  %2143 = vmatprep.mubr.bf16.mxu0 %v2343_v8 }
  0x9d   :  { %2151 = vmatprep.mubr.bf16.mxu1 %v2344_v9 }
  0xa3   :  { %2144 = vmatmul.mubr.bf16.vlgmr.msra.gmra.mrb[64].mxu0 %v2345_v10 }
  0xa4   :  { %2152 = vmatmul.mubr.bf16.vlgmr.msra.gmra.mrb[64].mxu1 %v2346_v11  ;;  %2147 = vmatprep.mubr.bf16.mxu0 %v2347_v12 }
  0xa5   :  { %2155 = vmatprep.mubr.bf16.mxu1 %v2348_v13 }
  0xab   :  { %2148 = vmatmul.mubr.bf16.gmra.mrb[68].mxu0 %v2349_v14 }
  0xac   :  { %2156 = vmatmul.mubr.bf16.gmra.mrb[68].mxu1 %v2350_v15 }
  0xf6   :  { %v1871_v16 = vpop.f32.mrb[0].mxu0 }
  0xf7   :  { %v1935_v17 = vpop.f32.mrb[0].mxu1  ;;  %v1872_v19 = vpop.f32.mrb[1].mxu0 }
  0xf8   :  { %v1873_v20 = vadd.f32 %v1872_v19, %v1871_v16  ;;  %v1936_v21 = vpop.f32.mrb[1].mxu1  ;;  %v1874_v22 = vpop.f32.mrb[2].mxu0 }
  0xf9   :  { %v1937_v23 = vadd.f32 %v1936_v21, %v1935_v17  ;;  %v1938_v24 = vpop.f32.mrb[2].mxu1  ;;  %v1875_v25 = vpop.f32.mrb[3].mxu0 }
  0xfa   :  { %v1081_v26 = vadd.f32 %v1873_v20, %v2806_v18  ;;  %v1876_v27 = vadd.f32 %v1875_v25, %v1874_v22  ;;  %v1939_v28 = vpop.f32.mrb[3].mxu1 }
  0xfb   :  { %v1940_v29 = vadd.f32 %v1939_v28, %v1938_v24 }
  0xfc   :  { %v2809_v30 = vadd.f32 %v1937_v23, %v1081_v26  ;;  %v1084_v31 = vadd.f32 %v1876_v27, %v2806_v18 }
  0xfe   :  { %v2812_v32 = vadd.f32 %v1940_v29, %v1084_v31  ;;  %v1877_v33 = vpop.f32.mrb[4].mxu0 }
  0xff   :  { %v1941_v34 = vpop.f32.mrb[4].mxu1  ;;  %v1878_v35 = vpop.f32.mrb[5].mxu0 }
 0x100   :  { %v1879_v36 = vadd.f32 %v1878_v35, %v1877_v33  ;;  %v1942_v37 = vpop.f32.mrb[5].mxu1  ;;  %v1880_v38 = vpop.f32.mrb[6].mxu0 }
 0x101   :  { %v1943_v39 = vadd.f32 %v1942_v37, %v1941_v34  ;;  %v1944_v40 = vpop.f32.mrb[6].mxu1  ;;  %v1881_v41 = vpop.f32.mrb[7].mxu0 }
 0x102   :  { %v1089_v42 = vadd.f32 %v1879_v36, %v2806_v18  ;;  %v1882_v43 = vadd.f32 %v1881_v41, %v1880_v38  ;;  %v1945_v44 = vpop.f32.mrb[7].mxu1 }
 0x103   :  { %v1946_v45 = vadd.f32 %v1945_v44, %v1944_v40 }
 0x104   :  { %v2815_v46 = vadd.f32 %v1943_v39, %v1089_v42  ;;  %v1092_v47 = vadd.f32 %v1882_v43, %v2806_v18 }
 0x106   :  { %v2818_v48 = vadd.f32 %v1946_v45, %v1092_v47  ;;  %v1883_v49 = vpop.f32.mrb[8].mxu0 }
 0x107   :  { %v1947_v50 = vpop.f32.mrb[8].mxu1  ;;  %v1884_v51 = vpop.f32.mrb[9].mxu0 }
 0x108   :  { %v1885_v52 = vadd.f32 %v1884_v51, %v1883_v49  ;;  %v1948_v53 = vpop.f32.mrb[9].mxu1  ;;  %v1886_v54 = vpop.f32.mrb[10].mxu0 }
 0x109   :  { %v1949_v55 = vadd.f32 %v1948_v53, %v1947_v50  ;;  %v1950_v56 = vpop.f32.mrb[10].mxu1  ;;  %v1887_v57 = vpop.f32.mrb[11].mxu0 }
 0x10a   :  { %v1097_v58 = vadd.f32 %v1885_v52, %v2806_v18  ;;  %v1888_v59 = vadd.f32 %v1887_v57, %v1886_v54  ;;  %v1951_v60 = vpop.f32.mrb[11].mxu1 }
 0x10b   :  { %v1952_v61 = vadd.f32 %v1951_v60, %v1950_v56 }
 0x10c   :  { %v2821_v62 = vadd.f32 %v1949_v55, %v1097_v58  ;;  %v1100_v63 = vadd.f32 %v1888_v59, %v2806_v18 }
 0x10e   :  { %v2824_v0 = vadd.f32 %v1952_v61, %v1100_v63  ;;  %v1889_v1 = vpop.f32.mrb[12].mxu0 }
 0x10f   :  { %v1953_v2 = vpop.f32.mrb[12].mxu1  ;;  %v1890_v3 = vpop.f32.mrb[13].mxu0 }
 0x110   :  { %v1891_v4 = vadd.f32 %v1890_v3, %v1889_v1  ;;  %v1954_v5 = vpop.f32.mrb[13].mxu1  ;;  %v1892_v6 = vpop.f32.mrb[14].mxu0 }
 0x111   :  { %v1955_v7 = vadd.f32 %v1954_v5, %v1953_v2  ;;  %v1956_v8 = vpop.f32.mrb[14].mxu1  ;;  %v1893_v9 = vpop.f32.mrb[15].mxu0 }
 0x112   :  { %v1105_v10 = vadd.f32 %v1891_v4, %v2806_v18  ;;  %v1894_v11 = vadd.f32 %v1893_v9, %v1892_v6  ;;  %v1957_v12 = vpop.f32.mrb[15].mxu1 }
 0x113   :  { %v1958_v13 = vadd.f32 %v1957_v12, %v1956_v8 }
 0x114   :  { %v2827_v14 = vadd.f32 %v1955_v7, %v1105_v10  ;;  %v1108_v15 = vadd.f32 %v1894_v11, %v2806_v18 }
 0x116   :  { %v2830_v16 = vadd.f32 %v1958_v13, %v1108_v15  ;;  %v1895_v17 = vpop.f32.mrb[16].mxu0 }
 0x117   :  { %v1959_v19 = vpop.f32.mrb[16].mxu1  ;;  %v1896_v20 = vpop.f32.mrb[17].mxu0 }
 0x118   :  { %v1897_v21 = vadd.f32 %v1896_v20, %v1895_v17  ;;  %v1960_v22 = vpop.f32.mrb[17].mxu1  ;;  %v1898_v23 = vpop.f32.mrb[18].mxu0 }
 0x119   :  { %v1961_v24 = vadd.f32 %v1960_v22, %v1959_v19  ;;  %v1962_v25 = vpop.f32.mrb[18].mxu1  ;;  %v1899_v26 = vpop.f32.mrb[19].mxu0 }
 0x11a   :  { %v1113_v27 = vadd.f32 %v1897_v21, %v2806_v18  ;;  %v1900_v28 = vadd.f32 %v1899_v26, %v1898_v23  ;;  %v1963_v29 = vpop.f32.mrb[19].mxu1 }
 0x11b   :  { %v1964_v31 = vadd.f32 %v1963_v29, %v1962_v25 }
 0x11c   :  { %v2833_v33 = vadd.f32 %v1961_v24, %v1113_v27  ;;  %v1116_v34 = vadd.f32 %v1900_v28, %v2806_v18 }
 0x11e   :  { %v2836_v35 = vadd.f32 %v1964_v31, %v1116_v34  ;;  %v1901_v36 = vpop.f32.mrb[20].mxu0 }
 0x11f   :  { %v1965_v37 = vpop.f32.mrb[20].mxu1  ;;  %v1902_v38 = vpop.f32.mrb[21].mxu0 }
 0x120   :  { %v1903_v39 = vadd.f32 %v1902_v38, %v1901_v36  ;;  %v1966_v40 = vpop.f32.mrb[21].mxu1  ;;  %v1904_v41 = vpop.f32.mrb[22].mxu0 }
 0x121   :  { %v1967_v42 = vadd.f32 %v1966_v40, %v1965_v37  ;;  %v1968_v43 = vpop.f32.mrb[22].mxu1  ;;  %v1905_v44 = vpop.f32.mrb[23].mxu0 }
 0x122   :  { %v1121_v45 = vadd.f32 %v1903_v39, %v2806_v18  ;;  %v1906_v47 = vadd.f32 %v1905_v44, %v1904_v41  ;;  %v1969_v49 = vpop.f32.mrb[23].mxu1 }
 0x123   :  { %v1970_v50 = vadd.f32 %v1969_v49, %v1968_v43 }
 0x124   :  { %v2839_v51 = vadd.f32 %v1967_v42, %v1121_v45  ;;  %v1124_v52 = vadd.f32 %v1906_v47, %v2806_v18 }
 0x126   :  { %v2842_v53 = vadd.f32 %v1970_v50, %v1124_v52  ;;  %v1907_v54 = vpop.f32.mrb[24].mxu0 }
 0x127   :  { %v1971_v55 = vpop.f32.mrb[24].mxu1  ;;  %v1908_v56 = vpop.f32.mrb[25].mxu0 }
 0x128   :  { %v1909_v57 = vadd.f32 %v1908_v56, %v1907_v54  ;;  %v1972_v58 = vpop.f32.mrb[25].mxu1  ;;  %v1910_v59 = vpop.f32.mrb[26].mxu0 }
 0x129   :  { %v1973_v60 = vadd.f32 %v1972_v58, %v1971_v55  ;;  %v1974_v61 = vpop.f32.mrb[26].mxu1  ;;  %v1911_v63 = vpop.f32.mrb[27].mxu0 }
 0x12a   :  { %v1129_v1 = vadd.f32 %v1909_v57, %v2806_v18  ;;  %v1912_v2 = vadd.f32 %v1911_v63, %v1910_v59  ;;  %v1975_v3 = vpop.f32.mrb[27].mxu1 }
 0x12b   :  { %v1976_v4 = vadd.f32 %v1975_v3, %v1974_v61 }
 0x12c   :  { %v2845_v5 = vadd.f32 %v1973_v60, %v1129_v1  ;;  %v1132_v6 = vadd.f32 %v1912_v2, %v2806_v18 }
 0x12e   :  { %v2848_v7 = vadd.f32 %v1976_v4, %v1132_v6  ;;  %v1913_v8 = vpop.f32.mrb[28].mxu0 }
 0x12f   :  { %v1977_v9 = vpop.f32.mrb[28].mxu1  ;;  %v1914_v10 = vpop.f32.mrb[29].mxu0 }
 0x130   :  { %v1915_v11 = vadd.f32 %v1914_v10, %v1913_v8  ;;  %v1978_v12 = vpop.f32.mrb[29].mxu1  ;;  %v1916_v13 = vpop.f32.mrb[30].mxu0 }
 0x131   :  { %v1979_v15 = vadd.f32 %v1978_v12, %v1977_v9  ;;  %v1980_v17 = vpop.f32.mrb[30].mxu1  ;;  %v1917_v19 = vpop.f32.mrb[31].mxu0 }
 0x132   :  { %v1137_v20 = vadd.f32 %v1915_v11, %v2806_v18  ;;  %v1918_v21 = vadd.f32 %v1917_v19, %v1916_v13  ;;  %v1981_v22 = vpop.f32.mrb[31].mxu1 }
 0x133   :  { %v1982_v23 = vadd.f32 %v1981_v22, %v1980_v17 }
 0x134   :  { %v2851_v24 = vadd.f32 %v1979_v15, %v1137_v20  ;;  %v1140_v25 = vadd.f32 %v1918_v21, %v2806_v18 }
 0x136   :  { %v2854_v26 = vadd.f32 %v1982_v23, %v1140_v25  ;;  %v1999_v27 = vpop.f32.mrb[32].mxu0 }
 0x137   :  { %v2063_v28 = vpop.f32.mrb[32].mxu1  ;;  %v2000_v29 = vpop.f32.mrb[33].mxu0 }
 0x138   :  { %v2001_v31 = vadd.f32 %v2000_v29, %v1999_v27  ;;  %v2064_v34 = vpop.f32.mrb[33].mxu1  ;;  %v2002_v36 = vpop.f32.mrb[34].mxu0 }
 0x139   :  { %v2065_v37 = vadd.f32 %v2064_v34, %v2063_v28  ;;  %v2066_v38 = vpop.f32.mrb[34].mxu1  ;;  %v2003_v39 = vpop.f32.mrb[35].mxu0 }
 0x13a   :  { %v1275_v40 = vadd.f32 %v2001_v31, %v2809_v30  ;;  %v2004_v41 = vadd.f32 %v2003_v39, %v2002_v36  ;;  %v2067_v42 = vpop.f32.mrb[35].mxu1 }
 0x13b   :  { %v2068_v43 = vadd.f32 %v2067_v42, %v2066_v38 }
 0x13c   :  { %v1278_v44 = vadd.f32 %v2004_v41, %v2812_v32  ;;  %v2858_v45 = vadd.f32 %v2065_v37, %v1275_v40 }
 0x13e   :  { %v2005_v18 = vpop.f32.mrb[36].mxu0  ;;  %v2860_v47 = vadd.f32 %v2068_v43, %v1278_v44 }
 0x13f   :  { %v2069_v49 = vpop.f32.mrb[36].mxu1  ;;  %v2006_v50 = vpop.f32.mrb[37].mxu0 }
 0x140   :  { %v2007_v52 = vadd.f32 %v2006_v50, %v2005_v18  ;;  %v2070_v54 = vpop.f32.mrb[37].mxu1  ;;  %v2008_v55 = vpop.f32.mrb[38].mxu0 }
 0x141   :  { %v2071_v56 = vadd.f32 %v2070_v54, %v2069_v49  ;;  %v2072_v57 = vpop.f32.mrb[38].mxu1  ;;  %v2009_v58 = vpop.f32.mrb[39].mxu0 }
 0x142   :  { %v1283_v30 = vadd.f32 %v2007_v52, %v2815_v46  ;;  %v2010_v59 = vadd.f32 %v2009_v58, %v2008_v55  ;;  %v2073_v60 = vpop.f32.mrb[39].mxu1 }
 0x143   :  { %v2074_v61 = vadd.f32 %v2073_v60, %v2072_v57 }
 0x144   :  { %v1286_v32 = vadd.f32 %v2010_v59, %v2818_v48  ;;  %v2864_v63 = vadd.f32 %v2071_v56, %v1283_v30 }
 0x146   :  { %v2011_v1 = vpop.f32.mrb[40].mxu0  ;;  %v2866_v2 = vadd.f32 %v2074_v61, %v1286_v32 }
 0x147   :  { %v2075_v3 = vpop.f32.mrb[40].mxu1  ;;  %v2012_v4 = vpop.f32.mrb[41].mxu0 }
 0x148   :  { %v2013_v6 = vadd.f32 %v2012_v4, %v2011_v1  ;;  %v2076_v8 = vpop.f32.mrb[41].mxu1  ;;  %v2014_v9 = vpop.f32.mrb[42].mxu0 }
 0x149   :  { %v2077_v10 = vadd.f32 %v2076_v8, %v2075_v3  ;;  %v2078_v11 = vpop.f32.mrb[42].mxu1  ;;  %v2015_v12 = vpop.f32.mrb[43].mxu0 }
 0x14a   :  { %v1291_v46 = vadd.f32 %v2013_v6, %v2821_v62  ;;  %v2016_v13 = vadd.f32 %v2015_v12, %v2014_v9  ;;  %v2079_v15 = vpop.f32.mrb[43].mxu1 }
 0x14b   :  { %v2080_v17 = vadd.f32 %v2079_v15, %v2078_v11 }
 0x14c   :  { %v1294_v48 = vadd.f32 %v2016_v13, %v2824_v0  ;;  %v2870_v19 = vadd.f32 %v2077_v10, %v1291_v46 }
 0x14e   :  { %v2017_v20 = vpop.f32.mrb[44].mxu0  ;;  %v2872_v21 = vadd.f32 %v2080_v17, %v1294_v48 }
 0x14f   :  { %v2081_v22 = vpop.f32.mrb[44].mxu1  ;;  %v2018_v23 = vpop.f32.mrb[45].mxu0 }
 0x150   :  { %v2019_v25 = vadd.f32 %v2018_v23, %v2017_v20  ;;  %v2082_v27 = vpop.f32.mrb[45].mxu1  ;;  %v2020_v28 = vpop.f32.mrb[46].mxu0 }
 0x151   :  { %v2083_v29 = vadd.f32 %v2082_v27, %v2081_v22  ;;  %v2084_v31 = vpop.f32.mrb[46].mxu1  ;;  %v2021_v34 = vpop.f32.mrb[47].mxu0 }
 0x152   :  { %v1299_v62 = vadd.f32 %v2019_v25, %v2827_v14  ;;  %v2022_v36 = vadd.f32 %v2021_v34, %v2020_v28  ;;  %v2085_v37 = vpop.f32.mrb[47].mxu1 }
 0x153   :  { %v2086_v38 = vadd.f32 %v2085_v37, %v2084_v31 }
 0x154   :  { %v1302_v0 = vadd.f32 %v2022_v36, %v2830_v16  ;;  %v2876_v39 = vadd.f32 %v2083_v29, %v1299_v62 }
 0x156   :  { %v2023_v40 = vpop.f32.mrb[48].mxu0  ;;  %v2878_v41 = vadd.f32 %v2086_v38, %v1302_v0 }
 0x157   :  { %v2087_v42 = vpop.f32.mrb[48].mxu1  ;;  %v2024_v43 = vpop.f32.mrb[49].mxu0 }
 0x158   :  { %v2025_v44 = vadd.f32 %v2024_v43, %v2023_v40  ;;  %v2088_v18 = vpop.f32.mrb[49].mxu1  ;;  %v2026_v49 = vpop.f32.mrb[50].mxu0 }
 0x159   :  { %v2089_v50 = vadd.f32 %v2088_v18, %v2087_v42  ;;  %v2090_v52 = vpop.f32.mrb[50].mxu1  ;;  %v2027_v54 = vpop.f32.mrb[51].mxu0 }
 0x15a   :  { %v1307_v14 = vadd.f32 %v2025_v44, %v2833_v33  ;;  %v2028_v55 = vadd.f32 %v2027_v54, %v2026_v49  ;;  %v2091_v56 = vpop.f32.mrb[51].mxu1 }
 0x15b   :  { %v2092_v57 = vadd.f32 %v2091_v56, %v2090_v52 }
 0x15c   :  { %v1310_v16 = vadd.f32 %v2028_v55, %v2836_v35  ;;  %v1404_v58 = vadd.f32 %v2089_v50, %v1307_v14 }
 0x15e   :  { %v2029_v30 = vpop.f32.mrb[52].mxu0  ;;  %v2882_v59 = vadd.f32 %v2092_v57, %v1310_v16 }
 0x15f   :  { %v2093_v60 = vpop.f32.mrb[52].mxu1  ;;  %v2030_v61 = vpop.f32.mrb[53].mxu0 }
 0x160   :  { %v2031_v32 = vadd.f32 %v2030_v61, %v2029_v30  ;;  %v2094_v1 = vpop.f32.mrb[53].mxu1  ;;  %v2032_v3 = vpop.f32.mrb[54].mxu0 }
 0x161   :  { %v2095_v4 = vadd.f32 %v2094_v1, %v2093_v60  ;;  %v2096_v6 = vpop.f32.mrb[54].mxu1  ;;  %v2033_v8 = vpop.f32.mrb[55].mxu0 }
 0x162   :  { %v1315_v9 = vadd.f32 %v2031_v32, %v2839_v51  ;;  %v2034_v33 = vadd.f32 %v2033_v8, %v2032_v3  ;;  %v2097_v10 = vpop.f32.mrb[55].mxu1 }
 0x163   :  { %v2098_v11 = vadd.f32 %v2097_v10, %v2096_v6 }
 0x164   :  { %v1318_v12 = vadd.f32 %v2034_v33, %v2842_v53  ;;  %v1412_v35 = vadd.f32 %v2095_v4, %v1315_v9 }
 0x166   :  { %v2035_v46 = vpop.f32.mrb[56].mxu0  ;;  %v1415_v13 = vadd.f32 %v2098_v11, %v1318_v12 }
 0x167   :  { %v2099_v15 = vpop.f32.mrb[56].mxu1  ;;  %v2036_v17 = vpop.f32.mrb[57].mxu0 }
 0x168   :  { %v2037_v48 = vadd.f32 %v2036_v17, %v2035_v46  ;;  %v2100_v20 = vpop.f32.mrb[57].mxu1  ;;  %v2038_v22 = vpop.f32.mrb[58].mxu0 }
 0x169   :  { %v2101_v23 = vadd.f32 %v2100_v20, %v2099_v15  ;;  %v2102_v25 = vpop.f32.mrb[58].mxu1  ;;  %v2039_v27 = vpop.f32.mrb[59].mxu0 }
 0x16a   :  { %v1323_v28 = vadd.f32 %v2037_v48, %v2845_v5  ;;  %v2040_v29 = vadd.f32 %v2039_v27, %v2038_v22  ;;  %v2103_v51 = vpop.f32.mrb[59].mxu1 }
 0x16b   :  { %v2104_v31 = vadd.f32 %v2103_v51, %v2102_v25 }
 0x16c   :  { %v1326_v34 = vadd.f32 %v2040_v29, %v2848_v7  ;;  %v1420_v62 = vadd.f32 %v2101_v23, %v1323_v28 }
 0x16e   :  { %v2041_v53 = vpop.f32.mrb[60].mxu0  ;;  %v2888_v36 = vadd.f32 %v2104_v31, %v1326_v34 }
 0x16f   :  { %v2105_v37 = vpop.f32.mrb[60].mxu1  ;;  %v2042_v38 = vpop.f32.mrb[61].mxu0 }
 0x170   :  { %v2043_v0 = vadd.f32 %v2042_v38, %v2041_v53  ;;  %v2106_v40 = vpop.f32.mrb[61].mxu1  ;;  %v2044_v42 = vpop.f32.mrb[62].mxu0 }
 0x171   :  { %v2107_v43 = vadd.f32 %v2106_v40, %v2105_v37  ;;  %v2108_v44 = vpop.f32.mrb[62].mxu1  ;;  %v2045_v18 = vpop.f32.mrb[63].mxu0 }
 0x172   :  { %v1331_v49 = vadd.f32 %v2043_v0, %v2851_v24  ;;  %v2046_v5 = vadd.f32 %v2045_v18, %v2044_v42  ;;  %v2109_v50 = vpop.f32.mrb[63].mxu1 }
 0x173   :  { %v2110_v52 = vadd.f32 %v2109_v50, %v2108_v44 }
 0x174   :  { %v1334_v54 = vadd.f32 %v2046_v5, %v2854_v26  ;;  %v1428_v7 = vadd.f32 %v2107_v43, %v1331_v49 }
 0x176   :  { %v2145_v14 = vpop.f32.mrb[64].mxu0  ;;  %v1431_v55 = vadd.f32 %v2110_v52, %v1334_v54 }
 0x177   :  { %v1477_v56 = vadd.f32 %v2145_v14, %v2864_v63  ;;  %v2153_v57 = vpop.f32.mrb[64].mxu1  ;;  %v1468_v16 = vpop.f32.mrb[65].mxu0 }
 0x178   :  { %v1509_v30 = vadd.f32 %v2153_v57, %v1412_v35  ;;  %v1469_v60 = vadd.f32 %v1468_v16, %v2858_v45  ;;  %v1500_v61 = vpop.f32.mrb[65].mxu1  ;;  %v2146_v32 = vpop.f32.mrb[66].mxu0 }
 0x179   :  { %v1501_v1 = vadd.f32 %v1500_v61, %v1404_v58  ;;  %v1480_v24 = vadd.f32 %v2146_v32, %v2866_v2  ;;  %v2154_v3 = vpop.f32.mrb[66].mxu1  ;;  %v1471_v4 = vpop.f32.mrb[67].mxu0  ;;  %v1533_v9 = vmax.f32 %v1477_v56, 0.0 }
 0x17a   :  { %v1512_v6 = vadd.f32 %v2154_v3, %v1415_v13  ;;  %v1472_v26 = vadd.f32 %v1471_v4, %v2860_v47  ;;  %v1503_v8 = vpop.f32.mrb[67].mxu1  ;;  %v1541_v10 = vmax.f32 %v1509_v30, 0.0  ;;  %v1531_v11 = vmax.f32 %v1469_v60, 0.0 }
 0x17b   :  { %v1534_v33 = vmax.f32 %v1480_v24, 0.0  ;;  %v1504_v63 = vadd.f32 %v1503_v8, %v2882_v59  ;;  %v1539_v45 = vmax.f32 %v1501_v1, 0.0 }
 0x17c   :  { %v1542_v12 = vmax.f32 %v1512_v6, 0.0  ;;  %v1532_v35 = vmax.f32 %v1472_v26, 0.0 }
 0x17d   :  { %v1816_v46 = vpack.c.bf16 %v1534_v33, %v1533_v9  ;;  %v1540_v15 = vmax.f32 %v1504_v63, 0.0 }
 0x17e   :  { %v1836_v58 = vpack.c.bf16 %v1542_v12, %v1541_v10  ;;  %v1811_v17 = vpack.c.bf16 %v1532_v35, %v1531_v11  ;;  %v2149_v2 = vpop.f32.mrb[68].mxu0 }
 0x17f   :  { %1848 = vst [vmem:[%s2929_s3 + $0x8] sm:$0xff] %v1816_v46   ;;  %v1831_v47 = vpack.c.bf16 %v1540_v15, %v1539_v45  ;;  %v1493_v13 = vadd.f32 %v2149_v2, %v2876_v39  ;;  %v2157_v48 = vpop.f32.mrb[68].mxu1  ;;  %v1484_v20 = vpop.f32.mrb[69].mxu0 }
 0x180   :  { %1852 = vst [vmem:[%s2929_s3 + $0x28] sm:$0xff] %v1836_v58   ;;  %1812 = vst [vmem:[%s2929_s3] sm:$0xff] %v1811_v17   ;;  %v1525_v59 = vadd.f32 %v2157_v48, %v1428_v7  ;;  %v1485_v22 = vadd.f32 %v1484_v20, %v2870_v19  ;;  %v1516_v23 = vpop.f32.mrb[69].mxu1  ;;  %v2150_v25 = vpop.f32.mrb[70].mxu0 }
 0x181   :  { %1851 = vst [vmem:[%s2929_s3 + $0x20] sm:$0xff] %v1831_v47   ;;  %v1517_v39 = vadd.f32 %v1516_v23, %v1420_v62  ;;  %v1496_v27 = vadd.f32 %v2150_v25, %v2878_v41  ;;  %v2158_v28 = vpop.f32.mrb[70].mxu1  ;;  %v1487_v29 = vpop.f32.mrb[71].mxu0  ;;  %v1537_v53 = vmax.f32 %v1493_v13, 0.0 }
 0x182   :  { %v1528_v51 = vadd.f32 %v2158_v28, %v1431_v55  ;;  %v1488_v31 = vadd.f32 %v1487_v29, %v2872_v21  ;;  %v1519_v34 = vpop.f32.mrb[71].mxu1  ;;  %v1545_v19 = vmax.f32 %v1525_v59, 0.0  ;;  %v1535_v0 = vmax.f32 %v1485_v22, 0.0 }
 0x183   :  { %v1538_v37 = vmax.f32 %v1496_v27, 0.0  ;;  %v1520_v38 = vadd.f32 %v1519_v34, %v2888_v36  ;;  %v1543_v43 = vmax.f32 %v1517_v39, 0.0 }
 0x184   :  { %v1546_v40 = vmax.f32 %v1528_v51, 0.0  ;;  %v1536_v42 = vmax.f32 %v1488_v31, 0.0 }
 0x185   :  { %v1826_v44 = vpack.c.bf16 %v1538_v37, %v1537_v53  ;;  %v1544_v18 = vmax.f32 %v1520_v38, 0.0 }
 0x186   :  { %v1846_v62 = vpack.c.bf16 %v1546_v40, %v1545_v19  ;;  %v1821_v49 = vpack.c.bf16 %v1536_v42, %v1535_v0 }
 0x187   :  { %1850 = vst [vmem:[%s2929_s3 + $0x18] sm:$0xff] %v1826_v44   ;;  %v1841_v41 = vpack.c.bf16 %v1544_v18, %v1543_v43 }
 0x188   :  { %1854 = vst [vmem:[%s2929_s3 + $0x38] sm:$0xff] %v1846_v62   ;;  %1849 = vst [vmem:[%s2929_s3 + $0x10] sm:$0xff] %v1821_v49  }
 0x189   :  { %1853 = vst [vmem:[%s2929_s3 + $0x30] sm:$0xff] %v1841_v41  }

</bundles_post_ra>
